<compile_context>
chip_gen: v6e
topology: v6e:2x2x1
jax: 0.10.0
libtpu: 0.0.40
codegen_flags: <defaults>
</compile_context>

<pallas_src>
import functools
import numpy as np
import jax
import jax.numpy as jnp
from jax import lax
from jax.experimental import pallas as pl
from jax.experimental.pallas import tpu as pltpu

# ----------------------- configuration (small but consistent) ----------------
COMPOUND_COEF = 2
NUM_CLASSES = 8                       # constructor arg (default 80); small here
SCALES = [2 ** 0, 2 ** (1.0 / 3.0), 2 ** (2.0 / 3.0)]
RATIOS = [(1.0, 1.0), (1.4, 0.7), (0.7, 1.4)]
NUM_ANCHORS = len(SCALES) * len(RATIOS)            # 9
PYRAMID_LEVELS = 5                                  # levels 3..7 for coef=2
STRIDES = [2 ** (i + 3) for i in range(PYRAMID_LEVELS)]   # 8,16,32,64,128
ANCHOR_SCALE = 4.0
IMG_SIZE = 128
BATCH = 2
SCORE_THRESH = 0.2
IOU_THRESH = 0.2
MAX_DET = 32
TOP_K = 256          # pre-NMS candidate count (lane-aligned)
DET_PAD = 128        # NMS output lane width (one full f32 vreg)

C_IN = 8             # image channels (3) zero-padded to 8 for tidy matmul K
C_HID = 32           # synthetic stem hidden width
REG_OUT = NUM_ANCHORS * 4                 # 36
CLS_OUT = NUM_ANCHORS * NUM_CLASSES       # 72
HEAD_PAD = 128                            # fused reg|cls output padded to 128 lanes
TILE_ROWS = 384                           # head row tile (2 tiles -> both v7x cores)

N_PIX = sum((IMG_SIZE // s) ** 2 for s in STRIDES)          # 341
A_TOTAL = N_PIX * NUM_ANCHORS                               # 3069
A_PAD = ((A_TOTAL + 127) // 128) * 128                      # 3072
N_ROWS = BATCH * N_PIX                                      # 682
N_ROWS_PAD = ((N_ROWS + 127) // 128) * 128                  # 768

# Padded-anchor logits are -30 -> sigmoid ~ 9e-14; they must stay below the
# score threshold so padded slots can never be selected.
assert SCORE_THRESH > 1e-6, "score threshold too low for -30 logit padding"
assert REG_OUT + CLS_OUT <= HEAD_PAD
assert N_ROWS_PAD % TILE_ROWS == 0


# ----------------------------- Pallas kernels --------------------------------
def head_kernel(feat_ref, ws_ref, bs_ref, wh_ref, bh_ref, out_ref):
    """Synthetic backbone head: stem matmul + ReLU, then a single FUSED
    regression|classification matmul writing one lane-dense (rows, 128) tile."""
    h = jnp.dot(feat_ref[...], ws_ref[...], preferred_element_type=jnp.float32)
    h = jnp.maximum(h + bs_ref[...], 0.0)                       # (rows, C_HID)
    out_ref[...] = jnp.dot(h, wh_ref[...],
                           preferred_element_type=jnp.float32) + bh_ref[...]


def postproc_kernel(ancreg_ref, cls_ref, out_ref, *, img_h, img_w):
    """BBoxTransform + ClipBoxes + class max (+sigmoid) + threshold mask + label.
    ancreg_ref: (8, A) rows [ya, xa, ha, wa, dy, dx, dh, dw]   (sublane-dense)
    cls_ref:    (C, A) class-major logits                      (anchors on lanes)
    out_ref:    (8, A) rows [xmin, ymin, xmax, ymax, masked_score, label, 0, 0]
    """
    ar = ancreg_ref[...]
    ya, xa, ha, wa = ar[0:1, :], ar[1:2, :], ar[2:3, :], ar[3:4, :]
    dy, dx, dh, dw = ar[4:5, :], ar[5:6, :], ar[6:7, :], ar[7:8, :]

    w = jnp.exp(dw) * wa
    h = jnp.exp(dh) * ha
    yc = dy * ha + ya
    xc = dx * wa + xa

    # BBoxTransform output order (xmin, ymin, xmax, ymax); ClipBoxes clamps
    # xmin/ymin at 0 and xmax/ymax at (width-1)/(height-1) (zylo117 ClipBoxes).
    xmin = jnp.maximum(xc - w * 0.5, 0.0)
    ymin = jnp.maximum(yc - h * 0.5, 0.0)
    xmax = jnp.minimum(xc + w * 0.5, img_w - 1.0)
    ymax = jnp.minimum(yc + h * 0.5, img_h - 1.0)

    logits = cls_ref[...]                                       # (C, A)
    max_logit = jnp.max(logits, axis=0, keepdims=True)          # sublane reduce
    # sigmoid is monotonic: sigmoid(max logit) == max prob; avoids exp over A*C
    score = 1.0 / (1.0 + jnp.exp(-max_logit))                   # (1, A)
    masked = jnp.where(score > SCORE_THRESH, score, -1.0)       # in-kernel mask

    cls_iota = lax.broadcasted_iota(jnp.int32, logits.shape, 0).astype(jnp.float32)
    label = jnp.min(jnp.where(logits == max_logit, cls_iota, float(NUM_CLASSES)),
                    axis=0, keepdims=True)                      # first argmax

    zeros = jnp.zeros_like(masked)
    out_ref[...] = jnp.concatenate(
        [xmin, ymin, xmax, ymax, masked, label, zeros, zeros], axis=0)


def nms_kernel(pack_ref, det_ref):
    """Greedy NMS on TOP_K candidates, fully VMEM-resident.
    pack_ref: (8, K) rows [x1, y1, x2, y2, masked_score, label, 0, 0]
    det_ref:  (8, DET_PAD) column i (< MAX_DET) = selected detection i, rows
              [x1, y1, x2, y2, score, label, valid, 0]; unused columns are 0.
    Suppression uses `iou >= IOU_THRESH`, matching the reference nms_pytorch
    which KEEPS `ious < iou_threshold`.
    """
    data = pack_ref[...]                                        # (8, K)
    K = data.shape[1]
    x1, y1 = data[0:1, :], data[1:2, :]
    x2, y2 = data[2:3, :], data[3:4, :]
    scores = data[4:5, :]
    areas = (x2 - x1) * (y2 - y1)                               # (1, K)
    lane_f = lax.broadcasted_iota(jnp.int32, (1, K), 1).astype(jnp.float32)
    det_lane = lax.broadcasted_iota(jnp.int32, (8, DET_PAD), 1)
    row_idx = lax.broadcasted_iota(jnp.int32, (8, 1), 0)

    def body(i, carry):
        alive, det_cols = carry                                  # (1,K), (8,DET_PAD)
        m = jnp.max(alive, axis=1, keepdims=True)                # (1,1) best score
        valid = m > SCORE_THRESH                                 # (1,1) bool
        # first index attaining the max (matches descending-sort pick order)
        idx_f = jnp.min(jnp.where(alive == m, lane_f, float(K)),
                        axis=1, keepdims=True)                   # (1,1)
        onehot = lane_f == idx_f                                 # (1,K) bool
        onehot_f = onehot.astype(jnp.float32)
        cur = jnp.sum(data * onehot_f, axis=1, keepdims=True)    # (8,1) selected col
        cx1, cy1 = cur[0:1, :], cur[1:2, :]
        cx2, cy2 = cur[2:3, :], cur[3:4, :]
        xx1 = jnp.maximum(cx1, x1)
        yy1 = jnp.maximum(cy1, y1)
        xx2 = jnp.minimum(cx2, x2)
        yy2 = jnp.minimum(cy2, y2)
        inter = jnp.maximum(xx2 - xx1, 0.0) * jnp.maximum(yy2 - yy1, 0.0)
        area_c = (cx2 - cx1) * (cy2 - cy1)
        iou = inter / (area_c + areas - inter + 1e-8)
        suppress = (iou >= IOU_THRESH) | onehot
        alive = jnp.where(valid & suppress, -1.0, alive)
        cur = jnp.where(row_idx == 6, 1.0, cur)                  # valid flag row
        write = (det_lane == i) & valid
        det_cols = jnp.where(write, cur, det_cols)
        return alive, det_cols

    det0 = jnp.zeros((8, DET_PAD), jnp.float32)
    _, det_cols = lax.fori_loop(0, MAX_DET, body, (scores, det0))
    det_ref[...] = det_cols


# ----------------------------- kernel wrappers --------------------------------
def run_head(feat_flat, params):
    N = feat_flat.shape[0]
    full = lambda shp: pl.BlockSpec(shp, lambda i: (0, 0))
    return pl.pallas_call(
        head_kernel,
        out_shape=jax.ShapeDtypeStruct((N, HEAD_PAD), jnp.float32),
        grid=(N // TILE_ROWS,),
        in_specs=[pl.BlockSpec((TILE_ROWS, C_IN), lambda i: (i, 0)),
                  full((C_IN, C_HID)), full((1, C_HID)),
                  full((C_HID, HEAD_PAD)), full((1, HEAD_PAD))],
        out_specs=pl.BlockSpec((TILE_ROWS, HEAD_PAD), lambda i: (i, 0)),
        compiler_params=pltpu.CompilerParams(
            dimension_semantics=("parallel",)),
    )(feat_flat, params["w_stem"], params["b_stem"],
      params["w_head"], params["b_head"])


def run_postproc(ancreg, cls_cm):
    B, _, A = ancreg.shape
    kern = functools.partial(postproc_kernel,
                             img_h=float(IMG_SIZE), img_w=float(IMG_SIZE))
    return pl.pallas_call(
        kern,
        out_shape=jax.ShapeDtypeStruct((B, 8, A), jnp.float32),
        grid=(B,),
        in_specs=[pl.BlockSpec((None, 8, A), lambda b: (b, 0, 0)),
                  pl.BlockSpec((None, NUM_CLASSES, A), lambda b: (b, 0, 0))],
        out_specs=pl.BlockSpec((None, 8, A), lambda b: (b, 0, 0)),
        compiler_params=pltpu.CompilerParams(
            dimension_semantics=("parallel",)),
    )(ancreg, cls_cm)


def run_nms(packed_topk):
    K = packed_topk.shape[1]
    return pl.pallas_call(
        nms_kernel,
        out_shape=jax.ShapeDtypeStruct((8, DET_PAD), jnp.float32),
        grid=(1,),
        in_specs=[pl.BlockSpec((8, K), lambda i: (0, 0))],
        out_specs=pl.BlockSpec((8, DET_PAD), lambda i: (0, 0)),
    )(packed_topk)


# ----------------------------- anchors (host-side constants) ------------------
def generate_anchors():
    """Matches zylo117 Anchors: per level, per (scale, ratio) combo, boxes in
    (y1, x1, y2, x2) order; layout (pixel, anchor, 4) per level."""
    all_boxes = []
    for stride in STRIDES:
        level_boxes = []
        for scale in SCALES:
            for ratio in RATIOS:
                base = ANCHOR_SCALE * stride * scale
                ax2 = base * ratio[0] / 2.0
                ay2 = base * ratio[1] / 2.0
                xs = np.arange(stride / 2.0, IMG_SIZE, stride)
                ys = np.arange(stride / 2.0, IMG_SIZE, stride)
                xv, yv = np.meshgrid(xs, ys)
                xv = xv.reshape(-1)
                yv = yv.reshape(-1)
                b = np.vstack((yv - ay2, xv - ax2, yv + ay2, xv + ax2)).T
                level_boxes.append(b[:, None, :])
        level = np.concatenate(level_boxes, axis=1)     # (HW, 9, 4)
        all_boxes.append(level.reshape(-1, 4))
    return np.concatenate(all_boxes, axis=0).astype(np.float32)   # (A_TOTAL, 4)


def generate_anchor_stats():
    """Precompute BBoxTransform's anchor stats [ya, xa, ha, wa] in coordinate-
    major (4, A_PAD) layout (anchors on lanes), zero-padded."""
    anc = generate_anchors()                                     # (A, 4) y1,x1,y2,x2
    ya = (anc[:, 0] + anc[:, 2]) * 0.5
    xa = (anc[:, 1] + anc[:, 3]) * 0.5
    ha = anc[:, 2] - anc[:, 0]
    wa = anc[:, 3] - anc[:, 1]
    stats = np.stack([ya, xa, ha, wa], axis=0)                   # (4, A_TOTAL)
    out = np.zeros((4, A_PAD), np.float32)
    out[:, :A_TOTAL] = stats
    return out


# ----------------------------- forward (wrapper) -------------------------------
def forward(x, params, anc_stats):
    """x: (B, 3, H, W) NCHW float32 (PyTorch convention)."""
    B = x.shape[0]
    x_nhwc = jnp.transpose(x, (0, 2, 3, 1))                      # (B, H, W, 3)

    # synthetic pyramid features: average pool to each level's resolution
    # TODO(synk): real EfficientNet backbone + BiFPN not provided in source;
    # replaced with pooled features + Pallas matmul head.
    feats = []
    for s in STRIDES:
        h = IMG_SIZE // s
        pooled = x_nhwc.reshape(B, h, s, h, s, 3).mean(axis=(2, 4))
        feats.append(pooled.reshape(B, h * h, 3))
    feat = jnp.concatenate(feats, axis=1)                        # (B, N_PIX, 3)
    feat = jnp.pad(feat, ((0, 0), (0, 0), (0, C_IN - 3)))
    feat_flat = feat.reshape(B * N_PIX, C_IN)
    feat_flat = jnp.pad(feat_flat, ((0, N_ROWS_PAD - B * N_PIX), (0, 0)))

    # fused, lane-dense head output: cols [0:36)=reg, [36:108)=cls, rest pad
    head_out = run_head(feat_flat, params)                       # (N_ROWS_PAD, 128)
    ho = head_out[:B * N_PIX]
    reg = ho[:, :REG_OUT].reshape(B, A_TOTAL, 4)
    cls = ho[:, REG_OUT:REG_OUT + CLS_OUT].reshape(B, A_TOTAL, NUM_CLASSES)

    # relayout: anchors on lanes (coordinate-major deltas / class-major logits)
    reg_cm = jnp.pad(jnp.transpose(reg, (0, 2, 1)),
                     ((0, 0), (0, 0), (0, A_PAD - A_TOTAL)))     # (B, 4, A_PAD)
    cls_cm = jnp.pad(jnp.transpose(cls, (0, 2, 1)),
                     ((0, 0), (0, 0), (0, A_PAD - A_TOTAL)),
                     constant_values=-30.0)                      # sigmoid ~ 0 << thresh
    anc_b = jnp.broadcast_to(anc_stats[None], (B, 4, A_PAD))
    ancreg = jnp.concatenate([anc_b, reg_cm], axis=1)            # (B, 8, A_PAD)

    packed = run_postproc(ancreg, cls_cm)                        # (B, 8, A_PAD)

    # greedy NMS on image 0 (the reference only post-processes image 0)
    packed0 = packed[0]                                          # (8, A_PAD)
    scores0 = packed0[4]                                         # masked max scores
    # TODO(synk): pre-NMS top-k prefilter (exact unless >TOP_K anchors pass the
    # threshold AND suppression reaches beyond the top TOP_K scores).
    _, topk_idx = lax.top_k(scores0, TOP_K)
    nms_in = jnp.take(packed0, topk_idx, axis=1)                 # (8, TOP_K)
    det = run_nms(nms_in)                                        # (8, DET_PAD)

    valid = det[6, :MAX_DET]                                     # (MAX_DET,)
    sel_boxes = (det[0:4, :MAX_DET] * valid[None, :]).T          # (MAX_DET, 4)
    sel_scores = det[4, :MAX_DET] * valid
    # TODO(synk): labels are int32 (PyTorch int64 requires jax x64 mode).
    sel_labels = jnp.where(valid > 0, det[5, :MAX_DET], 0.0).astype(jnp.int32)
    # TODO(synk): PyTorch returns dynamic-shape (1, K, 4) / early-returns zeros;
    # JAX requires static shapes, so outputs are fixed (1, MAX_DET, ...) padded.
    return sel_boxes[None], sel_scores[None], sel_labels[None]


def make_params(key):
    k0, k1, k2 = jax.random.split(key, 3)
    w_stem = jax.random.normal(k0, (C_IN, C_HID), jnp.float32) * 0.5
    b_stem = jnp.zeros((1, C_HID), jnp.float32)
    w_reg = jax.random.normal(k1, (C_HID, REG_OUT), jnp.float32) * 0.1
    w_cls = jax.random.normal(k2, (C_HID, CLS_OUT), jnp.float32) * 0.1
    # fuse reg|cls heads into a single lane-dense (C_HID, 128) weight
    w_head = jnp.zeros((C_HID, HEAD_PAD), jnp.float32)
    w_head = w_head.at[:, :REG_OUT].set(w_reg)
    w_head = w_head.at[:, REG_OUT:REG_OUT + CLS_OUT].set(w_cls)
    b_head = jnp.zeros((1, HEAD_PAD), jnp.float32)
    return dict(w_stem=w_stem, b_stem=b_stem, w_head=w_head, b_head=b_head)


if __name__ == "__main__":
    key = jax.random.PRNGKey(0)
    kx, kp = jax.random.split(key)
    x = jax.random.normal(kx, (BATCH, 3, IMG_SIZE, IMG_SIZE), jnp.float32)
    params = make_params(kp)
    anc_stats = jnp.asarray(generate_anchor_stats())

    fwd = jax.jit(forward)
    boxes, scores, labels = fwd(x, params, anc_stats)
    jax.block_until_ready((boxes, scores, labels))

    assert boxes.shape == (1, MAX_DET, 4)
    assert scores.shape == (1, MAX_DET)
    assert labels.shape == (1, MAX_DET)
    print("KERNEL_OK")
</pallas_src>

<mosaic_0001>
module attributes {stable_mosaic.version = 11 : i64} {
  func.func @head_kernel(%arg0: i32, %arg1: memref<384x8xf32, #tpu.memory_space<vmem>>, %arg2: memref<8x32xf32, #tpu.memory_space<vmem>>, %arg3: memref<1x32xf32, #tpu.memory_space<vmem>>, %arg4: memref<32x128xf32, #tpu.memory_space<vmem>>, %arg5: memref<1x128xf32, #tpu.memory_space<vmem>>, %arg6: memref<384x128xf32, #tpu.memory_space<vmem>>) attributes {dimension_semantics = [#tpu.dimension_semantics<parallel>], iteration_bounds = array<i64: 2>, scalar_prefetch = 0 : i64, scratch_operands = 0 : i64, tpu.core_type = #tpu.core_type<tc>, window_params = [{transform_indices = @transform_0, window_bounds = array<i64: 384, 8>}, {pipeline_mode = #tpu.pipeline_mode<synchronous>, transform_indices = @transform_1, window_bounds = array<i64: 8, 32>}, {pipeline_mode = #tpu.pipeline_mode<synchronous>, transform_indices = @transform_2, window_bounds = array<i64: 1, 32>}, {pipeline_mode = #tpu.pipeline_mode<synchronous>, transform_indices = @transform_3, window_bounds = array<i64: 32, 128>}, {pipeline_mode = #tpu.pipeline_mode<synchronous>, transform_indices = @transform_4, window_bounds = array<i64: 1, 128>}, {transform_indices = @transform_5, window_bounds = array<i64: 384, 128>}]} {
    %c0 = arith.constant 0 : index
    %c0_0 = arith.constant 0 : index
    %0 = vector.load %arg1[%c0, %c0_0] : memref<384x8xf32, #tpu.memory_space<vmem>>, vector<384x8xf32>
    %c0_1 = arith.constant 0 : index
    %c0_2 = arith.constant 0 : index
    %1 = vector.load %arg2[%c0_1, %c0_2] : memref<8x32xf32, #tpu.memory_space<vmem>>, vector<8x32xf32>
    %cst = arith.constant dense<0.000000e+00> : vector<384x32xf32>
    %2 = tpu.matmul %0, %1, %cst {dimension_numbers = #tpu.dot_dimension_numbers<[1], [0], [0], [1], [0, 0, 1, 1], [], []>} : vector<384x8xf32>, vector<8x32xf32>, vector<384x32xf32> -> vector<384x32xf32>
    %c0_3 = arith.constant 0 : index
    %c0_4 = arith.constant 0 : index
    %3 = vector.load %arg3[%c0_3, %c0_4] : memref<1x32xf32, #tpu.memory_space<vmem>>, vector<1x32xf32>
    %4 = vector.broadcast %3 : vector<1x32xf32> to vector<384x32xf32>
    %5 = arith.addf %2, %4 : vector<384x32xf32>
    %cst_5 = arith.constant 0.000000e+00 : f32
    %6 = vector.broadcast %cst_5 : f32 to vector<384x32xf32>
    %7 = arith.maximumf %5, %6 : vector<384x32xf32>
    %c0_6 = arith.constant 0 : index
    %c0_7 = arith.constant 0 : index
    %8 = vector.load %arg4[%c0_6, %c0_7] : memref<32x128xf32, #tpu.memory_space<vmem>>, vector<32x128xf32>
    %cst_8 = arith.constant dense<0.000000e+00> : vector<384x128xf32>
    %9 = tpu.matmul %7, %8, %cst_8 {dimension_numbers = #tpu.dot_dimension_numbers<[1], [0], [0], [1], [0, 0, 1, 1], [], []>} : vector<384x32xf32>, vector<32x128xf32>, vector<384x128xf32> -> vector<384x128xf32>
    %c0_9 = arith.constant 0 : index
    %c0_10 = arith.constant 0 : index
    %10 = vector.load %arg5[%c0_9, %c0_10] : memref<1x128xf32, #tpu.memory_space<vmem>>, vector<1x128xf32>
    %11 = vector.broadcast %10 : vector<1x128xf32> to vector<384x128xf32>
    %12 = arith.addf %9, %11 : vector<384x128xf32>
    %c0_11 = arith.constant 0 : index
    %c0_12 = arith.constant 0 : index
    %13 = vector.load %arg6[%c0_11, %c0_12] : memref<384x128xf32, #tpu.memory_space<vmem>>, vector<384x128xf32>
    tpu.vector_store %arg6[%c0_11, %c0_12], %12 {strides = array<i32>} : memref<384x128xf32, #tpu.memory_space<vmem>>, vector<384x128xf32>,
    return
  }
  func.func @transform_0(%arg0: i32) -> (i32, i32) {
    %c0_i32 = arith.constant 0 : i32
    %c0_i32_0 = arith.constant 0 : i32
    return %arg0, %c0_i32 : i32, i32
  }
  func.func @transform_1(%arg0: i32) -> (i32, i32) {
    %c0_i32 = arith.constant 0 : i32
    %c0_i32_0 = arith.constant 0 : i32
    %c0_i32_1 = arith.constant 0 : i32
    return %c0_i32, %c0_i32_0 : i32, i32
  }
  func.func @transform_2(%arg0: i32) -> (i32, i32) {
    %c0_i32 = arith.constant 0 : i32
    %c0_i32_0 = arith.constant 0 : i32
    %c0_i32_1 = arith.constant 0 : i32
    return %c0_i32, %c0_i32_0 : i32, i32
  }
  func.func @transform_3(%arg0: i32) -> (i32, i32) {
    %c0_i32 = arith.constant 0 : i32
    %c0_i32_0 = arith.constant 0 : i32
    %c0_i32_1 = arith.constant 0 : i32
    return %c0_i32, %c0_i32_0 : i32, i32
  }
  func.func @transform_4(%arg0: i32) -> (i32, i32) {
    %c0_i32 = arith.constant 0 : i32
    %c0_i32_0 = arith.constant 0 : i32
    %c0_i32_1 = arith.constant 0 : i32
    return %c0_i32, %c0_i32_0 : i32, i32
  }
  func.func @transform_5(%arg0: i32) -> (i32, i32) {
    %c0_i32 = arith.constant 0 : i32
    %c0_i32_0 = arith.constant 0 : i32
    return %arg0, %c0_i32 : i32, i32
  }
}

module attributes {stable_mosaic.version = 11 : i64} {
  func.func @postproc_kernel(%arg0: i32, %arg1: memref<1x8x3072xf32, #tpu.memory_space<vmem>>, %arg2: memref<1x8x3072xf32, #tpu.memory_space<vmem>>, %arg3: memref<1x8x3072xf32, #tpu.memory_space<vmem>>) attributes {dimension_semantics = [#tpu.dimension_semantics<parallel>], iteration_bounds = array<i64: 2>, scalar_prefetch = 0 : i64, scratch_operands = 0 : i64, tpu.core_type = #tpu.core_type<tc>, window_params = [{transform_indices = @transform_0, window_bounds = array<i64: 1, 8, 3072>}, {transform_indices = @transform_1, window_bounds = array<i64: 1, 8, 3072>}, {transform_indices = @transform_2, window_bounds = array<i64: 1, 8, 3072>}]} {
    %c0 = arith.constant 0 : index
    %c0_0 = arith.constant 0 : index
    %c0_1 = arith.constant 0 : index
    %0 = vector.load %arg1[%c0, %c0_0, %c0_1] : memref<1x8x3072xf32, #tpu.memory_space<vmem>>, vector<1x8x3072xf32>
    %1 = vector.shape_cast %0 : vector<1x8x3072xf32> to vector<8x3072xf32>
    %2 = vector.extract_strided_slice %1 {offsets = [0, 0], sizes = [1, 3072], strides = [1, 1]} : vector<8x3072xf32> to vector<1x3072xf32>
    %3 = vector.extract_strided_slice %1 {offsets = [1, 0], sizes = [1, 3072], strides = [1, 1]} : vector<8x3072xf32> to vector<1x3072xf32>
    %4 = vector.extract_strided_slice %1 {offsets = [2, 0], sizes = [1, 3072], strides = [1, 1]} : vector<8x3072xf32> to vector<1x3072xf32>
    %5 = vector.extract_strided_slice %1 {offsets = [3, 0], sizes = [1, 3072], strides = [1, 1]} : vector<8x3072xf32> to vector<1x3072xf32>
    %6 = vector.extract_strided_slice %1 {offsets = [4, 0], sizes = [1, 3072], strides = [1, 1]} : vector<8x3072xf32> to vector<1x3072xf32>
    %7 = vector.extract_strided_slice %1 {offsets = [5, 0], sizes = [1, 3072], strides = [1, 1]} : vector<8x3072xf32> to vector<1x3072xf32>
    %8 = vector.extract_strided_slice %1 {offsets = [6, 0], sizes = [1, 3072], strides = [1, 1]} : vector<8x3072xf32> to vector<1x3072xf32>
    %9 = vector.extract_strided_slice %1 {offsets = [7, 0], sizes = [1, 3072], strides = [1, 1]} : vector<8x3072xf32> to vector<1x3072xf32>
    %10 = math.exp %9 : vector<1x3072xf32>
    %11 = arith.mulf %10, %5 : vector<1x3072xf32>
    %12 = math.exp %8 : vector<1x3072xf32>
    %13 = arith.mulf %12, %4 : vector<1x3072xf32>
    %14 = arith.mulf %6, %4 : vector<1x3072xf32>
    %15 = arith.addf %14, %2 : vector<1x3072xf32>
    %16 = arith.mulf %7, %5 : vector<1x3072xf32>
    %17 = arith.addf %16, %3 : vector<1x3072xf32>
    %cst = arith.constant 5.000000e-01 : f32
    %18 = vector.broadcast %cst : f32 to vector<1x3072xf32>
    %19 = arith.mulf %11, %18 : vector<1x3072xf32>
    %20 = arith.subf %17, %19 : vector<1x3072xf32>
    %cst_2 = arith.constant 0.000000e+00 : f32
    %21 = vector.broadcast %cst_2 : f32 to vector<1x3072xf32>
    %22 = arith.maximumf %20, %21 : vector<1x3072xf32>
    %cst_3 = arith.constant 5.000000e-01 : f32
    %23 = vector.broadcast %cst_3 : f32 to vector<1x3072xf32>
    %24 = arith.mulf %13, %23 : vector<1x3072xf32>
    %25 = arith.subf %15, %24 : vector<1x3072xf32>
    %cst_4 = arith.constant 0.000000e+00 : f32
    %26 = vector.broadcast %cst_4 : f32 to vector<1x3072xf32>
    %27 = arith.maximumf %25, %26 : vector<1x3072xf32>
    %cst_5 = arith.constant 5.000000e-01 : f32
    %28 = vector.broadcast %cst_5 : f32 to vector<1x3072xf32>
    %29 = arith.mulf %11, %28 : vector<1x3072xf32>
    %30 = arith.addf %17, %29 : vector<1x3072xf32>
    %cst_6 = arith.constant 1.270000e+02 : f32
    %31 = vector.broadcast %cst_6 : f32 to vector<1x3072xf32>
    %32 = arith.minimumf %30, %31 : vector<1x3072xf32>
    %cst_7 = arith.constant 5.000000e-01 : f32
    %33 = vector.broadcast %cst_7 : f32 to vector<1x3072xf32>
    %34 = arith.mulf %13, %33 : vector<1x3072xf32>
    %35 = arith.addf %15, %34 : vector<1x3072xf32>
    %cst_8 = arith.constant 1.270000e+02 : f32
    %36 = vector.broadcast %cst_8 : f32 to vector<1x3072xf32>
    %37 = arith.minimumf %35, %36 : vector<1x3072xf32>
    %c0_9 = arith.constant 0 : index
    %c0_10 = arith.constant 0 : index
    %c0_11 = arith.constant 0 : index
    %38 = vector.load %arg2[%c0_9, %c0_10, %c0_11] : memref<1x8x3072xf32, #tpu.memory_space<vmem>>, vector<1x8x3072xf32>
    %39 = vector.shape_cast %38 : vector<1x8x3072xf32> to vector<8x3072xf32>
    %cst_12 = arith.constant dense<0xFF800000> : vector<3072xf32>
    %40 = vector.multi_reduction <maximumf>, %39, %cst_12 [0] : vector<8x3072xf32> to vector<3072xf32>
    %41 = vector.shape_cast %40 : vector<3072xf32> to vector<1x3072xf32>
    %cst_13 = arith.constant 0.000000e+00 : f32
    %42 = vector.broadcast %cst_13 : f32 to vector<1x3072xf32>
    %43 = arith.subf %42, %41 : vector<1x3072xf32>
    %44 = math.exp %43 : vector<1x3072xf32>
    %cst_14 = arith.constant 1.000000e+00 : f32
    %45 = vector.broadcast %cst_14 : f32 to vector<1x3072xf32>
    %46 = arith.addf %45, %44 : vector<1x3072xf32>
    %cst_15 = arith.constant 1.000000e+00 : f32
    %47 = vector.broadcast %cst_15 : f32 to vector<1x3072xf32>
    %48 = arith.divf %47, %46 : vector<1x3072xf32>
    %cst_16 = arith.constant 2.000000e-01 : f32
    %49 = vector.broadcast %cst_16 : f32 to vector<1x3072xf32>
    %50 = arith.cmpf ogt, %48, %49 : vector<1x3072xf32>
    %cst_17 = arith.constant -1.000000e+00 : f32
    %51 = vector.broadcast %cst_17 : f32 to vector<1x3072xf32>
    %52 = arith.select %50, %48, %51 : vector<1x3072xi1>, vector<1x3072xf32>
    %53 = tpu.iota {dimensions = array<i32: 0>} : vector<8x3072xi32>
    %54 = arith.sitofp %53 : vector<8x3072xi32> to vector<8x3072xf32>
    %55 = vector.broadcast %41 : vector<1x3072xf32> to vector<8x3072xf32>
    %56 = arith.cmpf oeq, %39, %55 : vector<8x3072xf32>
    %cst_18 = arith.constant 8.000000e+00 : f32
    %57 = vector.broadcast %cst_18 : f32 to vector<8x3072xf32>
    %58 = arith.select %56, %54, %57 : vector<8x3072xi1>, vector<8x3072xf32>
    %cst_19 = arith.constant dense<0x7F800000> : vector<3072xf32>
    %59 = vector.multi_reduction <minimumf>, %58, %cst_19 [0] : vector<8x3072xf32> to vector<3072xf32>
    %60 = vector.shape_cast %59 : vector<3072xf32> to vector<1x3072xf32>
    %cst_20 = arith.constant 0.000000e+00 : f32
    %61 = vector.broadcast %cst_20 : f32 to vector<1x3072xf32>
    %62 = tpu.concatenate %22, %27, %32, %37, %52, %60, %61, %61 in 0 : vector<1x3072xf32>, vector<1x3072xf32>, vector<1x3072xf32>, vector<1x3072xf32>, vector<1x3072xf32>, vector<1x3072xf32>, vector<1x3072xf32>, vector<1x3072xf32> -> vector<8x3072xf32>
    %c0_21 = arith.constant 0 : index
    %c0_22 = arith.constant 0 : index
    %c0_23 = arith.constant 0 : index
    %63 = vector.load %arg3[%c0_21, %c0_22, %c0_23] : memref<1x8x3072xf32, #tpu.memory_space<vmem>>, vector<1x8x3072xf32>
    %64 = vector.shape_cast %63 : vector<1x8x3072xf32> to vector<8x3072xf32>
    %65 = vector.shape_cast %62 : vector<8x3072xf32> to vector<1x8x3072xf32>
    tpu.vector_store %arg3[%c0_21, %c0_22, %c0_23], %65 {strides = array<i32>} : memref<1x8x3072xf32, #tpu.memory_space<vmem>>, vector<1x8x3072xf32>,
    return
  }
  func.func @transform_0(%arg0: i32) -> (i32, i32, i32) {
    %c0_i32 = arith.constant 0 : i32
    %c0_i32_0 = arith.constant 0 : i32
    %c0_i32_1 = arith.constant 0 : i32
    return %arg0, %c0_i32, %c0_i32_0 : i32, i32, i32
  }
  func.func @transform_1(%arg0: i32) -> (i32, i32, i32) {
    %c0_i32 = arith.constant 0 : i32
    %c0_i32_0 = arith.constant 0 : i32
    %c0_i32_1 = arith.constant 0 : i32
    return %arg0, %c0_i32, %c0_i32_0 : i32, i32, i32
  }
  func.func @transform_2(%arg0: i32) -> (i32, i32, i32) {
    %c0_i32 = arith.constant 0 : i32
    %c0_i32_0 = arith.constant 0 : i32
    %c0_i32_1 = arith.constant 0 : i32
    return %arg0, %c0_i32, %c0_i32_0 : i32, i32, i32
  }
}

module attributes {stable_mosaic.version = 11 : i64} {
  func.func @nms_kernel(%arg0: i32, %arg1: memref<8x256xf32, #tpu.memory_space<vmem>>, %arg2: memref<8x128xf32, #tpu.memory_space<vmem>>) attributes {dimension_semantics = [#tpu.dimension_semantics<arbitrary>], iteration_bounds = array<i64: 1>, scalar_prefetch = 0 : i64, scratch_operands = 0 : i64, tpu.core_type = #tpu.core_type<tc>, window_params = [{pipeline_mode = #tpu.pipeline_mode<synchronous>, transform_indices = @transform_0, window_bounds = array<i64: 8, 256>}, {pipeline_mode = #tpu.pipeline_mode<synchronous>, transform_indices = @transform_1, window_bounds = array<i64: 8, 128>}]} {
    %c0 = arith.constant 0 : index
    %c0_0 = arith.constant 0 : index
    %0 = vector.load %arg1[%c0, %c0_0] : memref<8x256xf32, #tpu.memory_space<vmem>>, vector<8x256xf32>
    %1 = vector.extract_strided_slice %0 {offsets = [0, 0], sizes = [1, 256], strides = [1, 1]} : vector<8x256xf32> to vector<1x256xf32>
    %2 = vector.extract_strided_slice %0 {offsets = [1, 0], sizes = [1, 256], strides = [1, 1]} : vector<8x256xf32> to vector<1x256xf32>
    %3 = vector.extract_strided_slice %0 {offsets = [2, 0], sizes = [1, 256], strides = [1, 1]} : vector<8x256xf32> to vector<1x256xf32>
    %4 = vector.extract_strided_slice %0 {offsets = [3, 0], sizes = [1, 256], strides = [1, 1]} : vector<8x256xf32> to vector<1x256xf32>
    %5 = vector.extract_strided_slice %0 {offsets = [4, 0], sizes = [1, 256], strides = [1, 1]} : vector<8x256xf32> to vector<1x256xf32>
    %6 = arith.subf %3, %1 : vector<1x256xf32>
    %7 = arith.subf %4, %2 : vector<1x256xf32>
    %8 = arith.mulf %6, %7 : vector<1x256xf32>
    %9 = tpu.iota {dimensions = array<i32: 1>} : vector<1x256xi32>
    %10 = arith.sitofp %9 : vector<1x256xi32> to vector<1x256xf32>
    %11 = tpu.iota {dimensions = array<i32: 1>} : vector<8x128xi32>
    %12 = tpu.iota {dimensions = array<i32: 0>} : vector<8x1xi32>
    %cst = arith.constant 0.000000e+00 : f32
    %13 = vector.broadcast %cst : f32 to vector<8x128xf32>
    %c0_i32 = arith.constant 0 : i32
    %c32_i32 = arith.constant 32 : i32
    %14 = arith.addi %c0_i32, %c32_i32 : i32
    %c1_i32 = arith.constant 1 : i32
    %15:2 = scf.for %arg3 = %c0_i32 to %14 step %c1_i32 iter_args(%arg4 = %5, %arg5 = %13) -> (vector<1x256xf32>, vector<8x128xf32>)  : i32 {
      %cst_4 = arith.constant dense<0xFF800000> : vector<1xf32>
      %17 = vector.multi_reduction <maximumf>, %arg4, %cst_4 [1] : vector<1x256xf32> to vector<1xf32>
      %18 = vector.shape_cast %17 : vector<1xf32> to vector<1x1xf32>
      %cst_5 = arith.constant 2.000000e-01 : f32
      %19 = vector.broadcast %cst_5 : f32 to vector<1x1xf32>
      %20 = arith.cmpf ogt, %18, %19 : vector<1x1xf32>
      %21 = vector.broadcast %18 : vector<1x1xf32> to vector<1x256xf32>
      %22 = arith.cmpf oeq, %arg4, %21 : vector<1x256xf32>
      %cst_6 = arith.constant 2.560000e+02 : f32
      %23 = vector.broadcast %cst_6 : f32 to vector<1x256xf32>
      %24 = arith.select %22, %10, %23 : vector<1x256xi1>, vector<1x256xf32>
      %cst_7 = arith.constant dense<0x7F800000> : vector<1xf32>
      %25 = vector.multi_reduction <minimumf>, %24, %cst_7 [1] : vector<1x256xf32> to vector<1xf32>
      %26 = vector.shape_cast %25 : vector<1xf32> to vector<1x1xf32>
      %27 = vector.broadcast %26 : vector<1x1xf32> to vector<1x256xf32>
      %28 = arith.cmpf oeq, %10, %27 : vector<1x256xf32>
      %29 = arith.extui %28 : vector<1x256xi1> to vector<1x256xi32>
      %30 = arith.sitofp %29 : vector<1x256xi32> to vector<1x256xf32>
      %31 = vector.broadcast %30 : vector<1x256xf32> to vector<8x256xf32>
      %32 = arith.mulf %0, %31 : vector<8x256xf32>
      %cst_8 = arith.constant dense<0.000000e+00> : vector<8xf32>
      %33 = vector.multi_reduction <add>, %32, %cst_8 [1] : vector<8x256xf32> to vector<8xf32>
      %34 = vector.shape_cast %33 : vector<8xf32> to vector<8x1xf32>
      %35 = vector.extract_strided_slice %34 {offsets = [0, 0], sizes = [1, 1], strides = [1, 1]} : vector<8x1xf32> to vector<1x1xf32>
      %36 = vector.extract_strided_slice %34 {offsets = [1, 0], sizes = [1, 1], strides = [1, 1]} : vector<8x1xf32> to vector<1x1xf32>
      %37 = vector.extract_strided_slice %34 {offsets = [2, 0], sizes = [1, 1], strides = [1, 1]} : vector<8x1xf32> to vector<1x1xf32>
      %38 = vector.extract_strided_slice %34 {offsets = [3, 0], sizes = [1, 1], strides = [1, 1]} : vector<8x1xf32> to vector<1x1xf32>
      %39 = vector.broadcast %35 : vector<1x1xf32> to vector<1x256xf32>
      %40 = arith.maximumf %39, %1 : vector<1x256xf32>
      %41 = vector.broadcast %36 : vector<1x1xf32> to vector<1x256xf32>
      %42 = arith.maximumf %41, %2 : vector<1x256xf32>
      %43 = vector.broadcast %37 : vector<1x1xf32> to vector<1x256xf32>
      %44 = arith.minimumf %43, %3 : vector<1x256xf32>
      %45 = vector.broadcast %38 : vector<1x1xf32> to vector<1x256xf32>
      %46 = arith.minimumf %45, %4 : vector<1x256xf32>
      %47 = arith.subf %44, %40 : vector<1x256xf32>
      %cst_9 = arith.constant 0.000000e+00 : f32
      %48 = vector.broadcast %cst_9 : f32 to vector<1x256xf32>
      %49 = arith.maximumf %47, %48 : vector<1x256xf32>
      %50 = arith.subf %46, %42 : vector<1x256xf32>
      %cst_10 = arith.constant 0.000000e+00 : f32
      %51 = vector.broadcast %cst_10 : f32 to vector<1x256xf32>
      %52 = arith.maximumf %50, %51 : vector<1x256xf32>
      %53 = arith.mulf %49, %52 : vector<1x256xf32>
      %54 = arith.subf %37, %35 : vector<1x1xf32>
      %55 = arith.subf %38, %36 : vector<1x1xf32>
      %56 = arith.mulf %54, %55 : vector<1x1xf32>
      %57 = vector.broadcast %56 : vector<1x1xf32> to vector<1x256xf32>
      %58 = arith.addf %57, %8 : vector<1x256xf32>
      %59 = arith.subf %58, %53 : vector<1x256xf32>
      %cst_11 = arith.constant 9.99999993E-9 : f32
      %60 = vector.broadcast %cst_11 : f32 to vector<1x256xf32>
      %61 = arith.addf %59, %60 : vector<1x256xf32>
      %62 = arith.divf %53, %61 : vector<1x256xf32>
      %cst_12 = arith.constant 2.000000e-01 : f32
      %63 = vector.broadcast %cst_12 : f32 to vector<1x256xf32>
      %64 = arith.cmpf oge, %62, %63 : vector<1x256xf32>
      %65 = arith.ori %64, %28 : vector<1x256xi1>
      %66 = vector.broadcast %20 : vector<1x1xi1> to vector<1x256xi1>
      %67 = arith.andi %66, %65 : vector<1x256xi1>
      %cst_13 = arith.constant -1.000000e+00 : f32
      %68 = vector.broadcast %cst_13 : f32 to vector<1x256xf32>
      %69 = arith.select %67, %68, %arg4 : vector<1x256xi1>, vector<1x256xf32>
      %c6_i32 = arith.constant 6 : i32
      %70 = vector.broadcast %c6_i32 : i32 to vector<8x1xi32>
      %71 = arith.cmpi eq, %12, %70 : vector<8x1xi32>
      %cst_14 = arith.constant 1.000000e+00 : f32
      %72 = vector.broadcast %cst_14 : f32 to vector<8x1xf32>
      %73 = arith.select %71, %72, %34 : vector<8x1xi1>, vector<8x1xf32>
      %74 = vector.broadcast %arg3 : i32 to vector<8x128xi32>
      %75 = arith.cmpi eq, %11, %74 : vector<8x128xi32>
      %76 = vector.broadcast %20 : vector<1x1xi1> to vector<8x128xi1>
      %77 = arith.andi %75, %76 : vector<8x128xi1>
      %78 = vector.shape_cast %73 : vector<8x1xf32> to vector<8x1xf32>
      %79 = vector.broadcast %78 : vector<8x1xf32> to vector<8x128xf32>
      %80 = arith.select %77, %79, %arg5 : vector<8x128xi1>, vector<8x128xf32>
      scf.yield %69, %80 : vector<1x256xf32>, vector<8x128xf32>
    }
    %c32_i32_1 = arith.constant 32 : i32
    %c0_2 = arith.constant 0 : index
    %c0_3 = arith.constant 0 : index
    %16 = vector.load %arg2[%c0_2, %c0_3] : memref<8x128xf32, #tpu.memory_space<vmem>>, vector<8x128xf32>
    tpu.vector_store %arg2[%c0_2, %c0_3], %15#1 {strides = array<i32>} : memref<8x128xf32, #tpu.memory_space<vmem>>, vector<8x128xf32>,
    return
  }
  func.func @transform_0(%arg0: i32) -> (i32, i32) {
    %c0_i32 = arith.constant 0 : i32
    %c0_i32_0 = arith.constant 0 : i32
    %c0_i32_1 = arith.constant 0 : i32
    return %c0_i32, %c0_i32_0 : i32, i32
  }
  func.func @transform_1(%arg0: i32) -> (i32, i32) {
    %c0_i32 = arith.constant 0 : i32
    %c0_i32_0 = arith.constant 0 : i32
    %c0_i32_1 = arith.constant 0 : i32
    return %c0_i32, %c0_i32_0 : i32, i32
  }
}

</mosaic_0001>

<bundles_post_ra>
// kernel: forward.3
= control target key start
LH: loop header
LB: loop body
LE: loop exit
PB: predicated region body
PF: predicated region fallthrough
CT: control target
= control target key end

     0   :  { %s1755_s18 = smov 0   ;;  %s2096_s0 = inlined_call_operand.vmem [shape: f32[768,8], index: 0, kind: input, shape index: {}]   ;;  %s2097_s1 = inlined_call_operand.vmem [shape: f32[8,32], index: 1, kind: input, shape index: {}]   ;;  %s2098_s2 = inlined_call_operand.vmem [shape: f32[1,32], index: 2, kind: input, shape index: {}]   ;;  %s2099_s3 = inlined_call_operand.vmem [shape: f32[32,128], index: 3, kind: input, shape index: {}]   ;;  %s2100_s4 = inlined_call_operand.vmem [shape: f32[1,128], index: 4, kind: input, shape index: {}]   ;;  %s2101_s5 = inlined_call_operand.vmem [shape: f32[768,128], index: 5, kind: output, shape index: {}]  }
   0x1 LB: > { %s1347_s19 = sadd.s32 4294967295, %s1723_s18   ;;  %p1351_p0 = scmp.ge.s32.totalorder %s1723_s18, 1  ;;  %s1723_s18 = sphi %s1755_s18, %s15_s18  }
   0x2   : > { %p188_p1 = scmp.lt.s32.totalorder %s1723_s18, 3 }
   0x4   : > { %p189_p2 = pnand %p1351_p0, %p188_p1 }
   0x5   : > { %s216_s22 = smul.u32 (!%p189_p2), 48, %s1347_s19 }
   0x6   : > { %192 = sbr.rel (%p189_p2) target bundleno = 506 (0x1fa), region = 40 }
   0x7   : > { %p217_p3 = scmp.lt.s32.totalorder (!%p189_p2), %s216_s22, 95 }
   0xb   : > { %v276_v0 = vld [vmem:[%s2097_s1] sm:$0xff]  ;;  %s2103_s22 = smov (!%p217_p3, %s216_s22), 95  ;;  %vm284_vm0 = vcmask 64512   ;;  %v785_v36 = vld [vmem:[%s2099_s3 + $0x18] sm:$0xff]  ;;  %v784_v38 = vld [vmem:[%s2099_s3 + $0x10] sm:$0xff]  ;;  %vm793_vm1 = vcmask 261120  }
   0xc   : > { %1555 = vmatprep.subr.mxu0 %v276_v0  ;;  %s1352_s23 = sshll.u32 %s2103_s22, 3  ;;  %1629 = vmatprep.subr.mxu1 %v785_v36  ;;  %v783_v40 = vld [vmem:[%s2099_s3 + $0x8] sm:$0xff]  ;;  %v782_v42 = vld [vmem:[%s2099_s3] sm:$0xff] }
   0xd   : > { %1556 = vmatpush3.msra.mxu0 %v276_v0  ;;  %s1774_s26 = scalar_lea.vmem %s2096_s0, %s1352_s23  ;;  %1630 = vmatpush3.msra.mxu1 %v785_v36  ;;  %v1887_v53 = vld [vmem:[%s2098_s2] ss:$0 sm:$0xff]  ;;  %s1995_s16 = scalar_lea.vmem %s2101_s5, %s1352_s23 }
   0xe   : > { %v228_v1 = vld [vmem:[%s1774_s26] sm:$0xff]  ;;  %v229_v2 = vld [vmem:[%s1774_s26 + $0x8] sm:$0xff]  ;;  %v230_v3 = vld [vmem:[%s1774_s26 + $0x10] sm:$0xff]  ;;  %1631 = vmatprep.subr.mxu1 %v784_v38 }
   0xf   : > { %1557 = vmatprep.mubr.msk.f32.mxu0 %vm284_vm0, %v228_v1  ;;  %v231_v4 = vld [vmem:[%s1774_s26 + $0x18] sm:$0xff]  ;;  %v232_v5 = vld [vmem:[%s1774_s26 + $0x20] sm:$0xff]  ;;  %v233_v6 = vld [vmem:[%s1774_s26 + $0x28] sm:$0xff]  ;;  %1632 = vmatpush3.msra.mxu1 %v784_v38 }
  0x10   : > { %1558 = vmatmul.mubr.msk.f32.vlgmr.msra.gmra.mxu0 %vm284_vm0, %v229_v2  ;;  %v234_v7 = vld [vmem:[%s1774_s26 + $0x30] sm:$0xff]  ;;  %v235_v8 = vld [vmem:[%s1774_s26 + $0x38] sm:$0xff]  ;;  %v236_v9 = vld [vmem:[%s1774_s26 + $0x40] sm:$0xff]  ;;  %1633 = vmatprep.subr.mxu1 %v783_v40 }
  0x11   : > { %1560 = vmatprep.mubr.msk.f32.mxu0 %vm284_vm0, %v230_v3  ;;  %v237_v10 = vld [vmem:[%s1774_s26 + $0x48] sm:$0xff]  ;;  %v238_v11 = vld [vmem:[%s1774_s26 + $0x50] sm:$0xff]  ;;  %v239_v12 = vld [vmem:[%s1774_s26 + $0x58] sm:$0xff]  ;;  %1634 = vmatpush3.msra.mxu1 %v783_v40 }
  0x12   : > { %v240_v13 = vld [vmem:[%s1774_s26 + $0x60] sm:$0xff]  ;;  %v241_v14 = vld [vmem:[%s1774_s26 + $0x68] sm:$0xff]  ;;  %v242_v15 = vld [vmem:[%s1774_s26 + $0x70] sm:$0xff]  ;;  %1635 = vmatprep.subr.mxu1 %v782_v42 }
  0x13   : > { %v243_v16 = vld [vmem:[%s1774_s26 + $0x78] sm:$0xff]  ;;  %v244_v17 = vld [vmem:[%s1774_s26 + $0x80] sm:$0xff]  ;;  %v245_v18 = vld [vmem:[%s1774_s26 + $0x88] sm:$0xff]  ;;  %1636 = vmatpush3.msra.mxu1 %v782_v42 }
  0x14   : > { %1561 = vmatmul.mubr.msk.f32.gmra.mxu0 %vm284_vm0, %v231_v4  ;;  %v246_v19 = vld [vmem:[%s1774_s26 + $0x90] sm:$0xff]  ;;  %v247_v20 = vld [vmem:[%s1774_s26 + $0x98] sm:$0xff]  ;;  %v248_v21 = vld [vmem:[%s1774_s26 + $0xa0] sm:$0xff] }
  0x15   : > { %1563 = vmatprep.mubr.msk.f32.mxu0 %vm284_vm0, %v232_v5  ;;  %v249_v22 = vld [vmem:[%s1774_s26 + $0xa8] sm:$0xff]  ;;  %v250_v23 = vld [vmem:[%s1774_s26 + $0xb0] sm:$0xff]  ;;  %v251_v24 = vld [vmem:[%s1774_s26 + $0xb8] sm:$0xff] }
  0x16   : > { %v252_v25 = vld [vmem:[%s1774_s26 + $0xc0] sm:$0xff]  ;;  %v253_v26 = vld [vmem:[%s1774_s26 + $0xc8] sm:$0xff]  ;;  %v254_v27 = vld [vmem:[%s1774_s26 + $0xd0] sm:$0xff] }
  0x17   : > { %v255_v28 = vld [vmem:[%s1774_s26 + $0xd8] sm:$0xff]  ;;  %v256_v29 = vld [vmem:[%s1774_s26 + $0xe0] sm:$0xff]  ;;  %v257_v30 = vld [vmem:[%s1774_s26 + $0xe8] sm:$0xff] }
  0x18   : > { %1564 = vmatmul.mubr.msk.f32.gmra.mxu0 %vm284_vm0, %v233_v6  ;;  %v258_v31 = vld [vmem:[%s1774_s26 + $0xf0] sm:$0xff]  ;;  %v259_v32 = vld [vmem:[%s1774_s26 + $0xf8] sm:$0xff]  ;;  %v260_v33 = vld [vmem:[%s1774_s26 + $0x100] sm:$0xff] }
  0x19   : > { %1566 = vmatprep.mubr.msk.f32.mxu0 %vm284_vm0, %v234_v7  ;;  %v261_v34 = vld [vmem:[%s1774_s26 + $0x108] sm:$0xff]  ;;  %v262_v35 = vld [vmem:[%s1774_s26 + $0x110] sm:$0xff]  ;;  %v263_v37 = vld [vmem:[%s1774_s26 + $0x118] sm:$0xff] }
  0x1a   : > { %v264_v39 = vld [vmem:[%s1774_s26 + $0x120] sm:$0xff]  ;;  %v265_v41 = vld [vmem:[%s1774_s26 + $0x128] sm:$0xff]  ;;  %v266_v43 = vld [vmem:[%s1774_s26 + $0x130] sm:$0xff] }
  0x1b   : > { %v267_v44 = vld [vmem:[%s1774_s26 + $0x138] sm:$0xff]  ;;  %v268_v45 = vld [vmem:[%s1774_s26 + $0x140] sm:$0xff]  ;;  %v269_v46 = vld [vmem:[%s1774_s26 + $0x148] sm:$0xff] }
  0x1c   : > { %1567 = vmatmul.mubr.msk.f32.gmra.mxu0 %vm284_vm0, %v235_v8  ;;  %v270_v47 = vld [vmem:[%s1774_s26 + $0x150] sm:$0xff]  ;;  %v271_v48 = vld [vmem:[%s1774_s26 + $0x158] sm:$0xff]  ;;  %v272_v49 = vld [vmem:[%s1774_s26 + $0x160] sm:$0xff] }
  0x1d   : > { %1569 = vmatprep.mubr.msk.f32.mxu0 %vm284_vm0, %v236_v9  ;;  %v273_v50 = vld [vmem:[%s1774_s26 + $0x168] sm:$0xff]  ;;  %v274_v51 = vld [vmem:[%s1774_s26 + $0x170] sm:$0xff]  ;;  %v275_v52 = vld [vmem:[%s1774_s26 + $0x178] sm:$0xff] }
  0x20   : > { %1570 = vmatmul.mubr.msk.f32.gmra.mxu0 %vm284_vm0, %v237_v10 }
  0x21   : > { %1572 = vmatprep.mubr.msk.f32.mxu0 %vm284_vm0, %v238_v11 }
  0x24   : > { %1573 = vmatmul.mubr.msk.f32.gmra.mxu0 %vm284_vm0, %v239_v12 }
  0x25   : > { %1575 = vmatprep.mubr.msk.f32.mxu0 %vm284_vm0, %v240_v13 }
  0x28   : > { %1576 = vmatmul.mubr.msk.f32.gmra.mxu0 %vm284_vm0, %v241_v14 }
  0x29   : > { %1578 = vmatprep.mubr.msk.f32.mxu0 %vm284_vm0, %v242_v15 }
  0x2c   : > { %1579 = vmatmul.mubr.msk.f32.gmra.mxu0 %vm284_vm0, %v243_v16 }
  0x2d   : > { %1581 = vmatprep.mubr.msk.f32.mxu0 %vm284_vm0, %v244_v17 }
  0x30   : > { %1582 = vmatmul.mubr.msk.f32.gmra.mxu0 %vm284_vm0, %v245_v18 }
  0x31   : > { %1584 = vmatprep.mubr.msk.f32.mxu0 %vm284_vm0, %v246_v19 }
  0x34   : > { %1585 = vmatmul.mubr.msk.f32.gmra.mxu0 %vm284_vm0, %v247_v20 }
  0x35   : > { %1587 = vmatprep.mubr.msk.f32.mxu0 %vm284_vm0, %v248_v21 }
  0x38   : > { %1588 = vmatmul.mubr.msk.f32.gmra.mxu0 %vm284_vm0, %v249_v22 }
  0x39   : > { %1590 = vmatprep.mubr.msk.f32.mxu0 %vm284_vm0, %v250_v23 }
  0x3c   : > { %1591 = vmatmul.mubr.msk.f32.gmra.mxu0 %vm284_vm0, %v251_v24 }
  0x3d   : > { %1593 = vmatprep.mubr.msk.f32.mxu0 %vm284_vm0, %v252_v25 }
  0x40   : > { %1594 = vmatmul.mubr.msk.f32.gmra.mxu0 %vm284_vm0, %v253_v26 }
  0x41   : > { %1596 = vmatprep.mubr.msk.f32.mxu0 %vm284_vm0, %v254_v27 }
  0x44   : > { %1597 = vmatmul.mubr.msk.f32.gmra.mxu0 %vm284_vm0, %v255_v28 }
  0x45   : > { %1599 = vmatprep.mubr.msk.f32.mxu0 %vm284_vm0, %v256_v29 }
  0x48   : > { %1600 = vmatmul.mubr.msk.f32.gmra.mxu0 %vm284_vm0, %v257_v30 }
  0x49   : > { %1602 = vmatprep.mubr.msk.f32.mxu0 %vm284_vm0, %v258_v31 }
  0x4c   : > { %1603 = vmatmul.mubr.msk.f32.gmra.mxu0 %vm284_vm0, %v259_v32 }
  0x4d   : > { %1605 = vmatprep.mubr.msk.f32.mxu0 %vm284_vm0, %v260_v33 }
  0x50   : > { %1606 = vmatmul.mubr.msk.f32.gmra.mxu0 %vm284_vm0, %v261_v34 }
  0x51   : > { %1608 = vmatprep.mubr.msk.f32.mxu0 %vm284_vm0, %v262_v35 }
  0x54   : > { %1609 = vmatmul.mubr.msk.f32.gmra.mxu0 %vm284_vm0, %v263_v37 }
  0x55   : > { %1611 = vmatprep.mubr.msk.f32.mxu0 %vm284_vm0, %v264_v39 }
  0x58   : > { %1612 = vmatmul.mubr.msk.f32.gmra.mxu0 %vm284_vm0, %v265_v41 }
  0x59   : > { %1614 = vmatprep.mubr.msk.f32.mxu0 %vm284_vm0, %v266_v43 }
  0x5c   : > { %1615 = vmatmul.mubr.msk.f32.gmra.mxu0 %vm284_vm0, %v267_v44 }
  0x5d   : > { %1617 = vmatprep.mubr.msk.f32.mxu0 %vm284_vm0, %v268_v45 }
  0x60   : > { %1618 = vmatmul.mubr.msk.f32.gmra.mxu0 %vm284_vm0, %v269_v46 }
  0x61   : > { %1620 = vmatprep.mubr.msk.f32.mxu0 %vm284_vm0, %v270_v47 }
  0x64   : > { %1621 = vmatmul.mubr.msk.f32.gmra.mxu0 %vm284_vm0, %v271_v48 }
  0x65   : > { %1623 = vmatprep.mubr.msk.f32.mxu0 %vm284_vm0, %v272_v49 }
  0x68   : > { %1624 = vmatmul.mubr.msk.f32.gmra.mxu0 %vm284_vm0, %v273_v50 }
  0x69   : > { %1626 = vmatprep.mubr.msk.f32.mxu0 %vm284_vm0, %v274_v51 }
  0x6c   : > { %1627 = vmatmul.mubr.msk.f32.gmra.mxu0 %vm284_vm0, %v275_v52 }
  0xd0   : > { %v1559_v54 = vpop.f32.mrf.mxu0 }
  0xd1   : > { %v501_v55 = vadd.f32 %v1559_v54, %v1887_v53 }
  0xd2   : > { %v495_v56 = vpop.f32.mrf.mxu0 }
  0xd3   : > { %v496_v57 = vadd.f32 %v1887_v53, %v495_v56  ;;  %v735_v60 = vmax.f32 %v501_v55, 0.0 }
  0xd4   : > { %v1562_v58 = vpop.f32.mrf.mxu0 }
  0xd5   : > { %v734_v59 = vmax.f32 %v496_v57, 0.0  ;;  %v511_v61 = vadd.f32 %v1562_v58, %v1887_v53 }
  0xd6   : > { %v505_v62 = vpop.f32.mrf.mxu0 }
  0xd7   : > { %v506_v63 = vadd.f32 %v1887_v53, %v505_v62  ;;  %1637 = vmatprep.mubr.msk.f32.mxu1 %vm793_vm1, %v734_v59  ;;  %v737_v2 = vmax.f32 %v511_v61, 0.0 }
  0xd8   : > { %v1565_v0 = vpop.f32.mrf.mxu0  ;;  %1638 = vmatmul.mubr.msk.f32.vlgmr.msra.gmra.mxu1 %vm793_vm1, %v735_v60 }
  0xd9   : > { %v736_v1 = vmax.f32 %v506_v63, 0.0  ;;  %v521_v3 = vadd.f32 %v1565_v0, %v1887_v53 }
  0xda   : > { %v515_v4 = vpop.f32.mrf.mxu0 }
  0xdb   : > { %v516_v5 = vadd.f32 %v1887_v53, %v515_v4  ;;  %1640 = vmatprep.mubr.msk.f32.mxu1 %vm793_vm1, %v736_v1  ;;  %v739_v8 = vmax.f32 %v521_v3, 0.0 }
  0xdc   : > { %v1568_v6 = vpop.f32.mrf.mxu0  ;;  %1641 = vmatmul.mubr.msk.f32.gmra.mxu1 %vm793_vm1, %v737_v2 }
  0xdd   : > { %v738_v7 = vmax.f32 %v516_v5, 0.0  ;;  %v531_v9 = vadd.f32 %v1568_v6, %v1887_v53 }
  0xde   : > { %v525_v10 = vpop.f32.mrf.mxu0 }
  0xdf   : > { %v526_v11 = vadd.f32 %v1887_v53, %v525_v10  ;;  %1643 = vmatprep.mubr.msk.f32.mxu1 %vm793_vm1, %v738_v7  ;;  %v741_v14 = vmax.f32 %v531_v9, 0.0 }
  0xe0   : > { %v1571_v12 = vpop.f32.mrf.mxu0  ;;  %1644 = vmatmul.mubr.msk.f32.gmra.mxu1 %vm793_vm1, %v739_v8 }
  0xe1   : > { %v740_v13 = vmax.f32 %v526_v11, 0.0  ;;  %v541_v15 = vadd.f32 %v1571_v12, %v1887_v53 }
  0xe2   : > { %v535_v16 = vpop.f32.mrf.mxu0 }
  0xe3   : > { %v536_v17 = vadd.f32 %v1887_v53, %v535_v16  ;;  %1646 = vmatprep.mubr.msk.f32.mxu1 %vm793_vm1, %v740_v13  ;;  %v743_v20 = vmax.f32 %v541_v15, 0.0 }
  0xe4   : > { %v1574_v18 = vpop.f32.mrf.mxu0  ;;  %1647 = vmatmul.mubr.msk.f32.gmra.mxu1 %vm793_vm1, %v741_v14 }
  0xe5   : > { %v742_v19 = vmax.f32 %v536_v17, 0.0  ;;  %v551_v21 = vadd.f32 %v1574_v18, %v1887_v53 }
  0xe6   : > { %v545_v22 = vpop.f32.mrf.mxu0 }
  0xe7   : > { %v546_v23 = vadd.f32 %v1887_v53, %v545_v22  ;;  %1649 = vmatprep.mubr.msk.f32.mxu1 %vm793_vm1, %v742_v19  ;;  %v745_v26 = vmax.f32 %v551_v21, 0.0 }
  0xe8   : > { %v1577_v24 = vpop.f32.mrf.mxu0  ;;  %1650 = vmatmul.mubr.msk.f32.gmra.mxu1 %vm793_vm1, %v743_v20 }
  0xe9   : > { %v744_v25 = vmax.f32 %v546_v23, 0.0  ;;  %v561_v27 = vadd.f32 %v1577_v24, %v1887_v53 }
  0xea   : > { %v555_v28 = vpop.f32.mrf.mxu0 }
  0xeb   : > { %v556_v29 = vadd.f32 %v1887_v53, %v555_v28  ;;  %1652 = vmatprep.mubr.msk.f32.mxu1 %vm793_vm1, %v744_v25  ;;  %v747_v32 = vmax.f32 %v561_v27, 0.0 }
  0xec   : > { %v1580_v30 = vpop.f32.mrf.mxu0  ;;  %1653 = vmatmul.mubr.msk.f32.gmra.mxu1 %vm793_vm1, %v745_v26 }
  0xed   : > { %v746_v31 = vmax.f32 %v556_v29, 0.0  ;;  %v571_v33 = vadd.f32 %v1580_v30, %v1887_v53 }
  0xee   : > { %v565_v34 = vpop.f32.mrf.mxu0 }
  0xef   : > { %v566_v35 = vadd.f32 %v1887_v53, %v565_v34  ;;  %1655 = vmatprep.mubr.msk.f32.mxu1 %vm793_vm1, %v746_v31  ;;  %v749_v38 = vmax.f32 %v571_v33, 0.0 }
  0xf0   : > { %v1583_v36 = vpop.f32.mrf.mxu0  ;;  %1656 = vmatmul.mubr.msk.f32.gmra.mxu1 %vm793_vm1, %v747_v32 }
  0xf1   : > { %v748_v37 = vmax.f32 %v566_v35, 0.0  ;;  %v581_v39 = vadd.f32 %v1583_v36, %v1887_v53 }
  0xf2   : > { %v575_v40 = vpop.f32.mrf.mxu0 }
  0xf3   : > { %v576_v41 = vadd.f32 %v1887_v53, %v575_v40  ;;  %1658 = vmatprep.mubr.msk.f32.mxu1 %vm793_vm1, %v748_v37  ;;  %v751_v44 = vmax.f32 %v581_v39, 0.0 }
  0xf4   : > { %v1586_v42 = vpop.f32.mrf.mxu0  ;;  %1659 = vmatmul.mubr.msk.f32.gmra.mxu1 %vm793_vm1, %v749_v38 }
  0xf5   : > { %v750_v43 = vmax.f32 %v576_v41, 0.0  ;;  %v591_v45 = vadd.f32 %v1586_v42, %v1887_v53 }
  0xf6   : > { %v585_v46 = vpop.f32.mrf.mxu0 }
  0xf7   : > { %v586_v47 = vadd.f32 %v1887_v53, %v585_v46  ;;  %1661 = vmatprep.mubr.msk.f32.mxu1 %vm793_vm1, %v750_v43  ;;  %v753_v50 = vmax.f32 %v591_v45, 0.0 }
  0xf8   : > { %v1589_v48 = vpop.f32.mrf.mxu0  ;;  %1662 = vmatmul.mubr.msk.f32.gmra.mxu1 %vm793_vm1, %v751_v44 }
  0xf9   : > { %v752_v49 = vmax.f32 %v586_v47, 0.0  ;;  %v601_v51 = vadd.f32 %v1589_v48, %v1887_v53 }
  0xfa   : > { %v595_v52 = vpop.f32.mrf.mxu0 }
  0xfb   : > { %v596_v54 = vadd.f32 %v1887_v53, %v595_v52  ;;  %1664 = vmatprep.mubr.msk.f32.mxu1 %vm793_vm1, %v752_v49  ;;  %v755_v57 = vmax.f32 %v601_v51, 0.0 }
  0xfc   : > { %v1592_v55 = vpop.f32.mrf.mxu0  ;;  %1665 = vmatmul.mubr.msk.f32.gmra.mxu1 %vm793_vm1, %v753_v50 }
  0xfd   : > { %v754_v56 = vmax.f32 %v596_v54, 0.0  ;;  %v611_v58 = vadd.f32 %v1592_v55, %v1887_v53 }
  0xfe   : > { %v605_v59 = vpop.f32.mrf.mxu0 }
  0xff   : > { %v606_v60 = vadd.f32 %v1887_v53, %v605_v59  ;;  %1667 = vmatprep.mubr.msk.f32.mxu1 %vm793_vm1, %v754_v56  ;;  %v757_v63 = vmax.f32 %v611_v58, 0.0 }
 0x100   : > { %v1595_v61 = vpop.f32.mrf.mxu0  ;;  %1668 = vmatmul.mubr.msk.f32.gmra.mxu1 %vm793_vm1, %v755_v57 }
 0x101   : > { %v756_v62 = vmax.f32 %v606_v60, 0.0  ;;  %v621_v0 = vadd.f32 %v1595_v61, %v1887_v53 }
 0x102   : > { %v615_v1 = vpop.f32.mrf.mxu0 }
 0x103   : > { %v616_v2 = vadd.f32 %v1887_v53, %v615_v1  ;;  %1670 = vmatprep.mubr.msk.f32.mxu1 %vm793_vm1, %v756_v62  ;;  %v759_v5 = vmax.f32 %v621_v0, 0.0 }
 0x104   : > { %v1598_v3 = vpop.f32.mrf.mxu0  ;;  %1671 = vmatmul.mubr.msk.f32.gmra.mxu1 %vm793_vm1, %v757_v63 }
 0x105   : > { %v758_v4 = vmax.f32 %v616_v2, 0.0  ;;  %v631_v6 = vadd.f32 %v1598_v3, %v1887_v53 }
 0x106   : > { %v625_v7 = vpop.f32.mrf.mxu0 }
 0x107   : > { %v626_v8 = vadd.f32 %v1887_v53, %v625_v7  ;;  %1673 = vmatprep.mubr.msk.f32.mxu1 %vm793_vm1, %v758_v4  ;;  %v761_v11 = vmax.f32 %v631_v6, 0.0 }
 0x108   : > { %v1601_v9 = vpop.f32.mrf.mxu0  ;;  %1674 = vmatmul.mubr.msk.f32.gmra.mxu1 %vm793_vm1, %v759_v5 }
 0x109   : > { %v760_v10 = vmax.f32 %v626_v8, 0.0  ;;  %v641_v12 = vadd.f32 %v1601_v9, %v1887_v53  ;;  %v1988_v8 = vld [vmem:[%s2100_s4] ss:$0 sm:$0xff] }
 0x10a   : > { %v635_v13 = vpop.f32.mrf.mxu0 }
 0x10b   : > { %v636_v14 = vadd.f32 %v1887_v53, %v635_v13  ;;  %1676 = vmatprep.mubr.msk.f32.mxu1 %vm793_vm1, %v760_v10  ;;  %v763_v17 = vmax.f32 %v641_v12, 0.0 }
 0x10c   : > { %v1604_v15 = vpop.f32.mrf.mxu0  ;;  %1677 = vmatmul.mubr.msk.f32.gmra.mxu1 %vm793_vm1, %v761_v11 }
 0x10d   : > { %v762_v16 = vmax.f32 %v636_v14, 0.0  ;;  %v651_v18 = vadd.f32 %v1604_v15, %v1887_v53 }
 0x10e   : > { %v645_v19 = vpop.f32.mrf.mxu0 }
 0x10f   : > { %v646_v20 = vadd.f32 %v1887_v53, %v645_v19  ;;  %1679 = vmatprep.mubr.msk.f32.mxu1 %vm793_vm1, %v762_v16  ;;  %v765_v23 = vmax.f32 %v651_v18, 0.0 }
 0x110   : > { %v1607_v21 = vpop.f32.mrf.mxu0  ;;  %1680 = vmatmul.mubr.msk.f32.gmra.mxu1 %vm793_vm1, %v763_v17 }
 0x111   : > { %v764_v22 = vmax.f32 %v646_v20, 0.0  ;;  %v661_v24 = vadd.f32 %v1607_v21, %v1887_v53 }
 0x112   : > { %v655_v25 = vpop.f32.mrf.mxu0 }
 0x113   : > { %v656_v26 = vadd.f32 %v1887_v53, %v655_v25  ;;  %1682 = vmatprep.mubr.msk.f32.mxu1 %vm793_vm1, %v764_v22  ;;  %v767_v29 = vmax.f32 %v661_v24, 0.0 }
 0x114   : > { %v1610_v27 = vpop.f32.mrf.mxu0  ;;  %1683 = vmatmul.mubr.msk.f32.gmra.mxu1 %vm793_vm1, %v765_v23 }
 0x115   : > { %v766_v28 = vmax.f32 %v656_v26, 0.0  ;;  %v671_v30 = vadd.f32 %v1610_v27, %v1887_v53 }
 0x116   : > { %v665_v31 = vpop.f32.mrf.mxu0 }
 0x117   : > { %v666_v32 = vadd.f32 %v1887_v53, %v665_v31  ;;  %1685 = vmatprep.mubr.msk.f32.mxu1 %vm793_vm1, %v766_v28  ;;  %v769_v35 = vmax.f32 %v671_v30, 0.0 }
 0x118   : > { %v1613_v33 = vpop.f32.mrf.mxu0  ;;  %1686 = vmatmul.mubr.msk.f32.gmra.mxu1 %vm793_vm1, %v767_v29 }
 0x119   : > { %v768_v34 = vmax.f32 %v666_v32, 0.0  ;;  %v681_v36 = vadd.f32 %v1613_v33, %v1887_v53 }
 0x11a   : > { %v675_v37 = vpop.f32.mrf.mxu0 }
 0x11b   : > { %v676_v38 = vadd.f32 %v1887_v53, %v675_v37  ;;  %1688 = vmatprep.mubr.msk.f32.mxu1 %vm793_vm1, %v768_v34  ;;  %v771_v41 = vmax.f32 %v681_v36, 0.0 }
 0x11c   : > { %v1616_v39 = vpop.f32.mrf.mxu0  ;;  %1689 = vmatmul.mubr.msk.f32.gmra.mxu1 %vm793_vm1, %v769_v35 }
 0x11d   : > { %v770_v40 = vmax.f32 %v676_v38, 0.0  ;;  %v691_v42 = vadd.f32 %v1616_v39, %v1887_v53 }
 0x11e   : > { %v685_v43 = vpop.f32.mrf.mxu0 }
 0x11f   : > { %v686_v44 = vadd.f32 %v1887_v53, %v685_v43  ;;  %1691 = vmatprep.mubr.msk.f32.mxu1 %vm793_vm1, %v770_v40  ;;  %v773_v47 = vmax.f32 %v691_v42, 0.0 }
 0x120   : > { %v1619_v45 = vpop.f32.mrf.mxu0  ;;  %1692 = vmatmul.mubr.msk.f32.gmra.mxu1 %vm793_vm1, %v771_v41 }
 0x121   : > { %v772_v46 = vmax.f32 %v686_v44, 0.0  ;;  %v701_v48 = vadd.f32 %v1619_v45, %v1887_v53 }
 0x122   : > { %v695_v49 = vpop.f32.mrf.mxu0 }
 0x123   : > { %v696_v50 = vadd.f32 %v1887_v53, %v695_v49  ;;  %1694 = vmatprep.mubr.msk.f32.mxu1 %vm793_vm1, %v772_v46  ;;  %v775_v54 = vmax.f32 %v701_v48, 0.0 }
 0x124   : > { %v1622_v51 = vpop.f32.mrf.mxu0  ;;  %1695 = vmatmul.mubr.msk.f32.gmra.mxu1 %vm793_vm1, %v773_v47 }
 0x125   : > { %v774_v52 = vmax.f32 %v696_v50, 0.0  ;;  %v711_v55 = vadd.f32 %v1622_v51, %v1887_v53 }
 0x126   : > { %v705_v56 = vpop.f32.mrf.mxu0 }
 0x127   : > { %v706_v57 = vadd.f32 %v1887_v53, %v705_v56  ;;  %1697 = vmatprep.mubr.msk.f32.mxu1 %vm793_vm1, %v774_v52  ;;  %v777_v60 = vmax.f32 %v711_v55, 0.0 }
 0x128   : > { %v1625_v58 = vpop.f32.mrf.mxu0  ;;  %1698 = vmatmul.mubr.msk.f32.gmra.mxu1 %vm793_vm1, %v775_v54 }
 0x129   : > { %v776_v59 = vmax.f32 %v706_v57, 0.0  ;;  %v721_v61 = vadd.f32 %v1625_v58, %v1887_v53 }
 0x12a   : > { %v715_v62 = vpop.f32.mrf.mxu0 }
 0x12b   : > { %v716_v63 = vadd.f32 %v1887_v53, %v715_v62  ;;  %1700 = vmatprep.mubr.msk.f32.mxu1 %vm793_vm1, %v776_v59  ;;  %v779_v2 = vmax.f32 %v721_v61, 0.0 }
 0x12c   : > { %v1628_v0 = vpop.f32.mrf.mxu0  ;;  %1701 = vmatmul.mubr.msk.f32.gmra.mxu1 %vm793_vm1, %v777_v60 }
 0x12d   : > { %v778_v1 = vmax.f32 %v716_v63, 0.0  ;;  %v731_v3 = vadd.f32 %v1628_v0, %v1887_v53 }
 0x12e   : > { %v725_v4 = vpop.f32.mrf.mxu0 }
 0x12f   : > { %v726_v5 = vadd.f32 %v1887_v53, %v725_v4  ;;  %1703 = vmatprep.mubr.msk.f32.mxu1 %vm793_vm1, %v778_v1  ;;  %v781_v7 = vmax.f32 %v731_v3, 0.0 }
 0x130   : > { %1704 = vmatmul.mubr.msk.f32.gmra.mxu1 %vm793_vm1, %v779_v2 }
 0x131   : > { %v780_v6 = vmax.f32 %v726_v5, 0.0 }
 0x133   : > { %1706 = vmatprep.mubr.msk.f32.mxu1 %vm793_vm1, %v780_v6 }
 0x134   : > { %1707 = vmatmul.mubr.msk.f32.gmra.mxu1 %vm793_vm1, %v781_v7 }
 0x198   : > { %v1639_v53 = vpop.f32.mrf.mxu1 }
 0x199   : > { %v1010_v9 = vadd.f32 %v1639_v53, %v1988_v8 }
 0x19a   : > { %v1004_v10 = vpop.f32.mrf.mxu1 }
 0x19b   : > { %1244 = vst [vmem:[%s1995_s16 + $0x8] sm:$0xff] %v1010_v9  ;;  %v1005_v11 = vadd.f32 %v1988_v8, %v1004_v10 }
 0x19c   : > { %v1642_v12 = vpop.f32.mrf.mxu1 }
 0x19d   : > { %1243 = vst [vmem:[%s1995_s16] sm:$0xff] %v1005_v11  ;;  %v1020_v13 = vadd.f32 %v1642_v12, %v1988_v8 }
 0x19e   : > { %v1014_v14 = vpop.f32.mrf.mxu1 }
 0x19f   : > { %1246 = vst [vmem:[%s1995_s16 + $0x18] sm:$0xff] %v1020_v13  ;;  %v1015_v15 = vadd.f32 %v1988_v8, %v1014_v14 }
 0x1a0   : > { %v1645_v16 = vpop.f32.mrf.mxu1 }
 0x1a1   : > { %1245 = vst [vmem:[%s1995_s16 + $0x10] sm:$0xff] %v1015_v15  ;;  %v1030_v17 = vadd.f32 %v1645_v16, %v1988_v8 }
 0x1a2   : > { %v1024_v18 = vpop.f32.mrf.mxu1 }
 0x1a3   : > { %1248 = vst [vmem:[%s1995_s16 + $0x28] sm:$0xff] %v1030_v17  ;;  %v1025_v19 = vadd.f32 %v1988_v8, %v1024_v18 }
 0x1a4   : > { %v1648_v20 = vpop.f32.mrf.mxu1 }
 0x1a5   : > { %1247 = vst [vmem:[%s1995_s16 + $0x20] sm:$0xff] %v1025_v19  ;;  %v1040_v21 = vadd.f32 %v1648_v20, %v1988_v8 }
 0x1a6   : > { %v1034_v22 = vpop.f32.mrf.mxu1 }
 0x1a7   : > { %1250 = vst [vmem:[%s1995_s16 + $0x38] sm:$0xff] %v1040_v21  ;;  %v1035_v23 = vadd.f32 %v1988_v8, %v1034_v22 }
 0x1a8   : > { %v1651_v24 = vpop.f32.mrf.mxu1 }
 0x1a9   : > { %1249 = vst [vmem:[%s1995_s16 + $0x30] sm:$0xff] %v1035_v23  ;;  %v1050_v25 = vadd.f32 %v1651_v24, %v1988_v8 }
 0x1aa   : > { %v1044_v26 = vpop.f32.mrf.mxu1 }
 0x1ab   : > { %1252 = vst [vmem:[%s1995_s16 + $0x48] sm:$0xff] %v1050_v25  ;;  %v1045_v27 = vadd.f32 %v1988_v8, %v1044_v26 }
 0x1ac   : > { %v1654_v28 = vpop.f32.mrf.mxu1 }
 0x1ad   : > { %1251 = vst [vmem:[%s1995_s16 + $0x40] sm:$0xff] %v1045_v27  ;;  %v1060_v29 = vadd.f32 %v1654_v28, %v1988_v8 }
 0x1ae   : > { %v1054_v30 = vpop.f32.mrf.mxu1 }
 0x1af   : > { %1254 = vst [vmem:[%s1995_s16 + $0x58] sm:$0xff] %v1060_v29  ;;  %v1055_v31 = vadd.f32 %v1988_v8, %v1054_v30 }
 0x1b0   : > { %v1657_v32 = vpop.f32.mrf.mxu1 }
 0x1b1   : > { %1253 = vst [vmem:[%s1995_s16 + $0x50] sm:$0xff] %v1055_v31  ;;  %v1070_v33 = vadd.f32 %v1657_v32, %v1988_v8 }
 0x1b2   : > { %v1064_v34 = vpop.f32.mrf.mxu1 }
 0x1b3   : > { %1256 = vst [vmem:[%s1995_s16 + $0x68] sm:$0xff] %v1070_v33  ;;  %v1065_v35 = vadd.f32 %v1988_v8, %v1064_v34 }
 0x1b4   : > { %v1660_v36 = vpop.f32.mrf.mxu1 }
 0x1b5   : > { %1255 = vst [vmem:[%s1995_s16 + $0x60] sm:$0xff] %v1065_v35  ;;  %v1080_v37 = vadd.f32 %v1660_v36, %v1988_v8 }
 0x1b6   : > { %v1074_v38 = vpop.f32.mrf.mxu1 }
 0x1b7   : > { %1258 = vst [vmem:[%s1995_s16 + $0x78] sm:$0xff] %v1080_v37  ;;  %v1075_v39 = vadd.f32 %v1988_v8, %v1074_v38 }
 0x1b8   : > { %v1663_v40 = vpop.f32.mrf.mxu1 }
 0x1b9   : > { %1257 = vst [vmem:[%s1995_s16 + $0x70] sm:$0xff] %v1075_v39  ;;  %v1090_v41 = vadd.f32 %v1663_v40, %v1988_v8 }
 0x1ba   : > { %v1084_v42 = vpop.f32.mrf.mxu1 }
 0x1bb   : > { %1260 = vst [vmem:[%s1995_s16 + $0x88] sm:$0xff] %v1090_v41  ;;  %v1085_v43 = vadd.f32 %v1988_v8, %v1084_v42 }
 0x1bc   : > { %v1666_v44 = vpop.f32.mrf.mxu1 }
 0x1bd   : > { %1259 = vst [vmem:[%s1995_s16 + $0x80] sm:$0xff] %v1085_v43  ;;  %v1100_v45 = vadd.f32 %v1666_v44, %v1988_v8 }
 0x1be   : > { %v1094_v46 = vpop.f32.mrf.mxu1 }
 0x1bf   : > { %1262 = vst [vmem:[%s1995_s16 + $0x98] sm:$0xff] %v1100_v45  ;;  %v1095_v47 = vadd.f32 %v1988_v8, %v1094_v46 }
 0x1c0   : > { %v1669_v48 = vpop.f32.mrf.mxu1 }
 0x1c1   : > { %1261 = vst [vmem:[%s1995_s16 + $0x90] sm:$0xff] %v1095_v47  ;;  %v1110_v49 = vadd.f32 %v1669_v48, %v1988_v8 }
 0x1c2   : > { %v1104_v50 = vpop.f32.mrf.mxu1 }
 0x1c3   : > { %1264 = vst [vmem:[%s1995_s16 + $0xa8] sm:$0xff] %v1110_v49  ;;  %v1105_v51 = vadd.f32 %v1988_v8, %v1104_v50 }
 0x1c4   : > { %v1672_v52 = vpop.f32.mrf.mxu1 }
 0x1c5   : > { %1263 = vst [vmem:[%s1995_s16 + $0xa0] sm:$0xff] %v1105_v51  ;;  %v1120_v54 = vadd.f32 %v1672_v52, %v1988_v8 }
 0x1c6   : > { %v1114_v55 = vpop.f32.mrf.mxu1 }
 0x1c7   : > { %1266 = vst [vmem:[%s1995_s16 + $0xb8] sm:$0xff] %v1120_v54  ;;  %v1115_v56 = vadd.f32 %v1988_v8, %v1114_v55 }
 0x1c8   : > { %v1675_v57 = vpop.f32.mrf.mxu1 }
 0x1c9   : > { %1265 = vst [vmem:[%s1995_s16 + $0xb0] sm:$0xff] %v1115_v56  ;;  %v1130_v58 = vadd.f32 %v1675_v57, %v1988_v8 }
 0x1ca   : > { %v1124_v59 = vpop.f32.mrf.mxu1 }
 0x1cb   : > { %1268 = vst [vmem:[%s1995_s16 + $0xc8] sm:$0xff] %v1130_v58  ;;  %v1125_v60 = vadd.f32 %v1988_v8, %v1124_v59 }
 0x1cc   : > { %v1678_v61 = vpop.f32.mrf.mxu1 }
 0x1cd   : > { %1267 = vst [vmem:[%s1995_s16 + $0xc0] sm:$0xff] %v1125_v60  ;;  %v1140_v62 = vadd.f32 %v1678_v61, %v1988_v8 }
 0x1ce   : > { %v1134_v63 = vpop.f32.mrf.mxu1 }
 0x1cf   : > { %1270 = vst [vmem:[%s1995_s16 + $0xd8] sm:$0xff] %v1140_v62  ;;  %v1135_v0 = vadd.f32 %v1988_v8, %v1134_v63 }
 0x1d0   : > { %v1681_v1 = vpop.f32.mrf.mxu1 }
 0x1d1   : > { %1269 = vst [vmem:[%s1995_s16 + $0xd0] sm:$0xff] %v1135_v0  ;;  %v1150_v2 = vadd.f32 %v1681_v1, %v1988_v8 }
 0x1d2   : > { %v1144_v3 = vpop.f32.mrf.mxu1 }
 0x1d3   : > { %1272 = vst [vmem:[%s1995_s16 + $0xe8] sm:$0xff] %v1150_v2  ;;  %v1145_v4 = vadd.f32 %v1988_v8, %v1144_v3 }
 0x1d4   : > { %v1684_v5 = vpop.f32.mrf.mxu1 }
 0x1d5   : > { %1271 = vst [vmem:[%s1995_s16 + $0xe0] sm:$0xff] %v1145_v4  ;;  %v1160_v6 = vadd.f32 %v1684_v5, %v1988_v8 }
 0x1d6   : > { %v1154_v7 = vpop.f32.mrf.mxu1 }
 0x1d7   : > { %1274 = vst [vmem:[%s1995_s16 + $0xf8] sm:$0xff] %v1160_v6  ;;  %v1155_v53 = vadd.f32 %v1988_v8, %v1154_v7 }
 0x1d8   : > { %v1687_v9 = vpop.f32.mrf.mxu1 }
 0x1d9   : > { %1273 = vst [vmem:[%s1995_s16 + $0xf0] sm:$0xff] %v1155_v53  ;;  %v1170_v10 = vadd.f32 %v1687_v9, %v1988_v8 }
 0x1da   : > { %v1164_v11 = vpop.f32.mrf.mxu1 }
 0x1db   : > { %1276 = vst [vmem:[%s1995_s16 + $0x108] sm:$0xff] %v1170_v10  ;;  %v1165_v12 = vadd.f32 %v1988_v8, %v1164_v11 }
 0x1dc   : > { %v1690_v13 = vpop.f32.mrf.mxu1 }
 0x1dd   : > { %1275 = vst [vmem:[%s1995_s16 + $0x100] sm:$0xff] %v1165_v12  ;;  %v1180_v14 = vadd.f32 %v1690_v13, %v1988_v8 }
 0x1de   : > { %v1174_v15 = vpop.f32.mrf.mxu1 }
 0x1df   : > { %1278 = vst [vmem:[%s1995_s16 + $0x118] sm:$0xff] %v1180_v14  ;;  %v1175_v16 = vadd.f32 %v1988_v8, %v1174_v15 }
 0x1e0   : > { %v1693_v17 = vpop.f32.mrf.mxu1 }
 0x1e1   : > { %1277 = vst [vmem:[%s1995_s16 + $0x110] sm:$0xff] %v1175_v16  ;;  %v1190_v18 = vadd.f32 %v1693_v17, %v1988_v8 }
 0x1e2   : > { %v1184_v19 = vpop.f32.mrf.mxu1 }
 0x1e3   : > { %1280 = vst [vmem:[%s1995_s16 + $0x128] sm:$0xff] %v1190_v18  ;;  %v1185_v20 = vadd.f32 %v1988_v8, %v1184_v19 }
 0x1e4   : > { %v1696_v21 = vpop.f32.mrf.mxu1 }
 0x1e5   : > { %1279 = vst [vmem:[%s1995_s16 + $0x120] sm:$0xff] %v1185_v20  ;;  %v1200_v22 = vadd.f32 %v1696_v21, %v1988_v8 }
 0x1e6   : > { %v1194_v23 = vpop.f32.mrf.mxu1 }
 0x1e7   : > { %1282 = vst [vmem:[%s1995_s16 + $0x138] sm:$0xff] %v1200_v22  ;;  %v1195_v24 = vadd.f32 %v1988_v8, %v1194_v23 }
 0x1e8   : > { %v1699_v25 = vpop.f32.mrf.mxu1 }
 0x1e9   : > { %1281 = vst [vmem:[%s1995_s16 + $0x130] sm:$0xff] %v1195_v24  ;;  %v1210_v26 = vadd.f32 %v1699_v25, %v1988_v8 }
 0x1ea   : > { %v1204_v27 = vpop.f32.mrf.mxu1 }
 0x1eb   : > { %1284 = vst [vmem:[%s1995_s16 + $0x148] sm:$0xff] %v1210_v26  ;;  %v1205_v28 = vadd.f32 %v1988_v8, %v1204_v27 }
 0x1ec   : > { %v1702_v29 = vpop.f32.mrf.mxu1 }
 0x1ed   : > { %1283 = vst [vmem:[%s1995_s16 + $0x140] sm:$0xff] %v1205_v28  ;;  %v1220_v30 = vadd.f32 %v1702_v29, %v1988_v8 }
 0x1ee   : > { %v1214_v31 = vpop.f32.mrf.mxu1 }
 0x1ef   : > { %1286 = vst [vmem:[%s1995_s16 + $0x158] sm:$0xff] %v1220_v30  ;;  %v1215_v32 = vadd.f32 %v1988_v8, %v1214_v31 }
 0x1f0   : > { %v1705_v33 = vpop.f32.mrf.mxu1 }
 0x1f1   : > { %1285 = vst [vmem:[%s1995_s16 + $0x150] sm:$0xff] %v1215_v32  ;;  %v1230_v34 = vadd.f32 %v1705_v33, %v1988_v8 }
 0x1f2   : > { %v1224_v35 = vpop.f32.mrf.mxu1 }
 0x1f3   : > { %1288 = vst [vmem:[%s1995_s16 + $0x168] sm:$0xff] %v1230_v34  ;;  %v1225_v36 = vadd.f32 %v1988_v8, %v1224_v35 }
 0x1f4   : > { %v1708_v37 = vpop.f32.mrf.mxu1 }
 0x1f5   : > { %1287 = vst [vmem:[%s1995_s16 + $0x160] sm:$0xff] %v1225_v36  ;;  %v1240_v38 = vadd.f32 %v1708_v37, %v1988_v8 }
 0x1f6   : > { %v1234_v39 = vpop.f32.mrf.mxu1 }
 0x1f7   : > { %1290 = vst [vmem:[%s1995_s16 + $0x178] sm:$0xff] %v1240_v38  ;;  %v1235_v40 = vadd.f32 %v1988_v8, %v1234_v39 }
 0x1f9   : > { %1289 = vst [vmem:[%s1995_s16 + $0x170] sm:$0xff] %v1235_v40 }
 0x1fa PF: > { %s15_s18 = sadd.s32 1, %s1723_s18  }
 0x1fb   : > { %p12_p4 = scmp.ge.s32.totalorder %s15_s18, 4  }
 0x1fd   :  { %14 = sbr.rel (!%p12_p4) target bundleno = 1 (0x1), region = 70 }

// kernel: forward.4
= control target key start
LH: loop header
LB: loop body
LE: loop exit
PB: predicated region body
PF: predicated region fallthrough
CT: control target
= control target key end

     0   :  { %s1867_s9 = smov 0   ;;  %s2479_s0 = inlined_call_operand.vmem [shape: f32[2,8,3072], index: 0, kind: input, shape index: {}]   ;;  %s2480_s1 = inlined_call_operand.vmem [shape: f32[2,8,3072], index: 1, kind: input, shape index: {}]   ;;  %s2481_s2 = inlined_call_operand.vmem [shape: f32[2,8,3072], index: 2, kind: output, shape index: {}]  }
   0x1 LB: > { %s1681_s10 = sadd.s32 4294967295, %s1850_s9   ;;  %p1685_p0 = scmp.ge.s32.totalorder %s1850_s9, 1  ;;  %s1850_s9 = sphi %s1867_s9, %s12_s9  }
   0x2   : > { %p122_p1 = scmp.lt.s32.totalorder %s1850_s9, 3 }
   0x4   : > { %p123_p2 = pnand %p1685_p0, %p122_p1 }
   0x5   : > { %p149_p3 = scmp.lt.s32.totalorder (!%p123_p2), %s1681_s10, 1 }
   0x6   : > { %126 = sbr.rel (%p123_p2) target bundleno = 303 (0x12f), region = 28 }
   0xb   : > { %s2483_s10 = smov (!%p149_p3, %s1681_s10), 1  ;;  %v980_v5 = vlaneseq  ;;  %vm1415_vm3 = vcmask 1040384   ;;  %vm1440_vm4 = vcmask 1041408   ;;  %vm1465_vm5 = vcmask 1042432  }
   0xc   : > { %s1875_s11 = smul.u32 192, %s2483_s10  ;;  %vm1490_vm7 = vcmask 1043456   ;;  %vm1515_vm8 = vcmask 1044480   ;;  %vm1540_vm9 = vcmask 1045504   ;;  %vm1565_vm10 = vcmask 1046528  }
   0xd   : > { %v981_v17 = vshrl.u32 %v980_v5, 7 }
   0xe   : > { %s1881_s14 = scalar_lea.vmem %s2479_s0, %s1875_s11  ;;  %s1887_s17 = scalar_lea.vmem %s2480_s1, %s1875_s11 }
   0xf   : > { %v1890_v0 = vld [vmem:[%s1881_s14] sm:$0xff]  ;;  %v1894_v2 = vld [vmem:[%s1881_s14 + $0x8] sm:$0xff]  ;;  %v1900_v9 = vld [vmem:[%s1881_s14 + $0x10] sm:$0xff]  ;;  %v1918_v28 = vcvt.s32.f32 %v981_v17  ;;  %s1987_s20 = scalar_lea.vmem %s2481_s2, %s1875_s11 }
  0x10   : > { %v620_v1 = vld [vmem:[%s1887_s17] sm:$0xff]  ;;  %v188_v3 = vmul.f32 1.442695, %v1890_v0  ;;  %v621_v6 = vld [vmem:[%s1887_s17 + $0x8] sm:$0xff]  ;;  %v190_v7 = vmul.f32 1.442695, %v1894_v2 }
  0x11   : > { %v644_v4 = vrot.slane %v620_v1, 4  ;;  %v650_v8 = vrot.slane %v621_v6, 4  ;;  %v192_v11 = vmul.f32 1.442695, %v1900_v9  ;;  %v1904_v12 = vld [vmem:[%s1887_s17 + $0x10] sm:$0xff]  ;;  %v1907_v13 = vld [vmem:[%s1881_s14 + $0x18] sm:$0xff] }
  0x12   : > { %1700 = vpow2.f32 %v188_v3  ;;  %v332_v14 = vrot.slane %v1890_v0, 6  ;;  %v333_v18 = vrot.slane %v1894_v2, 6  ;;  %v656_v20 = vrot.slane %v1904_v12, 4  ;;  %v1914_v22 = vld [vmem:[%s1887_s17 + $0x18] sm:$0xff]  ;;  %v1928_v44 = vld [vmem:[%s1881_s14 + $0x20] sm:$0xff] }
  0x13   : > { %v645_v10 = vmax.f32 %v620_v1, %v644_v4  ;;  %1702 = vpow2.f32 %v190_v7  ;;  %v651_v15 = vmax.f32 %v621_v6, %v650_v8  ;;  %v194_v21 = vmul.f32 1.442695, %v1907_v13 }
  0x14   : > { %1704 = vpow2.f32 %v192_v11  ;;  %v380_v24 = vmul.f32 %v332_v14, %v1890_v0  ;;  %v657_v26 = vmax.f32 %v1904_v12, %v656_v20  ;;  %v381_v29 = vmul.f32 %v333_v18, %v1894_v2 }
  0x15   : > { %v646_v16 = vrot.slane %v645_v10, 2  ;;  %v652_v19 = vrot.slane %v651_v15, 2  ;;  %v662_v30 = vrot.slane %v1914_v22, 4  ;;  %v260_v31 = vrot.slane %v1890_v0, 4 }
  0x16   : > { %v658_v33 = vrot.slane %v657_v26, 2  ;;  %1706 = vpow2.f32 %v194_v21  ;;  %v261_v35 = vrot.slane %v1894_v2, 4  ;;  %v334_v36 = vrot.slane %v1900_v9, 6 }
  0x17   : > { %v647_v23 = vmax.f32 %v645_v10, %v646_v16  ;;  %v653_v25 = vmax.f32 %v651_v15, %v652_v19  ;;  %v404_v37 = vadd.f32 %v380_v24, %v260_v31  ;;  %v262_v39 = vrot.slane %v1900_v9, 4 }
  0x18   : > { %v659_v40 = vmax.f32 %v657_v26, %v658_v33  ;;  %v405_v42 = vadd.f32 %v381_v29, %v261_v35  ;;  %v663_v43 = vmax.f32 %v1914_v22, %v662_v30  ;;  %v382_v51 = vmul.f32 %v334_v36, %v1900_v9 }
  0x19   : > { %v648_v27 = vrot.slane %v647_v23, 1  ;;  %v654_v32 = vrot.slane %v653_v25, 1  ;;  %v196_v56 = vmul.f32 1.442695, %v1928_v44  ;;  %v263_v59 = vrot.slane %v1907_v13, 4 }
  0x1a   : > { %v660_v47 = vrot.slane %v659_v40, 1  ;;  %v664_v60 = vrot.slane %v663_v43, 2  ;;  %v336_v10 = vrot.slane %v1928_v44, 6 }
  0x1b   : > { %v649_v34 = vmax.f32 %v647_v23, %v648_v27  ;;  %v655_v38 = vmax.f32 %v653_v25, %v654_v32  ;;  %v1942_v25 = vld [vmem:[%s1887_s17 + $0x20] sm:$0xff] }
  0x1c   : > { %v661_v55 = vmax.f32 %v659_v40, %v660_v47  ;;  %v665_v15 = vmax.f32 %v663_v43, %v664_v60  ;;  %v384_v24 = vmul.f32 %v336_v10, %v1928_v44 }
  0x1d   : > { %v788_v41 = vsub.f32 0.0, %v649_v34  ;;  %vm983_vm0 = vcmp.eq.f32.partialorder %v620_v1, %v649_v34  ;;  %v789_v46 = vsub.f32 0.0, %v655_v38  ;;  %vm984_vm1 = vcmp.eq.f32.partialorder %v621_v6, %v655_v38 }
  0x1e   : > { %v1007_v45 = vsel %vm983_vm0, %v1918_v28, 8.0  ;;  %v1008_v50 = vsel %vm984_vm1, %v1918_v28, 8.0  ;;  %v790_v0 = vsub.f32 0.0, %v661_v55  ;;  %vm985_vm2 = vcmp.eq.f32.partialorder %v1904_v12, %v661_v55 }
  0x1f   : > { %v812_v48 = vmul.f32 1.442695, %v788_v41  ;;  %v1031_v49 = vrot.slane %v1007_v45, 4  ;;  %v1701_v52 = vpop.eup %1700  ;;  %v814_v53 = vmul.f32 1.442695, %v789_v46  ;;  %v1037_v54 = vrot.slane %v1008_v50, 4 }
  0x20   : > { %v1703_v57 = vpop.eup %1702  ;;  %v308_v58 = vmul.f32 %v1701_v52, %v260_v31  ;;  %v816_v5 = vmul.f32 1.442695, %v790_v0  ;;  %v335_v6 = vrot.slane %v1907_v13, 6  ;;  %v1009_v9 = vsel %vm985_vm2, %v1918_v28, 8.0  ;;  %v1947_v31 = vld [vmem:[%s1881_s14 + $0x28] sm:$0xff] }
  0x21   : > { %1708 = vpow2.f32 %v812_v48  ;;  %v1705_v61 = vpop.eup %1704  ;;  %v1032_v62 = vmin.f32 %v1007_v45, %v1031_v49  ;;  %v309_v63 = vmul.f32 %v1703_v57, %v261_v35  ;;  %v1038_v2 = vmin.f32 %v1008_v50, %v1037_v54 }
  0x22   : > { %1710 = vpow2.f32 %v814_v53  ;;  %v428_v1 = vmul.f32 0.5, %v308_v58  ;;  %v310_v3 = vmul.f32 %v1705_v61, %v262_v39  ;;  %v406_v12 = vadd.f32 %v382_v51, %v262_v39 }
  0x23   : > { %v429_v4 = vmul.f32 0.5, %v309_v63  ;;  %1712 = vpow2.f32 %v196_v56  ;;  %v1033_v11 = vrot.slane %v1032_v62, 2  ;;  %v1707_v16 = vpop.eup %1706  ;;  %v1039_v17 = vrot.slane %v1038_v2, 2 }
  0x24   : > { %v476_v7 = vrot.slane %v428_v1, 2  ;;  %v430_v8 = vmul.f32 0.5, %v310_v3  ;;  %1714 = vpow2.f32 %v816_v5  ;;  %v1043_v20 = vrot.slane %v1009_v9, 4 }
  0x25   : > { %v477_v14 = vrot.slane %v429_v4, 2  ;;  %v383_v21 = vmul.f32 %v335_v6, %v1907_v13  ;;  %v1944_v27 = vmin.f32 %v1032_v62, %v1033_v11  ;;  %v311_v29 = vmul.f32 %v1707_v16, %v263_v59 }
  0x26   : > { %v478_v18 = vrot.slane %v430_v8, 2  ;;  %v524_v19 = vsub.f32 %v404_v37, %v476_v7  ;;  %v572_v26 = vadd.f32 %v476_v7, %v404_v37  ;;  %v666_v30 = vrot.slane %v665_v15, 1 }
  0x27   : > { %v525_v23 = vsub.f32 %v405_v42, %v477_v14  ;;  %v573_v32 = vadd.f32 %v477_v14, %v405_v42  ;;  %v1949_v33 = vmin.f32 %v1038_v2, %v1039_v17  ;;  %v264_v35 = vrot.slane %v1928_v44, 4 }
  0x28   : > { %v526_v34 = vsub.f32 %v406_v12, %v478_v18  ;;  %v548_v13 = vmax.f32 %v524_v19, 0.0  ;;  %v1044_v36 = vmin.f32 %v1009_v9, %v1043_v20  ;;  %v407_v38 = vadd.f32 %v383_v21, %v263_v59 }
  0x29   : > { %v668_v39 = vrot.slane %v1942_v25, 4  ;;  %v549_v40 = vmax.f32 %v525_v23, 0.0  ;;  %v574_v37 = vadd.f32 %v478_v18, %v406_v12  ;;  %v1953_v41 = vadd.f32 %v384_v24, %v264_v35 }
  0x2a   : > { %v198_v43 = vmul.f32 1.442695, %v1947_v31  ;;  %v596_v46 = vmin.f32 %v572_v26, 127.0  ;;  %v1035_v42 = vrot.slane %v1944_v27, 1  ;;  %v431_v47 = vmul.f32 0.5, %v311_v29 }
  0x2b   : > { %v667_v48 = vmax.f32 %v665_v15, %v666_v30  ;;  %v597_v50 = vmin.f32 %v573_v32, 127.0  ;;  %v1041_v51 = vrot.slane %v1949_v33, 1  ;;  %v550_v52 = vmax.f32 %v526_v34, 0.0  ;;  %v1967_v30 = vld [vmem:[%s1887_s17 + $0x28] sm:$0xff] }
  0x2c   : > { %v1199_v53 = vrot.slane %v548_v13, 5  ;;  %v1247_v54 = vrot.slane %v548_v13, 3  ;;  %v1045_v56 = vrot.slane %v1044_v36, 2  ;;  %v1200_v58 = vrot.slane %v549_v40, 5 }
  0x2d   : > { %v1248_v59 = vrot.slane %v549_v40, 3  ;;  %v598_v60 = vmin.f32 %v574_v37, 127.0  ;;  %v1319_v61 = vrot.slane %v596_v46, 3  ;;  %v479_v62 = vrot.slane %v431_v47, 2 }
  0x2e   : > { %v1709_v45 = vpop.eup %1708  ;;  %v791_v63 = vsub.f32 0.0, %v667_v48  ;;  %v1320_v1 = vrot.slane %v597_v50, 3  ;;  %v1201_v2 = vrot.slane %v550_v52, 5  ;;  %v1249_v3 = vrot.slane %v550_v52, 3 }
  0x2f   : > { %v1711_v49 = vpop.eup %1710  ;;  %v860_v44 = vadd.f32 1.0, %v1709_v45  ;;  %vm986_vm6 = vcmp.eq.f32.partialorder %v1914_v22, %v667_v48  ;;  %v1416_v4 = vsel %vm1415_vm3, %v1199_v53, %v1247_v54  ;;  %v1046_v6 = vmin.f32 %v1044_v36, %v1045_v56 }
  0x30   : > { %v861_v55 = vadd.f32 1.0, %v1711_v49  ;;  %v1713_v57 = vpop.eup %1712  ;;  %v1417_v8 = vsel %vm1415_vm3, %v1200_v58, %v1248_v59  ;;  %v1321_v9 = vrot.slane %v598_v60, 3  ;;  %v818_v10 = vmul.f32 1.442695, %v791_v63 }
  0x31   : > { %1716 = vrcp.f32 %v860_v44  ;;  %v1715_v0 = vpop.eup %1714  ;;  %v312_v7 = vmul.f32 %v1713_v57, %v264_v35  ;;  %v669_v11 = vmax.f32 %v1942_v25, %v668_v39  ;;  %v527_v14 = vsub.f32 %v407_v38, %v479_v62 }
  0x32   : > { %1718 = vrcp.f32 %v861_v55  ;;  %v862_v5 = vadd.f32 1.0, %v1715_v0  ;;  %v575_v15 = vadd.f32 %v479_v62, %v407_v38  ;;  %v1010_v16 = vsel %vm986_vm6, %v1918_v28, 8.0 }
  0x33   : > { %v1367_v17 = vrot.slane %v596_v46, 1  ;;  %v1418_v22 = vsel %vm1415_vm3, %v1201_v2, %v1249_v3  ;;  %v670_v12 = vrot.slane %v669_v11, 2  ;;  %v1441_v18 = vsel %vm1440_vm4, %v1416_v4, %v1319_v61  ;;  %v1995_v3 = vld [vmem:[%s1881_s14 + $0x30] sm:$0xff] }
  0x34   : > { %1720 = vrcp.f32 %v862_v5  ;;  %v1368_v19 = vrot.slane %v597_v50, 1  ;;  %v1047_v20 = vrot.slane %v1046_v6, 1  ;;  %v432_v21 = vmul.f32 0.5, %v312_v7 }
  0x35   : > { %1722 = vpow2.f32 %v818_v10  ;;  %v1442_v23 = vsel %vm1440_vm4, %v1417_v8, %v1320_v1  ;;  %v1369_v24 = vrot.slane %v598_v60, 1  ;;  %v1049_v26 = vrot.slane %v1010_v16, 4 }
  0x36   : > { %v671_v29 = vmax.f32 %v669_v11, %v670_v12  ;;  %v1443_v32 = vsel %vm1440_vm4, %v1418_v22, %v1321_v9  ;;  %v551_v34 = vmax.f32 %v527_v14, 0.0  ;;  %v599_v35 = vmin.f32 %v575_v15, 127.0  ;;  %v2007_v22 = vld [vmem:[%s1887_s17 + $0x30] sm:$0xff] }
  0x37   : > { %1724 = vpow2.f32 %v198_v43  ;;  %v1036_v13 = vmin.f32 %v1944_v27, %v1035_v42  ;;  %v1466_v36 = vsel %vm1465_vm5, %v1441_v18, %v1367_v17  ;;  %v1042_v38 = vmin.f32 %v1949_v33, %v1041_v51 }
  0x38   : > { %v672_v39 = vrot.slane %v671_v29, 1  ;;  %v1467_v40 = vsel %vm1465_vm5, %v1442_v23, %v1368_v19  ;;  %v1048_v37 = vmin.f32 %v1046_v6, %v1047_v20  ;;  %v480_v45 = vrot.slane %v432_v21, 2  ;;  %v2011_v21 = vld [vmem:[%s1881_s14 + $0x38] sm:$0xff] }
  0x39   : > { %v674_v46 = vrot.slane %v1967_v30, 4  ;;  %v1468_v47 = vsel %vm1465_vm5, %v1443_v32, %v1369_v24  ;;  %v1050_v48 = vmin.f32 %v1010_v16, %v1049_v26  ;;  %v265_v44 = vrot.slane %v1947_v31, 4 }
  0x3a   : > { %v673_v49 = vmax.f32 %v671_v29, %v672_v39  ;;  %v1202_v50 = vrot.slane %v551_v34, 5  ;;  %v1250_v27 = vrot.slane %v551_v34, 3  ;;  %v1322_v42 = vrot.slane %v599_v35, 3 }
  0x3b   : > { %v675_v33 = vmax.f32 %v1967_v30, %v674_v46  ;;  %v1370_v52 = vrot.slane %v599_v35, 1  ;;  %v528_v55 = vsub.f32 %v1953_v41, %v480_v45  ;;  %v576_v59 = vadd.f32 %v480_v45, %v1953_v41 }
  0x3c   : > { %v792_v53 = vsub.f32 0.0, %v673_v49  ;;  %vm987_vm12 = vcmp.eq.f32.partialorder %v1942_v25, %v673_v49  ;;  %v1419_v62 = vsel %vm1415_vm3, %v1202_v50, %v1250_v27  ;;  %v1051_v7 = vrot.slane %v1050_v48, 2  ;;  %v2028_v50 = vld [vmem:[%s1881_s14 + $0x40] sm:$0xff] }
  0x3d   : > { %v1011_v56 = vsel %vm987_vm12, %v1918_v28, 8.0  ;;  %v676_v63 = vrot.slane %v675_v33, 2  ;;  %v337_v11 = vrot.slane %v1947_v31, 6  ;;  %v1444_v15 = vsel %vm1440_vm4, %v1419_v62, %v1322_v42 }
  0x3e   : > { %v1717_v43 = vpop.eup %1716  ;;  %v820_v60 = vmul.f32 1.442695, %v792_v53  ;;  %v1055_v2 = vrot.slane %v1011_v56, 4  ;;  %v200_v17 = vmul.f32 1.442695, %v1995_v3  ;;  %v552_v19 = vmax.f32 %v528_v55, 0.0 }
  0x3f   : > { %v1719_v51 = vpop.eup %1718  ;;  %vm932_vm11 = vcmp.gt.f32.partialorder %v1717_v43, 0.2  ;;  %v677_v16 = vmax.f32 %v675_v33, %v676_v63  ;;  %v1052_v32 = vmin.f32 %v1050_v48, %v1051_v7  ;;  %v600_v34 = vmin.f32 %v576_v59, 127.0 }
  0x40   : > { %v956_v54 = vsel %vm932_vm11, %v1717_v43, -1.0  ;;  %vm933_vm13 = vcmp.gt.f32.partialorder %v1719_v51, 0.2  ;;  %1726 = vpow2.f32 %v820_v60  ;;  %v1056_v20 = vmin.f32 %v1011_v56, %v1055_v2 }
  0x41   : > { %v1491_v57 = vsel %vm1490_vm7, %v1466_v36, %v956_v54  ;;  %v957_v58 = vsel %vm933_vm13, %v1719_v51, -1.0  ;;  %v1721_v0 = vpop.eup %1720  ;;  %v678_v26 = vrot.slane %v677_v16, 1  ;;  %v680_v35 = vrot.slane %v2007_v22, 4 }
  0x42   : > { %v1516_v25 = vsel %vm1515_vm8, %v1491_v57, %v1036_v13  ;;  %v1492_v61 = vsel %vm1490_vm7, %v1467_v40, %v957_v58  ;;  %v1723_v4 = vpop.eup %1722  ;;  %vm934_vm14 = vcmp.gt.f32.partialorder %v1721_v0, 0.2  ;;  %v1469_v13 = vsel %vm1465_vm5, %v1444_v15, %v1370_v52  ;;  %v2023_v40 = vld [vmem:[%s1887_s17 + $0x38] sm:$0xff] }
  0x43   : > { %v1541_v1 = vsel %vm1540_vm9, %v1516_v25, 0.0  ;;  %v1517_v41 = vsel %vm1515_vm8, %v1492_v61, %v1042_v38  ;;  %v958_v9 = vsel %vm934_vm14, %v1721_v0, -1.0  ;;  %v863_v10 = vadd.f32 1.0, %v1723_v4 }
  0x44   : > { %v1566_v5 = vsel %vm1565_vm10, %v1541_v1, 0.0  ;;  %v1542_v6 = vsel %vm1540_vm9, %v1517_v41, 0.0  ;;  %v1493_v14 = vsel %vm1490_vm7, %v1468_v47, %v958_v9  ;;  %v1725_v12 = vpop.eup %1724  ;;  %v385_v36 = vmul.f32 %v337_v11, %v1947_v31 }
  0x45   : > { %1590 = vst [vmem:[%s1987_s20] sm:$0xff] %v1566_v5  ;;  %v1567_v8 = vsel %vm1565_vm10, %v1542_v6, 0.0  ;;  %v1518_v18 = vsel %vm1515_vm8, %v1493_v14, %v1048_v37  ;;  %1728 = vrcp.f32 %v863_v10  ;;  %v313_v24 = vmul.f32 %v1725_v12, %v265_v44 }
  0x46   : > { %1591 = vst [vmem:[%s1987_s20 + $0x8] sm:$0xff] %v1567_v8  ;;  %v1543_v23 = vsel %vm1540_vm9, %v1518_v18, 0.0  ;;  %1730 = vpow2.f32 %v200_v17  ;;  %v679_v38 = vmax.f32 %v677_v16, %v678_v26  ;;  %v202_v39 = vmul.f32 1.442695, %v2011_v21 }
  0x47   : > { %v1568_v29 = vsel %vm1565_vm10, %v1543_v23, 0.0  ;;  %v1057_v37 = vrot.slane %v1056_v20, 2  ;;  %v1203_v45 = vrot.slane %v552_v19, 5  ;;  %v1251_v46 = vrot.slane %v552_v19, 3 }
  0x48   : > { %1592 = vst [vmem:[%s1987_s20 + $0x10] sm:$0xff] %v1568_v29  ;;  %v681_v47 = vmax.f32 %v2007_v22, %v680_v35  ;;  %v433_v48 = vmul.f32 0.5, %v313_v24  ;;  %v793_v49 = vsub.f32 0.0, %v679_v38  ;;  %v338_v43 = vrot.slane %v1995_v3, 6 }
  0x49   : > { %1732 = vpow2.f32 %v202_v39  ;;  %v1053_v27 = vrot.slane %v1052_v32, 1  ;;  %v1323_v42 = vrot.slane %v600_v34, 3  ;;  %v686_v51 = vrot.slane %v2023_v40, 4 }
  0x4a   : > { %v682_v33 = vrot.slane %v681_v47, 2  ;;  %v1371_v52 = vrot.slane %v600_v34, 1  ;;  %v409_v53 = vadd.f32 %v385_v36, %v265_v44  ;;  %v822_v54 = vmul.f32 1.442695, %v793_v49 }
  0x4b   : > { %vm988_vm15 = vcmp.eq.f32.partialorder %v1967_v30, %v679_v38  ;;  %v1420_v55 = vsel %vm1415_vm3, %v1203_v45, %v1251_v46  ;;  %v687_v57 = vmax.f32 %v2023_v40, %v686_v51  ;;  %v204_v58 = vmul.f32 1.442695, %v2028_v50  ;;  %v2054_v46 = vld [vmem:[%s1887_s17 + $0x40] sm:$0xff] }
  0x4c   : > { %v683_v56 = vmax.f32 %v681_v47, %v682_v33  ;;  %v1058_v60 = vmin.f32 %v1056_v20, %v1057_v37  ;;  %v481_v25 = vrot.slane %v433_v48, 2  ;;  %1734 = vpow2.f32 %v822_v54 }
  0x4d   : > { %v1727_v59 = vpop.eup %1726  ;;  %v386_v61 = vmul.f32 %v338_v43, %v1995_v3  ;;  %v1012_v31 = vsel %vm988_vm15, %v1918_v28, 8.0  ;;  %v688_v63 = vrot.slane %v687_v57, 2  ;;  %v1054_v0 = vmin.f32 %v1052_v32, %v1053_v27 }
  0x4e   : > { %v864_v62 = vadd.f32 1.0, %v1727_v59  ;;  %v684_v44 = vrot.slane %v683_v56, 1  ;;  %v266_v30 = vrot.slane %v1995_v3, 4  ;;  %v339_v1 = vrot.slane %v2011_v21, 6 }
  0x4f   : > { %1736 = vpow2.f32 %v204_v58  ;;  %v1445_v41 = vsel %vm1440_vm4, %v1420_v55, %v1323_v42  ;;  %v689_v4 = vmax.f32 %v687_v57, %v688_v63  ;;  %v1059_v6 = vrot.slane %v1058_v60, 1 }
  0x50   : > { %1738 = vrcp.f32 %v864_v62  ;;  %v685_v2 = vmax.f32 %v683_v56, %v684_v44  ;;  %v1061_v7 = vrot.slane %v1012_v31, 4  ;;  %v410_v8 = vadd.f32 %v386_v61, %v266_v30 }
  0x51   : > { %v267_v9 = vrot.slane %v2011_v21, 4  ;;  %v529_v11 = vsub.f32 %v409_v53, %v481_v25  ;;  %v577_v15 = vadd.f32 %v481_v25, %v409_v53  ;;  %v387_v17 = vmul.f32 %v339_v1, %v2011_v21 }
  0x52   : > { %v1729_v5 = vpop.eup %1728  ;;  %v794_v14 = vsub.f32 0.0, %v685_v2  ;;  %vm989_vm1 = vcmp.eq.f32.partialorder %v2007_v22, %v685_v2  ;;  %v690_v20 = vrot.slane %v689_v4, 1  ;;  %v1062_v24 = vmin.f32 %v1012_v31, %v1061_v7  ;;  %v2060_v31 = vld [vmem:[%s1881_s14 + $0x48] sm:$0xff] }
  0x53   : > { %v1731_v10 = vpop.eup %1730  ;;  %vm935_vm0 = vcmp.gt.f32.partialorder %v1729_v5, 0.2  ;;  %v1013_v19 = vsel %vm989_vm1, %v1918_v28, 8.0  ;;  %v553_v34 = vmax.f32 %v529_v11, 0.0  ;;  %v1470_v39 = vsel %vm1465_vm5, %v1445_v41, %v1371_v52 }
  0x54   : > { %v959_v3 = vsel %vm935_vm0, %v1729_v5, -1.0  ;;  %v314_v16 = vmul.f32 %v1731_v10, %v266_v30  ;;  %v824_v18 = vmul.f32 1.442695, %v794_v14  ;;  %v1067_v29 = vrot.slane %v1013_v19, 4 }
  0x55   : > { %v1494_v12 = vsel %vm1490_vm7, %v1469_v13, %v959_v3  ;;  %v691_v35 = vmax.f32 %v689_v4, %v690_v20  ;;  %v601_v13 = vmin.f32 %v577_v15, 127.0  ;;  %v1060_v47 = vmin.f32 %v1058_v60, %v1059_v6 }
  0x56   : > { %v1519_v23 = vsel %vm1515_vm8, %v1494_v12, %v1054_v0  ;;  %v434_v26 = vmul.f32 0.5, %v314_v16  ;;  %v1733_v32 = vpop.eup %1732  ;;  %1740 = vpow2.f32 %v824_v18  ;;  %v1068_v37 = vmin.f32 %v1013_v19, %v1067_v29 }
  0x57   : > { %v1544_v22 = vsel %vm1540_vm9, %v1519_v23, 0.0  ;;  %v315_v38 = vmul.f32 %v1733_v32, %v267_v9  ;;  %v795_v45 = vsub.f32 0.0, %v691_v35  ;;  %vm990_vm2 = vcmp.eq.f32.partialorder %v2023_v40, %v691_v35  ;;  %v2074_v35 = vld [vmem:[%s1887_s17 + $0x48] sm:$0xff] }
  0x58   : > { %v1569_v21 = vsel %vm1565_vm10, %v1544_v22, 0.0  ;;  %v482_v36 = vrot.slane %v434_v26, 2  ;;  %v1063_v48 = vrot.slane %v1062_v24, 2  ;;  %v411_v49 = vadd.f32 %v387_v17, %v267_v9 }
  0x59   : > { %1593 = vst [vmem:[%s1987_s20 + $0x18] sm:$0xff] %v1569_v21  ;;  %v435_v43 = vmul.f32 0.5, %v315_v38  ;;  %v1735_v27 = vpop.eup %1734  ;;  %v1204_v42 = vrot.slane %v553_v34, 5  ;;  %v1252_v33 = vrot.slane %v553_v34, 3  ;;  %v826_v51 = vmul.f32 1.442695, %v795_v45 }
  0x5a   : > { %v1014_v53 = vsel %vm990_vm2, %v1918_v28, 8.0  ;;  %v865_v54 = vadd.f32 1.0, %v1735_v27  ;;  %v1324_v55 = vrot.slane %v601_v13, 3  ;;  %v530_v52 = vsub.f32 %v410_v8, %v482_v36  ;;  %v2077_v21 = vld [vmem:[%s1881_s14 + $0x50] sm:$0xff] }
  0x5b   : > { %v692_v56 = vrot.slane %v2054_v46, 4  ;;  %v1069_v40 = vrot.slane %v1068_v37, 2  ;;  %v483_v58 = vrot.slane %v435_v43, 2  ;;  %1742 = vpow2.f32 %v826_v51 }
  0x5c   : > { %v1737_v57 = vpop.eup %1736  ;;  %v268_v59 = vrot.slane %v2028_v50, 4  ;;  %1744 = vrcp.f32 %v865_v54  ;;  %v1372_v25 = vrot.slane %v601_v13, 1  ;;  %v578_v61 = vadd.f32 %v482_v36, %v410_v8 }
  0x5d   : > { %v1739_v60 = vpop.eup %1738  ;;  %v1073_v62 = vrot.slane %v1014_v53, 4  ;;  %v1064_v44 = vmin.f32 %v1062_v24, %v1063_v48  ;;  %v1421_v63 = vsel %vm1415_vm3, %v1204_v42, %v1252_v33  ;;  %v531_v0 = vsub.f32 %v411_v49, %v483_v58 }
  0x5e   : > { %vm936_vm6 = vcmp.gt.f32.partialorder %v1739_v60, 0.2  ;;  %v554_v1 = vmax.f32 %v530_v52, 0.0  ;;  %v340_v41 = vrot.slane %v2028_v50, 6  ;;  %v693_v2 = vmax.f32 %v2054_v46, %v692_v56 }
  0x5f   : > { %v960_v30 = vsel %vm936_vm6, %v1739_v60, -1.0  ;;  %v1070_v5 = vmin.f32 %v1068_v37, %v1069_v40  ;;  %v316_v6 = vmul.f32 %v1737_v57, %v268_v59  ;;  %v206_v7 = vmul.f32 1.442695, %v2060_v31 }
  0x60   : > { %v1495_v4 = vsel %vm1490_vm7, %v1470_v39, %v960_v30  ;;  %v602_v9 = vmin.f32 %v578_v61, 127.0  ;;  %v579_v10 = vadd.f32 %v483_v58, %v411_v49  ;;  %v1074_v11 = vmin.f32 %v1014_v53, %v1073_v62  ;;  %v2089_v61 = vld [vmem:[%s1887_s17 + $0x50] sm:$0xff]  ;;  %v2096_v30 = vld [vmem:[%s1881_s14 + $0x58] sm:$0xff] }
  0x61   : > { %v1520_v8 = vsel %vm1515_vm8, %v1495_v4, %v1060_v47  ;;  %v1065_v3 = vrot.slane %v1064_v44, 1  ;;  %v1446_v15 = vsel %vm1440_vm4, %v1421_v63, %v1324_v55  ;;  %v555_v16 = vmax.f32 %v531_v0, 0.0 }
  0x62   : > { %v1545_v14 = vsel %vm1540_vm9, %v1520_v8, 0.0  ;;  %v1205_v18 = vrot.slane %v554_v1, 5  ;;  %v1253_v19 = vrot.slane %v554_v1, 3  ;;  %v388_v20 = vmul.f32 %v340_v41, %v2028_v50 }
  0x63   : > { %v1741_v17 = vpop.eup %1740  ;;  %v1570_v12 = vsel %vm1565_vm10, %v1545_v14, 0.0  ;;  %v1071_v24 = vrot.slane %v1070_v5, 1  ;;  %v436_v26 = vmul.f32 0.5, %v316_v6  ;;  %v694_v29 = vrot.slane %v693_v2, 2 }
  0x64   : > { %1594 = vst [vmem:[%s1987_s20 + $0x20] sm:$0xff] %v1570_v12  ;;  %v866_v23 = vadd.f32 1.0, %v1741_v17  ;;  %v1325_v32 = vrot.slane %v602_v9, 3  ;;  %v603_v22 = vmin.f32 %v579_v10, 127.0  ;;  %v1075_v34 = vrot.slane %v1074_v11, 2 }
  0x65   : > { %1746 = vpow2.f32 %v206_v7  ;;  %v1206_v13 = vrot.slane %v555_v16, 5  ;;  %v1254_v36 = vrot.slane %v555_v16, 3  ;;  %v695_v38 = vmax.f32 %v693_v2, %v694_v29 }
  0x66   : > { %1748 = vrcp.f32 %v866_v23  ;;  %v1066_v39 = vmin.f32 %v1064_v44, %v1065_v3  ;;  %v1471_v50 = vsel %vm1465_vm5, %v1446_v15, %v1372_v25  ;;  %v1422_v37 = vsel %vm1415_vm3, %v1205_v18, %v1253_v19 }
  0x67   : > { %v412_v45 = vadd.f32 %v388_v20, %v268_v59  ;;  %v484_v47 = vrot.slane %v436_v26, 2  ;;  %v696_v48 = vrot.slane %v695_v38, 1  ;;  %v698_v49 = vrot.slane %v2074_v35, 4  ;;  %v2114_v26 = vld [vmem:[%s1887_s17 + $0x58] sm:$0xff] }
  0x68   : > { %v208_v43 = vmul.f32 1.442695, %v2077_v21  ;;  %v1743_v27 = vpop.eup %1742  ;;  %v2083_v42 = vmin.f32 %v1070_v5, %v1071_v24  ;;  %v1373_v33 = vrot.slane %v602_v9, 1  ;;  %v1076_v51 = vmin.f32 %v1074_v11, %v1075_v34 }
  0x69   : > { %v1326_v53 = vrot.slane %v603_v22, 3  ;;  %v1745_v54 = vpop.eup %1744  ;;  %v1447_v55 = vsel %vm1440_vm4, %v1422_v37, %v1325_v32  ;;  %v867_v52 = vadd.f32 1.0, %v1743_v27  ;;  %v1423_v56 = vsel %vm1415_vm3, %v1206_v13, %v1254_v36 }
  0x6a   : > { %v697_v57 = vmax.f32 %v695_v38, %v696_v48  ;;  %vm937_vm11 = vcmp.gt.f32.partialorder %v1745_v54, 0.2  ;;  %v1374_v40 = vrot.slane %v603_v22, 1  ;;  %v699_v58 = vmax.f32 %v2074_v35, %v698_v49 }
  0x6b   : > { %1750 = vpow2.f32 %v208_v43  ;;  %v961_v59 = vsel %vm937_vm11, %v1745_v54, -1.0  ;;  %v532_v60 = vsub.f32 %v412_v45, %v484_v47  ;;  %v1077_v44 = vrot.slane %v1076_v51, 1 }
  0x6c   : > { %1752 = vrcp.f32 %v867_v52  ;;  %v796_v25 = vsub.f32 0.0, %v697_v57  ;;  %v1496_v62 = vsel %vm1490_vm7, %v1471_v50, %v961_v59  ;;  %v1448_v63 = vsel %vm1440_vm4, %v1423_v56, %v1326_v53 }
  0x6d   : > { %v2093_v0 = vadd.f32 %v484_v47, %v412_v45  ;;  %v1521_v1 = vsel %vm1515_vm8, %v1496_v62, %v1066_v39  ;;  %vm991_vm12 = vcmp.eq.f32.partialorder %v2054_v46, %v697_v57  ;;  %v341_v2 = vrot.slane %v2060_v31, 6 }
  0x6e   : > { %v828_v41 = vmul.f32 1.442695, %v796_v25  ;;  %v1546_v4 = vsel %vm1540_vm9, %v1521_v1, 0.0  ;;  %v269_v5 = vrot.slane %v2060_v31, 4  ;;  %v700_v6 = vrot.slane %v699_v58, 2 }
  0x6f   : > { %v704_v7 = vrot.slane %v2089_v61, 4  ;;  %v1571_v8 = vsel %vm1565_vm10, %v1546_v4, 0.0  ;;  %v556_v9 = vmax.f32 %v532_v60, 0.0  ;;  %v210_v10 = vmul.f32 1.442695, %v2096_v30 }
  0x70   : > { %1754 = vpow2.f32 %v828_v41  ;;  %1595 = vst [vmem:[%s1987_s20 + $0x28] sm:$0xff] %v1571_v8  ;;  %v1472_v11 = vsel %vm1465_vm5, %v1447_v55, %v1373_v33  ;;  %v1015_v46 = vsel %vm991_vm12, %v1918_v28, 8.0  ;;  %v701_v14 = vmax.f32 %v699_v58, %v700_v6 }
  0x71   : > { %v705_v3 = vmax.f32 %v2089_v61, %v704_v7  ;;  %v1473_v16 = vsel %vm1465_vm5, %v1448_v63, %v1374_v40  ;;  %v604_v17 = vmin.f32 %v2093_v0, 127.0  ;;  %v389_v12 = vmul.f32 %v341_v2, %v2060_v31 }
  0x72   : > { %v1747_v15 = vpop.eup %1746  ;;  %1756 = vpow2.f32 %v210_v10  ;;  %v1078_v19 = vmin.f32 %v1076_v51, %v1077_v44  ;;  %v702_v23 = vrot.slane %v701_v14, 1  ;;  %v1079_v29 = vrot.slane %v1015_v46, 4 }
  0x73   : > { %v1749_v18 = vpop.eup %1748  ;;  %v317_v20 = vmul.f32 %v1747_v15, %v269_v5  ;;  %v706_v24 = vrot.slane %v705_v3, 2  ;;  %v1207_v32 = vrot.slane %v556_v9, 5  ;;  %v342_v22 = vrot.slane %v2077_v21, 6  ;;  %v2140_v15 = vld [vmem:[%s1881_s14 + $0x60] sm:$0xff] }
  0x74   : > { %vm938_vm13 = vcmp.gt.f32.partialorder %v1749_v18, 0.2  ;;  %v703_v36 = vmax.f32 %v701_v14, %v702_v23  ;;  %v413_v31 = vadd.f32 %v389_v12, %v269_v5  ;;  %v270_v50 = vrot.slane %v2077_v21, 4 }
  0x75   : > { %v962_v34 = vsel %vm938_vm13, %v1749_v18, -1.0  ;;  %v437_v13 = vmul.f32 0.5, %v317_v20  ;;  %v707_v38 = vmax.f32 %v705_v3, %v706_v24  ;;  %v710_v37 = vrot.slane %v2114_v26, 4 }
  0x76   : > { %v1497_v39 = vsel %vm1490_vm7, %v1472_v11, %v962_v34  ;;  %v797_v48 = vsub.f32 0.0, %v703_v36  ;;  %vm992_vm14 = vcmp.eq.f32.partialorder %v2074_v35, %v703_v36  ;;  %v1080_v27 = vmin.f32 %v1015_v46, %v1079_v29 }
  0x77   : > { %v1522_v45 = vsel %vm1515_vm8, %v1497_v39, %v2083_v42  ;;  %v485_v47 = vrot.slane %v437_v13, 2  ;;  %v1255_v33 = vrot.slane %v556_v9, 3  ;;  %v708_v51 = vrot.slane %v707_v38, 1 }
  0x78   : > { %v1751_v49 = vpop.eup %1750  ;;  %v1547_v43 = vsel %vm1540_vm9, %v1522_v45, 0.0  ;;  %v830_v55 = vmul.f32 1.442695, %v797_v48  ;;  %v1016_v52 = vsel %vm992_vm14, %v1918_v28, 8.0  ;;  %v390_v56 = vmul.f32 %v342_v22, %v2077_v21 }
  0x79   : > { %v1753_v53 = vpop.eup %1752  ;;  %v1572_v54 = vsel %vm1565_vm10, %v1547_v43, 0.0  ;;  %v318_v42 = vmul.f32 %v1751_v49, %v270_v50  ;;  %v709_v57 = vmax.f32 %v707_v38, %v708_v51  ;;  %v711_v35 = vmax.f32 %v2114_v26, %v710_v37  ;;  %v2150_v43 = vld [vmem:[%s1887_s17 + $0x60] sm:$0xff] }
  0x7a   : > { %1596 = vst [vmem:[%s1987_s20 + $0x30] sm:$0xff] %v1572_v54  ;;  %vm939_vm15 = vcmp.gt.f32.partialorder %v1753_v53, 0.2  ;;  %v533_v58 = vsub.f32 %v413_v31, %v485_v47  ;;  %1758 = vpow2.f32 %v830_v55  ;;  %v271_v59 = vrot.slane %v2096_v30, 4 }
  0x7b   : > { %v963_v40 = vsel %vm939_vm15, %v1753_v53, -1.0  ;;  %v1085_v25 = vrot.slane %v1016_v52, 4  ;;  %v438_v62 = vmul.f32 0.5, %v318_v42  ;;  %v798_v44 = vsub.f32 0.0, %v709_v57 }
  0x7c   : > { %v1498_v60 = vsel %vm1490_vm7, %v1473_v16, %v963_v40  ;;  %v1081_v1 = vrot.slane %v1080_v27, 2  ;;  %v414_v41 = vadd.f32 %v390_v56, %v270_v50  ;;  %v343_v2 = vrot.slane %v2096_v30, 6 }
  0x7d   : > { %v1755_v63 = vpop.eup %1754  ;;  %v1523_v21 = vsel %vm1515_vm8, %v1498_v60, %v1078_v19  ;;  %v581_v6 = vadd.f32 %v485_v47, %v413_v31  ;;  %v712_v7 = vrot.slane %v711_v35, 2  ;;  %v557_v10 = vmax.f32 %v533_v58, 0.0 }
  0x7e   : > { %v1548_v4 = vsel %vm1540_vm9, %v1523_v21, 0.0  ;;  %v868_v5 = vadd.f32 1.0, %v1755_v63  ;;  %v486_v11 = vrot.slane %v438_v62, 2  ;;  %v832_v46 = vmul.f32 1.442695, %v798_v44 }
  0x7f   : > { %v1757_v8 = vpop.eup %1756  ;;  %v1573_v9 = vsel %vm1565_vm10, %v1548_v4, 0.0  ;;  %v1327_v14 = vrot.slane %v604_v17, 3  ;;  %v1086_v3 = vmin.f32 %v1016_v52, %v1085_v25  ;;  %vm993_vm0 = vcmp.eq.f32.partialorder %v2089_v61, %v709_v57 }
  0x80   : > { %1597 = vst [vmem:[%s1987_s20 + $0x38] sm:$0xff] %v1573_v9  ;;  %1760 = vrcp.f32 %v868_v5  ;;  %v1082_v16 = vmin.f32 %v1080_v27, %v1081_v1  ;;  %v1424_v12 = vsel %vm1415_vm3, %v1207_v32, %v1255_v33  ;;  %v534_v18 = vsub.f32 %v414_v41, %v486_v11 }
  0x81   : > { %1762 = vpow2.f32 %v832_v46  ;;  %v1017_v19 = vsel %vm993_vm0, %v1918_v28, 8.0  ;;  %v319_v20 = vmul.f32 %v1757_v8, %v271_v59  ;;  %v391_v23 = vmul.f32 %v343_v2, %v2096_v30 }
  0x82   : > { %v713_v24 = vmax.f32 %v711_v35, %v712_v7  ;;  %v605_v29 = vmin.f32 %v581_v6, 127.0  ;;  %v1208_v22 = vrot.slane %v557_v10, 5  ;;  %v1091_v34 = vrot.slane %v1017_v19, 4 }
  0x83   : > { %v212_v13 = vmul.f32 1.442695, %v2140_v15  ;;  %v1087_v61 = vrot.slane %v1086_v3, 2  ;;  %v1256_v36 = vrot.slane %v557_v10, 3  ;;  %v582_v38 = vadd.f32 %v486_v11, %v414_v41  ;;  %v2169_v10 = vld [vmem:[%s1887_s17 + $0x68] sm:$0xff] }
  0x84   : > { %v714_v39 = vrot.slane %v713_v24, 1  ;;  %v558_v31 = vmax.f32 %v534_v18, 0.0  ;;  %v439_v32 = vmul.f32 0.5, %v319_v20  ;;  %v1083_v50 = vrot.slane %v1082_v16, 1 }
  0x85   : > { %v1375_v37 = vrot.slane %v604_v17, 1  ;;  %1764 = vpow2.f32 %v212_v13  ;;  %v1449_v30 = vsel %vm1440_vm4, %v1424_v12, %v1327_v14  ;;  %v1328_v47 = vrot.slane %v605_v29, 3 }
  0x86   : > { %v715_v45 = vmax.f32 %v713_v24, %v714_v39  ;;  %v1092_v48 = vmin.f32 %v1017_v19, %v1091_v34  ;;  %v415_v49 = vadd.f32 %v391_v23, %v271_v59  ;;  %v2152_v33 = vmin.f32 %v1086_v3, %v1087_v61  ;;  %v2159_v59 = vld [vmem:[%s1881_s14 + $0x68] sm:$0xff]  ;;  %v2174_v3 = vld [vmem:[%s1881_s14 + $0x70] sm:$0xff] }
  0x87   : > { %v1759_v27 = vpop.eup %1758  ;;  %v1425_v51 = vsel %vm1415_vm3, %v1208_v22, %v1256_v36  ;;  %v606_v53 = vmin.f32 %v582_v38, 127.0  ;;  %v1209_v0 = vrot.slane %v558_v31, 5  ;;  %v1257_v17 = vrot.slane %v558_v31, 3 }
  0x88   : > { %v799_v54 = vsub.f32 0.0, %v715_v45  ;;  %v869_v55 = vadd.f32 1.0, %v1759_v27  ;;  %v487_v52 = vrot.slane %v439_v32, 2  ;;  %v1084_v56 = vmin.f32 %v1082_v16, %v1083_v50 }
  0x89   : > { %v1474_v42 = vsel %vm1465_vm5, %v1449_v30, %v1375_v37  ;;  %v716_v35 = vrot.slane %v2150_v43, 4  ;;  %v1376_v40 = vrot.slane %v605_v29, 1  ;;  %v1093_v58 = vrot.slane %v1092_v48, 2 }
  0x8a   : > { %v834_v57 = vmul.f32 1.442695, %v799_v54  ;;  %1766 = vrcp.f32 %v869_v55  ;;  %vm994_vm1 = vcmp.eq.f32.partialorder %v2114_v26, %v715_v45  ;;  %v1089_v60 = vrot.slane %v2152_v33, 1  ;;  %v2186_v45 = vld [vmem:[%s1887_s17 + $0x70] sm:$0xff] }
  0x8b   : > { %v1450_v25 = vsel %vm1440_vm4, %v1425_v51, %v1328_v47  ;;  %v272_v62 = vrot.slane %v2140_v15, 4  ;;  %v1329_v63 = vrot.slane %v606_v53, 3  ;;  %v1377_v21 = vrot.slane %v606_v53, 1 }
  0x8c   : > { %1768 = vpow2.f32 %v834_v57  ;;  %v1426_v1 = vsel %vm1415_vm3, %v1209_v0, %v1257_v17  ;;  %v535_v41 = vsub.f32 %v415_v49, %v487_v52  ;;  %v1018_v26 = vsel %vm994_vm1, %v1918_v28, 8.0 }
  0x8d   : > { %v1761_v44 = vpop.eup %1760  ;;  %v717_v4 = vmax.f32 %v2150_v43, %v716_v35  ;;  %v214_v5 = vmul.f32 1.442695, %v2159_v59  ;;  %v1094_v8 = vmin.f32 %v1092_v48, %v1093_v58  ;;  %v583_v9 = vadd.f32 %v487_v52, %v415_v49 }
  0x8e   : > { %v1763_v2 = vpop.eup %1762  ;;  %vm940_vm2 = vcmp.gt.f32.partialorder %v1761_v44, 0.2  ;;  %v344_v46 = vrot.slane %v2140_v15, 6  ;;  %v559_v12 = vmax.f32 %v535_v41, 0.0  ;;  %v1097_v18 = vrot.slane %v1018_v26, 4 }
  0x8f   : > { %v964_v6 = vsel %vm940_vm2, %v1761_v44, -1.0  ;;  %v870_v7 = vadd.f32 1.0, %v1763_v2  ;;  %v718_v14 = vrot.slane %v717_v4, 2  ;;  %1770 = vpow2.f32 %v214_v5 }
  0x90   : > { %v1499_v11 = vsel %vm1490_vm7, %v1474_v42, %v964_v6  ;;  %v1451_v20 = vsel %vm1440_vm4, %v1426_v1, %v1329_v63  ;;  %v722_v24 = vrot.slane %v2169_v10, 4  ;;  %v1095_v34 = vrot.slane %v1094_v8, 1 }
  0x91   : > { %v1524_v16 = vsel %vm1515_vm8, %v1499_v11, %v1084_v56  ;;  %1772 = vrcp.f32 %v870_v7  ;;  %v719_v23 = vmax.f32 %v717_v4, %v718_v14  ;;  %v607_v13 = vmin.f32 %v583_v9, 127.0  ;;  %v2209_v11 = vld [vmem:[%s1881_s14 + $0x78] sm:$0xff] }
  0x92   : > { %v1549_v19 = vsel %vm1540_vm9, %v1524_v16, 0.0  ;;  %v1765_v29 = vpop.eup %1764  ;;  %v216_v61 = vmul.f32 1.442695, %v2174_v3  ;;  %v392_v38 = vmul.f32 %v344_v46, %v2140_v15  ;;  %v723_v31 = vmax.f32 %v2169_v10, %v722_v24 }
  0x93   : > { %v1574_v22 = vsel %vm1565_vm10, %v1549_v19, 0.0  ;;  %v320_v36 = vmul.f32 %v1765_v29, %v272_v62  ;;  %v720_v39 = vrot.slane %v719_v23, 1  ;;  %v1098_v32 = vmin.f32 %v1018_v26, %v1097_v18 }
  0x94   : > { %1598 = vst [vmem:[%s1987_s20 + $0x40] sm:$0xff] %v1574_v22  ;;  %v1210_v50 = vrot.slane %v559_v12, 5  ;;  %v1258_v37 = vrot.slane %v559_v12, 3  ;;  %1774 = vpow2.f32 %v216_v61  ;;  %v1090_v30 = vmin.f32 %v2152_v33, %v1089_v60 }
  0x95   : > { %v1475_v47 = vsel %vm1465_vm5, %v1450_v25, %v1376_v40  ;;  %v721_v48 = vmax.f32 %v719_v23, %v720_v39  ;;  %v724_v49 = vrot.slane %v723_v31, 2  ;;  %v1096_v27 = vmin.f32 %v1094_v8, %v1095_v34 }
  0x96   : > { %v1476_v51 = vsel %vm1465_vm5, %v1451_v20, %v1377_v21  ;;  %v2191_v53 = vrot.slane %v607_v13, 3  ;;  %v440_v15 = vmul.f32 0.5, %v320_v36  ;;  %v2193_v55 = vrot.slane %v607_v13, 1 }
  0x97   : > { %v1767_v54 = vpop.eup %1766  ;;  %v800_v0 = vsub.f32 0.0, %v721_v48  ;;  %v725_v17 = vmax.f32 %v723_v31, %v724_v49  ;;  %v728_v52 = vrot.slane %v2186_v45, 4  ;;  %v1099_v33 = vrot.slane %v1098_v32, 2 }
  0x98   : > { %vm941_vm6 = vcmp.gt.f32.partialorder %v1767_v54, 0.2  ;;  %v1427_v42 = vsel %vm1415_vm3, %v1210_v50, %v1258_v37  ;;  %v416_v57 = vadd.f32 %v392_v38, %v272_v62  ;;  %v273_v58 = vrot.slane %v2159_v59, 4 }
  0x99   : > { %v1769_v56 = vpop.eup %1768  ;;  %v965_v35 = vsel %vm941_vm6, %v1767_v54, -1.0  ;;  %v345_v60 = vrot.slane %v2159_v59, 6  ;;  %v488_v44 = vrot.slane %v440_v15, 2  ;;  %v836_v63 = vmul.f32 1.442695, %v800_v0 }
  0x9a   : > { %v871_v40 = vadd.f32 1.0, %v1769_v56  ;;  %v1500_v25 = vsel %vm1490_vm7, %v1475_v47, %v965_v35  ;;  %v726_v21 = vrot.slane %v725_v17, 1  ;;  %vm995_vm11 = vcmp.eq.f32.partialorder %v2150_v43, %v721_v48 }
  0x9b   : > { %v1525_v1 = vsel %vm1515_vm8, %v1500_v25, %v1090_v30  ;;  %v729_v62 = vmax.f32 %v2186_v45, %v728_v52  ;;  %v1100_v26 = vmin.f32 %v1098_v32, %v1099_v33  ;;  %v393_v7 = vmul.f32 %v345_v60, %v2159_v59 }
  0x9c   : > { %1776 = vrcp.f32 %v871_v40  ;;  %v1771_v41 = vpop.eup %1770  ;;  %v1550_v2 = vsel %vm1540_vm9, %v1525_v1, 0.0  ;;  %v727_v4 = vmax.f32 %v725_v17, %v726_v21  ;;  %v274_v8 = vrot.slane %v2174_v3, 4 }
  0x9d   : > { %1778 = vpow2.f32 %v836_v63  ;;  %v1575_v6 = vsel %vm1565_vm10, %v1550_v2, 0.0  ;;  %v346_v9 = vrot.slane %v2174_v3, 6  ;;  %v536_v46 = vsub.f32 %v416_v57, %v488_v44 }
  0x9e   : > { %v1773_v5 = vpop.eup %1772  ;;  %1599 = vst [vmem:[%s1987_s20 + $0x48] sm:$0xff] %v1575_v6  ;;  %v1019_v14 = vsel %vm995_vm11, %v1918_v28, 8.0  ;;  %v321_v16 = vmul.f32 %v1771_v41, %v273_v58  ;;  %v801_v18 = vsub.f32 0.0, %v727_v4  ;;  %vm996_vm13 = vcmp.eq.f32.partialorder %v2169_v10, %v727_v4 }
  0x9f   : > { %vm942_vm12 = vcmp.gt.f32.partialorder %v1773_v5, 0.2  ;;  %v730_v19 = vrot.slane %v729_v62, 2  ;;  %v584_v20 = vadd.f32 %v488_v44, %v416_v57  ;;  %v218_v24 = vmul.f32 1.442695, %v2209_v11 }
  0xa0   : > { %v966_v12 = vsel %vm942_vm12, %v1773_v5, -1.0  ;;  %v441_v23 = vmul.f32 0.5, %v321_v16  ;;  %v1103_v34 = vrot.slane %v1019_v14, 4  ;;  %v838_v13 = vmul.f32 1.442695, %v801_v18 }
  0xa1   : > { %v1501_v59 = vsel %vm1490_vm7, %v1476_v51, %v966_v12  ;;  %v1775_v29 = vpop.eup %1774  ;;  %v1020_v43 = vsel %vm996_vm13, %v1918_v28, 8.0  ;;  %v560_v36 = vmax.f32 %v536_v46, 0.0  ;;  %v417_v38 = vadd.f32 %v393_v7, %v273_v58  ;;  %v2232_v58 = vld [vmem:[%s1881_s14 + $0x80] sm:$0xff] }
  0xa2   : > { %v1526_v22 = vsel %vm1515_vm8, %v1501_v59, %v1096_v27  ;;  %v489_v10 = vrot.slane %v441_v23, 2  ;;  %1780 = vpow2.f32 %v838_v13  ;;  %v1109_v31 = vrot.slane %v1020_v43, 4 }
  0xa3   : > { %v1551_v61 = vsel %vm1540_vm9, %v1526_v22, 0.0  ;;  %v731_v32 = vmax.f32 %v729_v62, %v730_v19  ;;  %v1101_v50 = vrot.slane %v1100_v26, 1  ;;  %v1452_v37 = vsel %vm1440_vm4, %v1427_v42, %v2191_v53  ;;  %v2229_v42 = vld [vmem:[%s1887_s17 + $0x78] sm:$0xff]  ;;  %v2246_v19 = vld [vmem:[%s1887_s17 + $0x80] sm:$0xff] }
  0xa4   : > { %v1576_v39 = vsel %vm1565_vm10, %v1551_v61, 0.0  ;;  %v322_v30 = vmul.f32 %v1775_v29, %v274_v8  ;;  %v394_v47 = vmul.f32 %v346_v9, %v2174_v3  ;;  %v608_v48 = vmin.f32 %v584_v20, 127.0 }
  0xa5   : > { %1600 = vst [vmem:[%s1987_s20 + $0x50] sm:$0xff] %v1576_v39  ;;  %v1104_v49 = vmin.f32 %v1019_v14, %v1103_v34  ;;  %v732_v27 = vrot.slane %v731_v32, 1  ;;  %1782 = vpow2.f32 %v218_v24  ;;  %v1211_v51 = vrot.slane %v560_v36, 5 }
  0xa6   : > { %v1259_v15 = vrot.slane %v560_v36, 3  ;;  %v537_v54 = vsub.f32 %v417_v38, %v489_v10  ;;  %v1110_v0 = vmin.f32 %v1020_v43, %v1109_v31  ;;  %v1102_v52 = vmin.f32 %v1100_v26, %v1101_v50 }
  0xa7   : > { %v1477_v56 = vsel %vm1465_vm5, %v1452_v37, %v2193_v55  ;;  %v418_v33 = vadd.f32 %v394_v47, %v274_v8  ;;  %v442_v53 = vmul.f32 0.5, %v322_v30  ;;  %v1105_v3 = vrot.slane %v1104_v49, 2 }
  0xa8   : > { %v1331_v35 = vrot.slane %v608_v48, 3  ;;  %v733_v40 = vmax.f32 %v731_v32, %v732_v27  ;;  %v1428_v44 = vsel %vm1415_vm3, %v1211_v51, %v1259_v15  ;;  %v585_v63 = vadd.f32 %v489_v10, %v417_v38  ;;  %v2253_v38 = vld [vmem:[%s1881_s14 + $0x88] sm:$0xff] }
  0xa9   : > { %v1777_v17 = vpop.eup %1776  ;;  %v561_v55 = vmax.f32 %v537_v54, 0.0  ;;  %v1111_v1 = vrot.slane %v1110_v0, 2  ;;  %v734_v62 = vrot.slane %v2229_v42, 4  ;;  %v490_v2 = vrot.slane %v442_v53, 2 }
  0xaa   : > { %v1779_v57 = vpop.eup %1778  ;;  %vm943_vm14 = vcmp.gt.f32.partialorder %v1777_v17, 0.2  ;;  %v220_v26 = vmul.f32 1.442695, %v2232_v58  ;;  %v1106_v5 = vmin.f32 %v1104_v49, %v1105_v3  ;;  %v802_v6 = vsub.f32 0.0, %v733_v40 }
  0xab   : > { %v967_v60 = vsel %vm943_vm14, %v1777_v17, -1.0  ;;  %v872_v25 = vadd.f32 1.0, %v1779_v57  ;;  %v275_v7 = vrot.slane %v2209_v11, 4  ;;  %v1379_v9 = vrot.slane %v608_v48, 1 }
  0xac   : > { %v1502_v21 = vsel %vm1490_vm7, %v1477_v56, %v967_v60  ;;  %v1453_v46 = vsel %vm1440_vm4, %v1428_v44, %v1331_v35  ;;  %v609_v14 = vmin.f32 %v585_v63, 127.0  ;;  %v1112_v16 = vmin.f32 %v1110_v0, %v1111_v1  ;;  %v2265_v44 = vld [vmem:[%s1887_s17 + $0x88] sm:$0xff] }
  0xad   : > { %v1527_v41 = vsel %vm1515_vm8, %v1502_v21, %v1102_v52  ;;  %1784 = vrcp.f32 %v872_v25  ;;  %v1212_v12 = vrot.slane %v561_v55, 5  ;;  %v840_v18 = vmul.f32 1.442695, %v802_v6 }
  0xae   : > { %v1552_v4 = vsel %vm1540_vm9, %v1527_v41, 0.0  ;;  %vm997_vm15 = vcmp.eq.f32.partialorder %v2186_v45, %v733_v40  ;;  %v1260_v20 = vrot.slane %v561_v55, 3  ;;  %v538_v23 = vsub.f32 %v418_v33, %v490_v2 }
  0xaf   : > { %v1577_v8 = vsel %vm1565_vm10, %v1552_v4, 0.0  ;;  %v1781_v59 = vpop.eup %1780  ;;  %v735_v24 = vmax.f32 %v2229_v42, %v734_v62  ;;  %1786 = vpow2.f32 %v220_v26  ;;  %v1107_v29 = vrot.slane %v1106_v5, 1 }
  0xb0   : > { %1601 = vst [vmem:[%s1987_s20 + $0x58] sm:$0xff] %v1577_v8  ;;  %v873_v22 = vadd.f32 1.0, %v1781_v59  ;;  %1788 = vpow2.f32 %v840_v18  ;;  %v347_v34 = vrot.slane %v2209_v11, 6  ;;  %v1332_v43 = vrot.slane %v609_v14, 3 }
  0xb1   : > { %v1021_v61 = vsel %vm997_vm15, %v1918_v28, 8.0  ;;  %v736_v36 = vrot.slane %v735_v24, 2  ;;  %v740_v45 = vrot.slane %v2246_v19, 4  ;;  %v1113_v10 = vrot.slane %v1112_v16, 1 }
  0xb2   : > { %v1783_v13 = vpop.eup %1782  ;;  %1790 = vrcp.f32 %v873_v22  ;;  %v2255_v39 = vadd.f32 %v490_v2, %v418_v33  ;;  %v1429_v32 = vsel %vm1415_vm3, %v1212_v12, %v1260_v20  ;;  %v562_v50 = vmax.f32 %v538_v23, 0.0 }
  0xb3   : > { %v323_v31 = vmul.f32 %v1783_v13, %v275_v7  ;;  %v737_v37 = vmax.f32 %v735_v24, %v736_v36  ;;  %v741_v30 = vmax.f32 %v2246_v19, %v740_v45  ;;  %v1115_v47 = vrot.slane %v1021_v61, 4 }
  0xb4   : > { %v395_v48 = vmul.f32 %v347_v34, %v2209_v11  ;;  %v222_v27 = vmul.f32 1.442695, %v2253_v38  ;;  %v1108_v51 = vmin.f32 %v1106_v5, %v1107_v29  ;;  %v1478_v15 = vsel %vm1465_vm5, %v1453_v46, %v1379_v9 }
  0xb5   : > { %v443_v49 = vmul.f32 0.5, %v323_v31  ;;  %v738_v54 = vrot.slane %v737_v37, 1  ;;  %v742_v0 = vrot.slane %v741_v30, 2  ;;  %v1114_v17 = vmin.f32 %v1112_v16, %v1113_v10 }
  0xb6   : > { %v1380_v52 = vrot.slane %v609_v14, 1  ;;  %v1454_v56 = vsel %vm1440_vm4, %v1429_v32, %v1332_v43  ;;  %v610_v33 = vmin.f32 %v2255_v39, 127.0  ;;  %v1213_v53 = vrot.slane %v562_v50, 5  ;;  %v2285_v43 = vld [vmem:[%s1881_s14 + $0x90] sm:$0xff] }
  0xb7   : > { %v1261_v57 = vrot.slane %v562_v50, 3  ;;  %v739_v3 = vmax.f32 %v737_v37, %v738_v54  ;;  %v743_v35 = vmax.f32 %v741_v30, %v742_v0  ;;  %v1116_v40 = vmin.f32 %v1021_v61, %v1115_v47 }
  0xb8   : > { %v419_v60 = vadd.f32 %v395_v48, %v275_v7  ;;  %v491_v25 = vrot.slane %v443_v49, 2  ;;  %1792 = vpow2.f32 %v222_v27  ;;  %v1479_v1 = vsel %vm1465_vm5, %v1454_v56, %v1380_v52 }
  0xb9   : > { %v803_v63 = vsub.f32 0.0, %v739_v3  ;;  %vm998_vm1 = vcmp.eq.f32.partialorder %v2229_v42, %v739_v3  ;;  %v744_v21 = vrot.slane %v743_v35, 1  ;;  %v276_v62 = vrot.slane %v2232_v58, 4 }
  0xba   : > { %v1785_v11 = vpop.eup %1784  ;;  %v348_v41 = vrot.slane %v2232_v58, 6  ;;  %v746_v5 = vrot.slane %v2265_v44, 4  ;;  %v1333_v42 = vrot.slane %v610_v33, 3  ;;  %v539_v8 = vsub.f32 %v419_v60, %v491_v25 }
  0xbb   : > { %vm944_vm0 = vcmp.gt.f32.partialorder %v1785_v11, 0.2  ;;  %v842_v26 = vmul.f32 1.442695, %v803_v63  ;;  %v745_v4 = vmax.f32 %v743_v35, %v744_v21  ;;  %v1022_v9 = vsel %vm998_vm1, %v1918_v28, 8.0 }
  0xbc   : > { %v968_v55 = vsel %vm944_vm0, %v1785_v11, -1.0  ;;  %v1787_v6 = vpop.eup %1786  ;;  %v1117_v16 = vrot.slane %v1116_v40, 2  ;;  %v1430_v12 = vsel %vm1415_vm3, %v1213_v53, %v1261_v57  ;;  %v396_v23 = vmul.f32 %v348_v41, %v2232_v58  ;;  %v2299_v57 = vld [vmem:[%s1887_s17 + $0x90] sm:$0xff] }
  0xbd   : > { %v1503_v2 = vsel %vm1490_vm7, %v1478_v15, %v968_v55  ;;  %v1789_v46 = vpop.eup %1788  ;;  %1794 = vpow2.f32 %v842_v26  ;;  %v324_v20 = vmul.f32 %v1787_v6, %v276_v62  ;;  %v1121_v29 = vrot.slane %v1022_v9, 4 }
  0xbe   : > { %v1528_v7 = vsel %vm1515_vm8, %v1503_v2, %v1108_v51  ;;  %v874_v59 = vadd.f32 1.0, %v1789_v46  ;;  %v804_v22 = vsub.f32 0.0, %v745_v4  ;;  %v277_v34 = vrot.slane %v2253_v38, 4 }
  0xbf   : > { %v1553_v14 = vsel %vm1540_vm9, %v1528_v7, 0.0  ;;  %v1791_v24 = vpop.eup %1790  ;;  %v747_v13 = vmax.f32 %v2265_v44, %v746_v5  ;;  %v563_v61 = vmax.f32 %v539_v8, 0.0  ;;  %v587_v36 = vadd.f32 %v491_v25, %v419_v60 }
  0xc0   : > { %v1578_v18 = vsel %vm1565_vm10, %v1553_v14, 0.0  ;;  %vm945_vm2 = vcmp.gt.f32.partialorder %v1791_v24, 0.2  ;;  %1796 = vrcp.f32 %v874_v59  ;;  %v444_v10 = vmul.f32 0.5, %v324_v20 }
  0xc1   : > { %1602 = vst [vmem:[%s1987_s20 + $0x60] sm:$0xff] %v1578_v18  ;;  %v969_v45 = vsel %vm945_vm2, %v1791_v24, -1.0  ;;  %v844_v31 = vmul.f32 1.442695, %v804_v22  ;;  %vm999_vm6 = vcmp.eq.f32.partialorder %v2246_v19, %v745_v4  ;;  %v1118_v32 = vmin.f32 %v1116_v40, %v1117_v16 }
  0xc2   : > { %v1504_v58 = vsel %vm1490_vm7, %v1479_v1, %v969_v45  ;;  %v420_v50 = vadd.f32 %v396_v23, %v276_v62  ;;  %v224_v37 = vmul.f32 1.442695, %v2285_v43  ;;  %v1122_v47 = vmin.f32 %v1022_v9, %v1121_v29  ;;  %v2313_v29 = vld [vmem:[%s1881_s14 + $0x98] sm:$0xff] }
  0xc3   : > { %v1529_v30 = vsel %vm1515_vm8, %v1504_v58, %v1114_v17  ;;  %1798 = vpow2.f32 %v844_v31  ;;  %v748_v48 = vrot.slane %v747_v13, 2  ;;  %v611_v27 = vmin.f32 %v587_v36, 127.0  ;;  %v2318_v58 = vld [vmem:[%s1887_s17 + $0x98] sm:$0xff] }
  0xc4   : > { %v1554_v49 = vsel %vm1540_vm9, %v1529_v30, 0.0  ;;  %v1214_v51 = vrot.slane %v563_v61, 5  ;;  %v1023_v15 = vsel %vm999_vm6, %v1918_v28, 8.0  ;;  %v1262_v0 = vrot.slane %v563_v61, 3 }
  0xc5   : > { %v1793_v19 = vpop.eup %1792  ;;  %v1579_v54 = vsel %vm1565_vm10, %v1554_v49, 0.0  ;;  %v492_v52 = vrot.slane %v444_v10, 2  ;;  %v749_v56 = vmax.f32 %v747_v13, %v748_v48  ;;  %v1381_v17 = vrot.slane %v610_v33, 1 }
  0xc6   : > { %1603 = vst [vmem:[%s1987_s20 + $0x68] sm:$0xff] %v1579_v54  ;;  %v349_v53 = vrot.slane %v2253_v38, 6  ;;  %1800 = vpow2.f32 %v224_v37  ;;  %v1455_v3 = vsel %vm1440_vm4, %v1430_v12, %v1333_v42  ;;  %v1123_v35 = vrot.slane %v1122_v47, 2  ;;  %v2331_v54 = vld [vmem:[%s1887_s17 + $0xa0] sm:$0xff] }
  0xc7   : > { %v1127_v11 = vrot.slane %v1023_v15, 4  ;;  %v750_v40 = vrot.slane %v749_v56, 1  ;;  %v1119_v60 = vrot.slane %v1118_v32, 1  ;;  %v1334_v25 = vrot.slane %v611_v27, 3 }
  0xc8   : > { %v325_v63 = vmul.f32 %v1793_v19, %v277_v34  ;;  %v1431_v21 = vsel %vm1415_vm3, %v1214_v51, %v1262_v0  ;;  %v540_v55 = vsub.f32 %v420_v50, %v492_v52  ;;  %v752_v39 = vrot.slane %v2299_v57, 4  ;;  %v2328_v19 = vld [vmem:[%s1881_s14 + $0xa0] sm:$0xff] }
  0xc9   : > { %v751_v1 = vmax.f32 %v749_v56, %v750_v40  ;;  %v1480_v62 = vsel %vm1465_vm5, %v1455_v3, %v1381_v17  ;;  %v397_v41 = vmul.f32 %v349_v53, %v2253_v38  ;;  %v1124_v26 = vmin.f32 %v1122_v47, %v1123_v35 }
  0xca   : > { %v1795_v33 = vpop.eup %1794  ;;  %v1382_v4 = vrot.slane %v611_v27, 1  ;;  %v1128_v5 = vmin.f32 %v1023_v15, %v1127_v11  ;;  %v1456_v6 = vsel %vm1440_vm4, %v1431_v21, %v1334_v25  ;;  %v588_v7 = vadd.f32 %v492_v52, %v420_v50 }
  0xcb   : > { %v875_v2 = vadd.f32 1.0, %v1795_v33  ;;  %v445_v42 = vmul.f32 0.5, %v325_v63  ;;  %v805_v8 = vsub.f32 0.0, %v751_v1  ;;  %v1120_v46 = vmin.f32 %v1118_v32, %v1119_v60 }
  0xcc   : > { %v564_v14 = vmax.f32 %v540_v55, 0.0  ;;  %v753_v16 = vmax.f32 %v2299_v57, %v752_v39  ;;  %v421_v12 = vadd.f32 %v397_v41, %v277_v34  ;;  %v278_v38 = vrot.slane %v2285_v43, 4 }
  0xcd   : > { %v1797_v9 = vpop.eup %1796  ;;  %1802 = vrcp.f32 %v875_v2  ;;  %v846_v18 = vmul.f32 1.442695, %v805_v8  ;;  %v1125_v20 = vrot.slane %v1124_v26, 1  ;;  %v2310_v23 = vsel %vm1465_vm5, %v1456_v6, %v1382_v4 }
  0xce   : > { %vm946_vm11 = vcmp.gt.f32.partialorder %v1797_v9, 0.2  ;;  %v1129_v24 = vrot.slane %v1128_v5, 2  ;;  %v612_v61 = vmin.f32 %v588_v7, 127.0  ;;  %v493_v36 = vrot.slane %v445_v42, 2 }
  0xcf   : > { %v970_v59 = vsel %vm946_vm11, %v1797_v9, -1.0  ;;  %1804 = vpow2.f32 %v846_v18  ;;  %v1215_v10 = vrot.slane %v564_v14, 5  ;;  %v754_v31 = vrot.slane %v753_v16, 2 }
  0xd0   : > { %v1799_v22 = vpop.eup %1798  ;;  %v1505_v13 = vsel %vm1490_vm7, %v1480_v62, %v970_v59  ;;  %v1263_v50 = vrot.slane %v564_v14, 3  ;;  %vm1000_vm12 = vcmp.eq.f32.partialorder %v2265_v44, %v751_v1  ;;  %v226_v37 = vmul.f32 1.442695, %v2313_v29 }
  0xd1   : > { %v1530_v34 = vsel %vm1515_vm8, %v1505_v13, %v1120_v46  ;;  %v876_v45 = vadd.f32 1.0, %v1799_v22  ;;  %v1130_v48 = vmin.f32 %v1128_v5, %v1129_v24  ;;  %v755_v49 = vmax.f32 %v753_v16, %v754_v31 }
  0xd2   : > { %v1555_v32 = vsel %vm1540_vm9, %v1530_v34, 0.0  ;;  %v1126_v27 = vmin.f32 %v1124_v26, %v1125_v20  ;;  %v350_v51 = vrot.slane %v2285_v43, 6  ;;  %v758_v15 = vrot.slane %v2318_v58, 4 }
  0xd3   : > { %v1801_v30 = vpop.eup %1800  ;;  %v1580_v47 = vsel %vm1565_vm10, %v1555_v32, 0.0  ;;  %1806 = vrcp.f32 %v876_v45  ;;  %v1335_v0 = vrot.slane %v612_v61, 3  ;;  %v541_v52 = vsub.f32 %v421_v12, %v493_v36 }
  0xd4   : > { %1604 = vst [vmem:[%s1987_s20 + $0x70] sm:$0xff] %v1580_v47  ;;  %1808 = vpow2.f32 %v226_v37  ;;  %v1024_v56 = vsel %vm1000_vm12, %v1918_v28, 8.0  ;;  %v756_v17 = vrot.slane %v755_v49, 1  ;;  %v1432_v53 = vsel %vm1415_vm3, %v1215_v10, %v1263_v50 }
  0xd5   : > { %v2337_v3 = vadd.f32 %v493_v36, %v421_v12  ;;  %v326_v35 = vmul.f32 %v1801_v30, %v278_v38  ;;  %v759_v11 = vmax.f32 %v2318_v58, %v758_v15  ;;  %v1131_v40 = vrot.slane %v1130_v48, 1 }
  0xd6   : > { %v757_v60 = vmax.f32 %v755_v49, %v756_v17  ;;  %v228_v25 = vmul.f32 1.442695, %v2328_v19  ;;  %v764_v63 = vrot.slane %v2331_v54, 4  ;;  %v1383_v21 = vrot.slane %v612_v61, 1 }
  0xd7   : > { %v1133_v55 = vrot.slane %v1024_v56, 4  ;;  %v398_v44 = vmul.f32 %v350_v51, %v2285_v43  ;;  %v760_v1 = vrot.slane %v759_v11, 2  ;;  %v1457_v39 = vsel %vm1440_vm4, %v1432_v53, %v1335_v0 }
  0xd8   : > { %v565_v33 = vmax.f32 %v541_v52, 0.0  ;;  %v806_v62 = vsub.f32 0.0, %v757_v60  ;;  %v765_v41 = vmax.f32 %v2331_v54, %v764_v63  ;;  %v613_v26 = vmin.f32 %v2337_v3, 127.0 }
  0xd9   : > { %v446_v4 = vmul.f32 0.5, %v326_v35  ;;  %vm1001_vm13 = vcmp.eq.f32.partialorder %v2299_v57, %v757_v60  ;;  %v761_v5 = vmax.f32 %v759_v11, %v760_v1  ;;  %v1132_v6 = vmin.f32 %v1130_v48, %v1131_v40 }
  0xda   : > { %v1803_v2 = vpop.eup %1802  ;;  %v848_v7 = vmul.f32 1.442695, %v806_v62  ;;  %1810 = vpow2.f32 %v228_v25  ;;  %v1482_v8 = vsel %vm1465_vm5, %v1457_v39, %v1383_v21  ;;  %v1134_v9 = vmin.f32 %v1024_v56, %v1133_v55 }
  0xdb   : > { %vm947_vm14 = vcmp.gt.f32.partialorder %v1803_v2, 0.2  ;;  %v762_v46 = vrot.slane %v761_v5, 1  ;;  %v1025_v12 = vsel %vm1001_vm13, %v1918_v28, 8.0  ;;  %v766_v18 = vrot.slane %v765_v41, 2 }
  0xdc   : > { %v971_v42 = vsel %vm947_vm14, %v1803_v2, -1.0  ;;  %v1805_v14 = vpop.eup %1804  ;;  %1812 = vpow2.f32 %v848_v7  ;;  %v422_v20 = vadd.f32 %v398_v44, %v278_v38  ;;  %v494_v24 = vrot.slane %v446_v4, 2 }
  0xdd   : > { %v1506_v16 = vsel %vm1490_vm7, %v2310_v23, %v971_v42  ;;  %v877_v59 = vadd.f32 1.0, %v1805_v14  ;;  %v1216_v13 = vrot.slane %v565_v33, 5  ;;  %v1264_v61 = vrot.slane %v565_v33, 3 }
  0xde   : > { %v1531_v57 = vsel %vm1515_vm8, %v1506_v16, %v1126_v27  ;;  %v279_v36 = vrot.slane %v2313_v29, 4  ;;  %v1139_v45 = vrot.slane %v1025_v12, 4  ;;  %v763_v10 = vmax.f32 %v761_v5, %v762_v46 }
  0xdf   : > { %v1556_v22 = vsel %vm1540_vm9, %v1531_v57, 0.0  ;;  %1814 = vrcp.f32 %v877_v59  ;;  %v1135_v32 = vrot.slane %v1134_v9, 2  ;;  %v351_v43 = vrot.slane %v2313_v29, 6 }
  0xe0   : > { %v1807_v34 = vpop.eup %1806  ;;  %v1581_v23 = vsel %vm1565_vm10, %v1556_v22, 0.0  ;;  %v767_v38 = vmax.f32 %v765_v41, %v766_v18  ;;  %v542_v37 = vsub.f32 %v422_v20, %v494_v24  ;;  %v807_v30 = vsub.f32 0.0, %v763_v10 }
  0xe1   : > { %v1809_v31 = vpop.eup %1808  ;;  %1605 = vst [vmem:[%s1987_s20 + $0x78] sm:$0xff] %v1581_v23  ;;  %vm948_vm15 = vcmp.gt.f32.partialorder %v1807_v34, 0.2  ;;  %v1336_v48 = vrot.slane %v613_v26, 3  ;;  %v1433_v15 = vsel %vm1415_vm3, %v1216_v13, %v1264_v61  ;;  %v1140_v0 = vmin.f32 %v1025_v12, %v1139_v45  ;;  %v2381_v13 = vld [vmem:[%s1887_s17 + $0xa8] sm:$0xff] }
  0xe2   : > { %v972_v50 = vsel %vm948_vm15, %v1807_v34, -1.0  ;;  %v327_v49 = vmul.f32 %v1809_v31, %v279_v36  ;;  %v768_v27 = vrot.slane %v767_v38, 1  ;;  %v850_v52 = vmul.f32 1.442695, %v807_v30 }
  0xe3   : > { %v1507_v47 = vsel %vm1490_vm7, %v1482_v8, %v972_v50  ;;  %v1136_v17 = vmin.f32 %v1134_v9, %v1135_v32  ;;  %v590_v53 = vadd.f32 %v494_v24, %v422_v20  ;;  %v399_v3 = vmul.f32 %v351_v43, %v2313_v29 }
  0xe4   : > { %v1532_v51 = vsel %vm1515_vm8, %v1507_v47, %v1132_v6  ;;  %v566_v11 = vmax.f32 %v542_v37, 0.0  ;;  %1816 = vpow2.f32 %v850_v52  ;;  %v769_v40 = vmax.f32 %v767_v38, %v768_v27  ;;  %v2374_v6 = vld [vmem:[%s1881_s14 + $0xa8] sm:$0xff] }
  0xe5   : > { %v1557_v56 = vsel %vm1540_vm9, %v1532_v51, 0.0  ;;  %v447_v60 = vmul.f32 0.5, %v327_v49  ;;  %vm1002_vm0 = vcmp.eq.f32.partialorder %v2318_v58, %v763_v10  ;;  %v280_v25 = vrot.slane %v2328_v19, 4 }
  0xe6   : > { %v1582_v35 = vsel %vm1565_vm10, %v1557_v56, 0.0  ;;  %v1384_v21 = vrot.slane %v613_v26, 1  ;;  %v1141_v55 = vrot.slane %v1140_v0, 2  ;;  %v808_v44 = vsub.f32 0.0, %v769_v40 }
  0xe7   : > { %1606 = vst [vmem:[%s1987_s20 + $0x80] sm:$0xff] %v1582_v35  ;;  %v1811_v63 = vpop.eup %1810  ;;  %v1137_v1 = vrot.slane %v1136_v17, 1  ;;  %v1458_v39 = vsel %vm1440_vm4, %v1433_v15, %v1336_v48  ;;  %v423_v29 = vadd.f32 %v399_v3, %v279_v36  ;;  %v352_v33 = vrot.slane %v2328_v19, 6  ;;  %v2394_v48 = vld [vmem:[%s1887_s17 + $0xb0] sm:$0xff]  ;;  %v2403_v3 = vld [vmem:[%s1881_s14 + $0xb8] sm:$0xff] }
  0xe8   : > { %v614_v41 = vmin.f32 %v590_v53, 127.0  ;;  %v1217_v2 = vrot.slane %v566_v11, 5  ;;  %v1026_v4 = vsel %vm1002_vm0, %v1918_v28, 8.0  ;;  %v852_v5 = vmul.f32 1.442695, %v808_v44  ;;  %v2406_v35 = vld [vmem:[%s1887_s17 + $0xb8] sm:$0xff] }
  0xe9   : > { %v1813_v62 = vpop.eup %1812  ;;  %v1265_v7 = vrot.slane %v566_v11, 3  ;;  %v495_v42 = vrot.slane %v447_v60, 2  ;;  %v328_v26 = vmul.f32 %v1811_v63, %v280_v25  ;;  %v1483_v8 = vsel %vm1465_vm5, %v1458_v39, %v1384_v21 }
  0xea   : > { %v878_v58 = vadd.f32 1.0, %v1813_v62  ;;  %v1142_v9 = vmin.f32 %v1140_v0, %v1141_v55  ;;  %v1138_v14 = vmin.f32 %v1136_v17, %v1137_v1  ;;  %v1145_v16 = vrot.slane %v1026_v4, 4 }
  0xeb   : > { %v230_v12 = vmul.f32 1.442695, %v2374_v6  ;;  %v1337_v18 = vrot.slane %v614_v41, 3  ;;  %v400_v57 = vmul.f32 %v352_v33, %v2328_v19  ;;  %v1434_v20 = vsel %vm1415_vm3, %v1217_v2, %v1265_v7  ;;  %v2387_v19 = vld [vmem:[%s1881_s14 + $0xb0] sm:$0xff] }
  0xec   : > { %v1815_v46 = vpop.eup %1814  ;;  %1818 = vrcp.f32 %v878_v58  ;;  %v543_v24 = vsub.f32 %v423_v29, %v495_v42  ;;  %v448_v22 = vmul.f32 0.5, %v328_v26  ;;  %v1143_v36 = vrot.slane %v1142_v9, 1 }
  0xed   : > { %vm949_vm1 = vcmp.gt.f32.partialorder %v1815_v46, 0.2  ;;  %1820 = vpow2.f32 %v852_v5  ;;  %v1385_v34 = vrot.slane %v614_v41, 1  ;;  %v1146_v45 = vmin.f32 %v1026_v4, %v1145_v16 }
  0xee   : > { %v973_v59 = vsel %vm949_vm1, %v1815_v46, -1.0  ;;  %vm1003_vm2 = vcmp.eq.f32.partialorder %v2331_v54, %v769_v40  ;;  %1822 = vpow2.f32 %v230_v12  ;;  %v1459_v31 = vsel %vm1440_vm4, %v1434_v20, %v1337_v18 }
  0xef   : > { %v1508_v61 = vsel %vm1490_vm7, %v1483_v8, %v973_v59  ;;  %v591_v32 = vadd.f32 %v495_v42, %v423_v29  ;;  %v770_v43 = vrot.slane %v2381_v13, 4  ;;  %v567_v37 = vmax.f32 %v543_v24, 0.0 }
  0xf0   : > { %v1533_v23 = vsel %vm1515_vm8, %v1508_v61, %v1138_v14  ;;  %v424_v30 = vadd.f32 %v400_v57, %v280_v25  ;;  %v496_v47 = vrot.slane %v448_v22, 2  ;;  %v1027_v49 = vsel %vm1003_vm2, %v1918_v28, 8.0 }
  0xf1   : > { %v1558_v10 = vsel %vm1540_vm9, %v1533_v23, 0.0  ;;  %v1817_v38 = vpop.eup %1816  ;;  %v771_v27 = vmax.f32 %v2381_v13, %v770_v43  ;;  %v232_v51 = vmul.f32 1.442695, %v2387_v19  ;;  %v1144_v15 = vmin.f32 %v1142_v9, %v1143_v36 }
  0xf2   : > { %v1583_v50 = vsel %vm1565_vm10, %v1558_v10, 0.0  ;;  %v879_v54 = vadd.f32 1.0, %v1817_v38  ;;  %v1484_v0 = vsel %vm1465_vm5, %v1459_v31, %v1385_v34  ;;  %v1147_v52 = vrot.slane %v1146_v45, 2 }
  0xf3   : > { %1607 = vst [vmem:[%s1987_s20 + $0x88] sm:$0xff] %v1583_v50  ;;  %v615_v56 = vmin.f32 %v591_v32, 127.0  ;;  %v772_v17 = vrot.slane %v771_v27, 2  ;;  %v776_v53 = vrot.slane %v2394_v48, 4  ;;  %v1218_v11 = vrot.slane %v567_v37, 5 }
  0xf4   : > { %1824 = vrcp.f32 %v879_v54  ;;  %v544_v40 = vsub.f32 %v424_v30, %v496_v47  ;;  %v1151_v60 = vrot.slane %v1027_v49, 4  ;;  %v281_v25 = vrot.slane %v2374_v6, 4 }
  0xf5   : > { %v1266_v63 = vrot.slane %v567_v37, 3  ;;  %v773_v21 = vmax.f32 %v771_v27, %v772_v17  ;;  %1826 = vpow2.f32 %v232_v51  ;;  %v777_v55 = vmax.f32 %v2394_v48, %v776_v53 }
  0xf6   : > { %v1148_v44 = vmin.f32 %v1146_v45, %v1147_v52  ;;  %v353_v1 = vrot.slane %v2374_v6, 6  ;;  %v234_v39 = vmul.f32 1.442695, %v2403_v3  ;;  %v782_v29 = vrot.slane %v2406_v35, 4 }
  0xf7   : > { %v1338_v62 = vrot.slane %v615_v56, 3  ;;  %v592_v41 = vadd.f32 %v496_v47, %v424_v30  ;;  %v774_v2 = vrot.slane %v773_v21, 1  ;;  %v778_v4 = vrot.slane %v777_v55, 2 }
  0xf8   : > { %v1386_v58 = vrot.slane %v615_v56, 1  ;;  %v568_v7 = vmax.f32 %v544_v40, 0.0  ;;  %v1152_v42 = vmin.f32 %v1027_v49, %v1151_v60  ;;  %v1435_v8 = vsel %vm1415_vm3, %v1218_v11, %v1266_v63 }
  0xf9   : > { %v1819_v33 = vpop.eup %1818  ;;  %v775_v46 = vmax.f32 %v773_v21, %v774_v2  ;;  %v779_v16 = vmax.f32 %v777_v55, %v778_v4  ;;  %1828 = vpow2.f32 %v234_v39  ;;  %v783_v12 = vmax.f32 %v2406_v35, %v782_v29 }
  0xfa   : > { %v1821_v5 = vpop.eup %1820  ;;  %vm950_vm6 = vcmp.gt.f32.partialorder %v1819_v33, 0.2  ;;  %v1149_v59 = vrot.slane %v1148_v44, 1  ;;  %v1460_v22 = vsel %vm1440_vm4, %v1435_v8, %v1338_v62  ;;  %v616_v61 = vmin.f32 %v592_v41, 127.0 }
  0xfb   : > { %v974_v26 = vsel %vm950_vm6, %v1819_v33, -1.0  ;;  %v880_v9 = vadd.f32 1.0, %v1821_v5  ;;  %v1823_v18 = vpop.eup %1822  ;;  %v809_v20 = vsub.f32 0.0, %v775_v46  ;;  %v1153_v36 = vrot.slane %v1152_v42, 2 }
  0xfc   : > { %v1509_v14 = vsel %vm1490_vm7, %v1484_v0, %v974_v26  ;;  %v1219_v23 = vrot.slane %v568_v7, 5  ;;  %v1267_v45 = vrot.slane %v568_v7, 3  ;;  %v329_v31 = vmul.f32 %v1823_v18, %v281_v25 }
  0xfd   : > { %v1534_v57 = vsel %vm1515_vm8, %v1509_v14, %v1144_v15  ;;  %1830 = vrcp.f32 %v880_v9  ;;  %v854_v10 = vmul.f32 1.442695, %v809_v20  ;;  %v780_v32 = vrot.slane %v779_v16, 1 }
  0xfe   : > { %v1559_v24 = vsel %vm1540_vm9, %v1534_v57, 0.0  ;;  %v784_v43 = vrot.slane %v783_v12, 2  ;;  %v1150_v38 = vmin.f32 %v1148_v44, %v1149_v59  ;;  %v1485_v50 = vsel %vm1465_vm5, %v1460_v22, %v1386_v58 }
  0xff   : > { %v1584_v34 = vsel %vm1565_vm10, %v1559_v24, 0.0  ;;  %1832 = vpow2.f32 %v854_v10  ;;  %v1154_v30 = vmin.f32 %v1152_v42, %v1153_v36  ;;  %v1339_v47 = vrot.slane %v616_v61, 3 }
 0x100   : > { %1608 = vst [vmem:[%s1987_s20 + $0x90] sm:$0xff] %v1584_v34  ;;  %v781_v54 = vmax.f32 %v779_v16, %v780_v32  ;;  %v785_v49 = vmax.f32 %v783_v12, %v784_v43  ;;  %v1436_v27 = vsel %vm1415_vm3, %v1219_v23, %v1267_v45  ;;  %v401_v51 = vmul.f32 %v353_v1, %v2374_v6 }
 0x101   : > { %v1825_v37 = vpop.eup %1824  ;;  %v282_v15 = vrot.slane %v2387_v19, 4  ;;  %v449_v56 = vmul.f32 0.5, %v329_v31  ;;  %vm1004_vm12 = vcmp.eq.f32.partialorder %v2381_v13, %v775_v46  ;;  %v1387_v11 = vrot.slane %v616_v61, 1 }
 0x102   : > { %vm951_vm11 = vcmp.gt.f32.partialorder %v1825_v37, 0.2  ;;  %v1827_v0 = vpop.eup %1826  ;;  %v810_v17 = vsub.f32 0.0, %v781_v54  ;;  %v354_v40 = vrot.slane %v2387_v19, 6  ;;  %v786_v60 = vrot.slane %v785_v49, 1 }
 0x103   : > { %v975_v52 = vsel %vm951_vm11, %v1825_v37, -1.0  ;;  %v1155_v21 = vrot.slane %v1154_v30, 1  ;;  %v1461_v55 = vsel %vm1440_vm4, %v1436_v27, %v1339_v47  ;;  %v1028_v39 = vsel %vm1004_vm12, %v1918_v28, 8.0 }
 0x104   : > { %v1510_v53 = vsel %vm1490_vm7, %v1485_v50, %v975_v52  ;;  %v856_v44 = vmul.f32 1.442695, %v810_v17  ;;  %v330_v29 = vmul.f32 %v1827_v0, %v282_v15  ;;  %v787_v13 = vmax.f32 %v785_v49, %v786_v60 }
 0x105   : > { %v1535_v63 = vsel %vm1515_vm8, %v1510_v53, %v1150_v38  ;;  %v425_v62 = vadd.f32 %v401_v51, %v281_v25  ;;  %v497_v41 = vrot.slane %v449_v56, 2  ;;  %v402_v4 = vmul.f32 %v354_v40, %v2387_v19 }
 0x106   : > { %v1560_v1 = vsel %vm1540_vm9, %v1535_v63, 0.0  ;;  %1834 = vpow2.f32 %v856_v44  ;;  %v1829_v2 = vpop.eup %1828  ;;  %v283_v5 = vrot.slane %v2403_v3, 4  ;;  %v811_v58 = vsub.f32 0.0, %v787_v13 }
 0x107   : > { %v1585_v33 = vsel %vm1565_vm10, %v1560_v1, 0.0  ;;  %v1156_v42 = vmin.f32 %v1154_v30, %v1155_v21  ;;  %v1486_v26 = vsel %vm1465_vm5, %v1461_v55, %v1387_v11  ;;  %v1157_v8 = vrot.slane %v1028_v39, 4 }
 0x108   : > { %1609 = vst [vmem:[%s1987_s20 + $0x98] sm:$0xff] %v1585_v33  ;;  %v450_v9 = vmul.f32 0.5, %v330_v29  ;;  %vm1005_vm14 = vcmp.eq.f32.partialorder %v2394_v48, %v781_v54  ;;  %v858_v6 = vmul.f32 1.442695, %v811_v58  ;;  %v545_v46 = vsub.f32 %v425_v62, %v497_v41 }
 0x109   : > { %v355_v14 = vrot.slane %v2403_v3, 6  ;;  %v426_v16 = vadd.f32 %v402_v4, %v282_v15  ;;  %v331_v12 = vmul.f32 %v1829_v2, %v283_v5  ;;  %v1158_v59 = vmin.f32 %v1028_v39, %v1157_v8 }
 0x10a   : > { %v1831_v7 = vpop.eup %1830  ;;  %v1029_v20 = vsel %vm1005_vm14, %v1918_v28, 8.0  ;;  %1836 = vpow2.f32 %v858_v6  ;;  %v593_v48 = vadd.f32 %v497_v41, %v425_v62  ;;  %v498_v61 = vrot.slane %v450_v9, 2 }
 0x10b   : > { %vm952_vm13 = vcmp.gt.f32.partialorder %v1831_v7, 0.2  ;;  %v569_v34 = vmax.f32 %v545_v46, 0.0  ;;  %v403_v23 = vmul.f32 %v355_v14, %v2403_v3  ;;  %v1163_v45 = vrot.slane %v1029_v20, 4 }
 0x10c   : > { %v976_v25 = vsel %vm952_vm13, %v1831_v7, -1.0  ;;  %v1833_v18 = vpop.eup %1832  ;;  %v451_v10 = vmul.f32 0.5, %v331_v12  ;;  %vm1006_vm15 = vcmp.eq.f32.partialorder %v2406_v35, %v787_v13  ;;  %v1159_v31 = vrot.slane %v1158_v59, 2 }
 0x10d   : > { %v1511_v19 = vsel %vm1490_vm7, %v1486_v26, %v976_v25  ;;  %v881_v22 = vadd.f32 1.0, %v1833_v18  ;;  %v617_v32 = vmin.f32 %v593_v48, 127.0  ;;  %v546_v43 = vsub.f32 %v426_v16, %v498_v61 }
 0x10e   : > { %v1536_v57 = vsel %vm1515_vm8, %v1511_v19, %v1156_v42  ;;  %v1220_v38 = vrot.slane %v569_v34, 5  ;;  %v1268_v50 = vrot.slane %v569_v34, 3  ;;  %v1030_v37 = vsel %vm1006_vm15, %v1918_v28, 8.0 }
 0x10f   : > { %v1561_v24 = vsel %vm1540_vm9, %v1536_v57, 0.0  ;;  %1838 = vrcp.f32 %v881_v22  ;;  %v1164_v47 = vmin.f32 %v1029_v20, %v1163_v45  ;;  %v427_v54 = vadd.f32 %v403_v23, %v283_v5 }
 0x110   : > { %v1586_v36 = vsel %vm1565_vm10, %v1561_v24, 0.0  ;;  %v499_v49 = vrot.slane %v451_v10, 2  ;;  %v1160_v27 = vmin.f32 %v1158_v59, %v1159_v31  ;;  %v594_v51 = vadd.f32 %v498_v61, %v426_v16 }
 0x111   : > { %1610 = vst [vmem:[%s1987_s20 + $0xa0] sm:$0xff] %v1586_v36  ;;  %v1340_v15 = vrot.slane %v617_v32, 3  ;;  %v570_v0 = vmax.f32 %v546_v43, 0.0  ;;  %v1169_v52 = vrot.slane %v1030_v37, 4  ;;  %v1437_v56 = vsel %vm1415_vm3, %v1220_v38, %v1268_v50 }
 0x112   : > { %v1165_v35 = vrot.slane %v1164_v47, 2  ;;  %v547_v17 = vsub.f32 %v427_v54, %v499_v49  ;;  %v1161_v53 = vrot.slane %v1160_v27, 1  ;;  %v1388_v11 = vrot.slane %v617_v32, 1 }
 0x113   : > { %v1835_v30 = vpop.eup %1834  ;;  %v618_v40 = vmin.f32 %v594_v51, 127.0  ;;  %v1462_v28 = vsel %vm1440_vm4, %v1437_v56, %v1340_v15  ;;  %v1221_v63 = vrot.slane %v570_v0, 5  ;;  %v1269_v21 = vrot.slane %v570_v0, 3 }
 0x114   : > { %v882_v3 = vadd.f32 1.0, %v1835_v30  ;;  %v1170_v55 = vmin.f32 %v1030_v37, %v1169_v52  ;;  %v595_v44 = vadd.f32 %v499_v49, %v427_v54  ;;  %v1166_v39 = vmin.f32 %v1164_v47, %v1165_v35 }
 0x115   : > { %v571_v29 = vmax.f32 %v547_v17, 0.0  ;;  %v1162_v33 = vmin.f32 %v1160_v27, %v1161_v53  ;;  %v1487_v62 = vsel %vm1465_vm5, %v1462_v28, %v1388_v11  ;;  %v1341_v41 = vrot.slane %v618_v40, 3 }
 0x116   : > { %1840 = vrcp.f32 %v882_v3  ;;  %v1438_v2 = vsel %vm1415_vm3, %v1221_v63, %v1269_v21  ;;  %v1171_v4 = vrot.slane %v1170_v55, 2  ;;  %v1389_v58 = vrot.slane %v618_v40, 1 }
 0x117   : > { %v1837_v60 = vpop.eup %1836  ;;  %v619_v7 = vmin.f32 %v595_v44, 127.0  ;;  %v1167_v26 = vrot.slane %v1166_v39, 1  ;;  %v1222_v8 = vrot.slane %v571_v29, 5  ;;  %v1270_v9 = vrot.slane %v571_v29, 3 }
 0x118   : > { %v883_v1 = vadd.f32 1.0, %v1837_v60  ;;  %v1463_v25 = vsel %vm1440_vm4, %v1438_v2, %v1341_v41  ;;  %v1172_v14 = vmin.f32 %v1170_v55, %v1171_v4 }
 0x119   : > { %v1342_v16 = vrot.slane %v619_v7, 3  ;;  %v1168_v18 = vmin.f32 %v1166_v39, %v1167_v26  ;;  %v1488_v57 = vsel %vm1465_vm5, %v1463_v25, %v1389_v58  ;;  %v1439_v59 = vsel %vm1415_vm3, %v1222_v8, %v1270_v9 }
 0x11a   : > { %1842 = vrcp.f32 %v883_v1  ;;  %v1173_v24 = vrot.slane %v1172_v14, 1  ;;  %v1390_v48 = vrot.slane %v619_v7, 1 }
 0x11b   : > { %v1464_v61 = vsel %vm1440_vm4, %v1439_v59, %v1342_v16 }
 0x11c   : > { %v1839_v13 = vpop.eup %1838  ;;  %v1174_v10 = vmin.f32 %v1172_v14, %v1173_v24  ;;  %v1489_v31 = vsel %vm1465_vm5, %v1464_v61, %v1390_v48 }
 0x11d   : > { %vm953_vm0 = vcmp.gt.f32.partialorder %v1839_v13, 0.2 }
 0x11e   : > { %v977_v5 = vsel %vm953_vm0, %v1839_v13, -1.0 }
 0x11f   : > { %v1512_v42 = vsel %vm1490_vm7, %v1487_v62, %v977_v5 }
 0x120   : > { %v1537_v6 = vsel %vm1515_vm8, %v1512_v42, %v1162_v33 }
 0x121   : > { %v1562_v46 = vsel %vm1540_vm9, %v1537_v6, 0.0 }
 0x122   : > { %v1587_v19 = vsel %vm1565_vm10, %v1562_v46, 0.0 }
 0x123   : > { %v1841_v12 = vpop.eup %1840  ;;  %1611 = vst [vmem:[%s1987_s20 + $0xa8] sm:$0xff] %v1587_v19 }
 0x124   : > { %vm954_vm1 = vcmp.gt.f32.partialorder %v1841_v12, 0.2 }
 0x125   : > { %v978_v20 = vsel %vm954_vm1, %v1841_v12, -1.0 }
 0x126   : > { %v1513_v22 = vsel %vm1490_vm7, %v1488_v57, %v978_v20 }
 0x127   : > { %v1538_v36 = vsel %vm1515_vm8, %v1513_v22, %v1168_v18  ;;  %v1843_v23 = vpop.eup %1842 }
 0x128   : > { %v1563_v34 = vsel %vm1540_vm9, %v1538_v36, 0.0  ;;  %vm955_vm3 = vcmp.gt.f32.partialorder %v1843_v23, 0.2 }
 0x129   : > { %v1588_v45 = vsel %vm1565_vm10, %v1563_v34, 0.0  ;;  %v979_v32 = vsel %vm955_vm3, %v1843_v23, -1.0 }
 0x12a   : > { %1612 = vst [vmem:[%s1987_s20 + $0xb0] sm:$0xff] %v1588_v45  ;;  %v1514_v43 = vsel %vm1490_vm7, %v1489_v31, %v979_v32 }
 0x12b   : > { %v1539_v38 = vsel %vm1515_vm8, %v1514_v43, %v1174_v10 }
 0x12c   : > { %v1564_v50 = vsel %vm1540_vm9, %v1539_v38, 0.0 }
 0x12d   : > { %v1589_v37 = vsel %vm1565_vm10, %v1564_v50, 0.0 }
 0x12e   : > { %1613 = vst [vmem:[%s1987_s20 + $0xb8] sm:$0xff] %v1589_v37 }
 0x12f PF: > { %s12_s9 = sadd.s32 1, %s1850_s9  }
 0x130   : > { %p9_p4 = scmp.ge.s32.totalorder %s12_s9, 4  }
 0x132   :  { %11 = sbr.rel (!%p9_p4) target bundleno = 1 (0x1), region = 61 }

// kernel: forward.5
= control target key start
LH: loop header
LB: loop body
LE: loop exit
PB: predicated region body
PF: predicated region fallthrough
CT: control target
= control target key end

     0   :  { %v26_v0 = vlaneseq  ;;  %v285_v16 = vmov 0.0   ;;  %s377_s0 = inlined_call_operand.vmem [shape: f32[8,256], index: 0, kind: input, shape index: {}]   ;;  %s378_s1 = inlined_call_operand.vmem [shape: f32[8,128], index: 1, kind: output, shape index: {}]  }
   0x1   :  { %v261_v1 = vld [vmem:[%s377_s0] sm:$0xff]   ;;  %v266_v2 = vld [vmem:[%s377_s0 + $0x8] sm:$0xff]   ;;  %s293_s0 = smov 0  }
   0x2   :  { %v12_v3 = vrot.slane %v261_v1, 6  ;;  %v13_v4 = vrot.slane %v266_v2, 6  ;;  %v270_v5 = vand.u32 127, %v26_v0  ;;  %v272_v6 = vshrl.u32 %v26_v0, 7 }
   0x3   :  { %v379_v17 = vmov %v266_v2  ;;  %v380_v18 = vmov %v261_v1 }
   0x4   :  { %v16_v7 = vsub.f32 %v261_v1, %v12_v3  ;;  %v17_v8 = vsub.f32 %v266_v2, %v13_v4  ;;  %v277_v9 = vadd.s32 128, %v270_v5  ;;  %v29_v10 = vcvt.s32.f32 %v270_v5 }
   0x6   :  { %v20_v11 = vrot.slane %v16_v7, 1  ;;  %v21_v12 = vrot.slane %v17_v8, 1  ;;  %v30_v13 = vcvt.s32.f32 %v277_v9 }
   0x8   :  { %v281_v14 = vmul.f32 %v20_v11, %v16_v7  ;;  %v283_v15 = vmul.f32 %v21_v12, %v17_v8 }
   0x9 LB: > { %vm42_vm0 = vcmask 1044484   ;;  %v246_v19 = vmov 0   ;;  %v66_v30 = vsub.s32 4, %v272_v6  ;;  %v247_v33 = vmov 0.0   ;;  %s244_s0 = sphi %s293_s0, %s38_s0   ;;  %v240_v18 = vphi %v380_v18, %v140_v18   ;;  %v236_v17 = vphi %v379_v17, %v141_v17   ;;  %v232_v16 = vphi %v285_v16, %v385_v16  }
   0xa   : > { %208 = vset.pattern.permute.xlu1 %v246_v19  ;;  %209 = vset.pattern.permute.xlu0 %v246_v19  ;;  %v43_v20 = vsel %vm42_vm0, %v240_v18, -inf  ;;  %v44_v21 = vsel %vm42_vm0, %v236_v17, -inf  ;;  %v144_v43 = vstv %s244_s0  ;;  %vm142_vm8 = vcmp.eq.s32.totalorder %v272_v6, 6  ;;  %s38_s0 = sadd.s32 1, %s244_s0  }
   0xb   : > { %v45_v22 = vmax.f32 %v43_v20, %v44_v21  ;;  %vm145_vm6 = vcmp.eq.s32.totalorder %v270_v5, %v144_v43  ;;  %p35_p0 = scmp.ge.s32.totalorder %s38_s0, 32  }
   0xd   : > { %46 = vmax.xlane.f32.xlu0 %v45_v22 }
  0x96   : > { %v309_v23 = vpop.xlane.xlu0 %46 }
  0x97   : > { %vm49_vm1 = vcmp.eq.f32.partialorder %v240_v18, %v309_v23  ;;  %vm50_vm2 = vcmp.eq.f32.partialorder %v236_v17, %v309_v23  ;;  %vm48_vm5 = vcmp.gt.f32.partialorder %v309_v23, 0.2 }
  0x98   : > { %v51_v24 = vsel %vm49_vm1, %v29_v10, 256.0  ;;  %v52_v25 = vsel %vm50_vm2, %v30_v13, 256.0  ;;  %v130_v41 = vsel %vm48_vm5, 1, %v246_v19 }
  0x99   : > { %v53_v26 = vsel %vm42_vm0, %v51_v24, inf  ;;  %v54_v27 = vsel %vm42_vm0, %v52_v25, inf  ;;  %v149_v42 = vrot.slane %v130_v41, %v66_v30 }
  0x9a   : > { %v55_v28 = vmin.f32 %v53_v26, %v54_v27 }
  0x9b   : > { %vm150_vm7 = vcmp.eq.s32.totalorder %v149_v42, 1 }
  0x9c   : > { %56 = vmin.xlane.f32.xlu0 %v55_v28  ;;  %vm151_vm9 = vmand %vm145_vm6, %vm150_vm7 }
 0x125   : > { %v57_v29 = vpop.xlane.xlu0 %56 }
 0x126   : > { %vm322_vm3 = vcmp.eq.f32.partialorder %v29_v10, %v57_v29  ;;  %vm328_vm4 = vcmp.eq.f32.partialorder %v30_v13, %v57_v29 }
 0x127   : > { %v172_v34 = vsel %vm322_vm3, 1.0, %v247_v33  ;;  %v173_v35 = vsel %vm328_vm4, 1.0, %v247_v33  ;;  %v60_v20 = vsel %vm322_vm3, 1, %v246_v19  ;;  %v61_v21 = vsel %vm328_vm4, 1, %v246_v19 }
 0x128   : > { %v67_v36 = vrot.slane %v172_v34, %v66_v30  ;;  %v71_v37 = vrot.slane %v173_v35, %v66_v30  ;;  %v124_v22 = vrot.slane %v60_v20, 2  ;;  %v125_v25 = vrot.slane %v61_v21, 2 }
 0x12a   : > { %v72_v38 = vmul.f32 %v67_v36, %v261_v1  ;;  %v73_v39 = vmul.f32 %v71_v37, %v266_v2  ;;  %vm126_vm10 = vcmp.ne.s32.totalorder %v124_v22, 0  ;;  %vm127_vm12 = vcmp.ne.s32.totalorder %v125_v25, 0 }
 0x12c   : > { %v74_v40 = vadd.f32 %v73_v39, %v72_v38 }
 0x12e   : > { %75 = vadd.xlane.f32.xlu1 %v74_v40 }
 0x1b7   : > { %v76_v44 = vpop.xlane.xlu1 %75 }
 0x1b8   : > { %v143_v45 = vsel %vm142_vm8, 1.0, %v76_v44  ;;  %v100_v46 = vrot.slane %v76_v44, 6  ;;  %v77_v51 = vmax.f32 %v76_v44, %v261_v1  ;;  %v78_v52 = vmax.f32 %v76_v44, %v266_v2 }
 0x1b9   : > { %v152_v47 = vsel %vm151_vm9, %v143_v45, %v232_v16   ;;  %v79_v55 = vmin.f32 %v76_v44, %v261_v1  ;;  %v80_v56 = vmin.f32 %v76_v44, %v266_v2 }
 0x1ba   : > { %v102_v48 = vsub.f32 %v76_v44, %v100_v46  ;;  %v83_v53 = vrot.slane %v77_v51, 6  ;;  %v84_v54 = vrot.slane %v78_v52, 6  ;;  %153 = vst [vmem:[%s378_s1] sm:$0xff] (%p35_p0), %v152_v47 }
 0x1bc   : > { %v104_v49 = vrot.slane %v102_v48, 1  ;;  %v87_v57 = vsub.f32 %v79_v55, %v83_v53  ;;  %v88_v58 = vsub.f32 %v80_v56, %v84_v54 }
 0x1be   : > { %v106_v50 = vmul.f32 %v104_v49, %v102_v48  ;;  %v89_v59 = vmax.f32 %v87_v57, 0.0  ;;  %v90_v60 = vmax.f32 %v88_v58, 0.0 }
 0x1c0   : > { %109 = vperm.xlu1 %208, %v106_v50   ;;  %v93_v61 = vrot.slane %v89_v59, 1  ;;  %v94_v62 = vrot.slane %v90_v60, 1 }
 0x1c2   : > { %v97_v0 = vmul.f32 %v93_v61, %v89_v59  ;;  %v98_v3 = vmul.f32 %v94_v62, %v90_v60 }
 0x23b   : > { %v110_v63 = vpop.permute.xlu1 %109 }
 0x23c   : > { %v112_v4 = vadd.f32 %v110_v63, %v281_v14  ;;  %v113_v7 = vadd.f32 %v110_v63, %v283_v15 }
 0x23e   : > { %v114_v8 = vsub.f32 %v112_v4, %v97_v0  ;;  %v115_v11 = vsub.f32 %v113_v7, %v98_v3 }
 0x240   : > { %v116_v12 = vadd.f32 1e-08, %v114_v8  ;;  %v117_v16 = vadd.f32 1e-08, %v115_v11 }
 0x242   : > { %210 = vrcp.f32 %v116_v12 }
 0x243   : > { %212 = vrcp.f32 %v117_v16  ;;  %v385_v16 = vmov %v152_v47 }
 0x24f   : > { %v211_v24 = vpop.eup %210 }
 0x250   : > { %v213_v26 = vpop.eup %212  ;;  %v119_v27 = vmul.f32 %v211_v24, %v97_v0 }
 0x251   : > { %v121_v28 = vmul.f32 %v213_v26, %v98_v3 }
 0x252   : > { %vm122_vm11 = vcmp.ge.f32.partialorder %v119_v27, 0.2 }
 0x253   : > { %vm123_vm13 = vcmp.ge.f32.partialorder %v121_v28, 0.2  ;;  %vm128_vm14 = vmor %vm122_vm11, %vm126_vm10 }
 0x254   : > { %vm129_vm15 = vmor %vm123_vm13, %vm127_vm12  ;;  %v132_v29 = vsel %vm128_vm14, 1, %v246_v19 }
 0x255   : > { %v133_v30 = vsel %vm129_vm15, 1, %v246_v19  ;;  %v134_v31 = vrot.slane %v132_v29, 6 }
 0x256   : > { %v135_v33 = vrot.slane %v133_v30, 6  ;;  %37 = sbr.rel (!%p35_p0) target bundleno = 9 (0x9), region = 31 }
 0x257   : > { %vm136_vm0 = vcmp.ne.s32.totalorder %v134_v31, 0 }
 0x258   : > { %vm137_vm1 = vcmp.ne.s32.totalorder %v135_v33, 0  ;;  %vm138_vm2 = vmand %vm48_vm5, %vm136_vm0 }
 0x259   : > { %vm139_vm3 = vmand %vm48_vm5, %vm137_vm1  ;;  %v140_v18 = vsel %vm138_vm2, -1.0, %v240_v18  }
 0x25a   : > { %v141_v17 = vsel %vm139_vm3, -1.0, %v236_v17  }

</bundles_post_ra>
